<compile_context>
chip_gen: v5e
topology: v5e:2x2
jax: 0.10.0
libtpu: 0.0.40
codegen_flags: <defaults>
</compile_context>

<pallas_src>
import math
import jax
import jax.numpy as jnp
from jax.experimental import pallas as pl
from jax.experimental.pallas import tpu as pltpu

# --- model config (small, deterministic) ---
D_MODEL = 32
N_HEADS = 4
D_K = D_MODEL // N_HEADS
D_FF = 64
N_LAYERS = 2
VOCAB = 16
EPS = 1e-6
MAX_LEN = 64
NEG_INF = -1e9


# ------------------------- in-kernel building blocks (pure value math) -------------------------

def _ln2d(x, g, b):
    # x: (S, D) f32; g, b: (1, D)
    mean = jnp.mean(x, axis=-1, keepdims=True)
    c = x - mean
    var = jnp.mean(c * c, axis=-1, keepdims=True)
    return c * jax.lax.rsqrt(var + EPS) * g + b


def _mha2d(xq, xkv, bias, wq, bq, wk, bk, wv, bv, wo, bo):
    # xq: (Sq, D), xkv: (Sk, D), bias: (Sq, Sk) additive (0 keep / -1e9 mask) -> (Sq, D)
    q = jnp.dot(xq, wq, preferred_element_type=jnp.float32) + bq
    k = jnp.dot(xkv, wk, preferred_element_type=jnp.float32) + bk
    v = jnp.dot(xkv, wv, preferred_element_type=jnp.float32) + bv
    scale = 1.0 / math.sqrt(D_K)
    acc = None
    # Static per-head loop; heads are contiguous lane slices of the projected features.
    # The output projection is folded per head (concat(heads) @ Wo == sum_h oh @ Wo[h*dk:(h+1)*dk]),
    # so everything stays 2-D and no concatenate / reshape is needed inside the kernel.
    for h in range(N_HEADS):
        sl = slice(h * D_K, (h + 1) * D_K)
        qh, kh, vh = q[:, sl], k[:, sl], v[:, sl]
        s = jax.lax.dot_general(qh, kh, (((1,), (1,)), ((), ())),
                                preferred_element_type=jnp.float32) * scale + bias
        m = jnp.max(s, axis=-1, keepdims=True)
        p = jnp.exp(s - m)
        p = p * pl.reciprocal(jnp.sum(p, axis=-1, keepdims=True), approx=True)
        oh = jnp.dot(p, vh, preferred_element_type=jnp.float32)                 # (Sq, dk)
        contrib = jnp.dot(oh, wo[sl, :], preferred_element_type=jnp.float32)    # (Sq, D)
        acc = contrib if acc is None else acc + contrib
    return acc + bo


def _ffn2d(x, w1, b1, w2, b2):
    h = jnp.maximum(jnp.dot(x, w1, preferred_element_type=jnp.float32) + b1, 0.0)
    return jnp.dot(h, w2, preferred_element_type=jnp.float32) + b2


# ------------------------- fused Pallas kernels -------------------------

def _encoder_kernel(x_ref, bias_ref,
                    wq_ref, bq_ref, wk_ref, bk_ref, wv_ref, bv_ref, wo_ref, bo_ref,
                    w1_ref, b1_ref, w2_ref, b2_ref,
                    ln1g_ref, ln1b_ref, ln2g_ref, ln2b_ref,
                    lnfg_ref, lnfb_ref,
                    o_ref):
    # One grid step == one batch element; whole N-layer encoder + final LN fused.
    x = x_ref[0].astype(jnp.float32)        # (S, D)
    bias = bias_ref[0]                      # (S, S) additive mask bias
    for l in range(N_LAYERS):
        y = _ln2d(x, ln1g_ref[l], ln1b_ref[l])
        x = x + _mha2d(y, y, bias,
                       wq_ref[l], bq_ref[l], wk_ref[l], bk_ref[l],
                       wv_ref[l], bv_ref[l], wo_ref[l], bo_ref[l])
        y = _ln2d(x, ln2g_ref[l], ln2b_ref[l])
        x = x + _ffn2d(y, w1_ref[l], b1_ref[l], w2_ref[l], b2_ref[l])
    x = _ln2d(x, lnfg_ref[...], lnfb_ref[...])
    o_ref[0] = x.astype(o_ref.dtype)


def _decoder_kernel(x_ref, mem_ref, sbias_ref, cbias_ref,
                    wq_ref, bq_ref, wk_ref, bk_ref, wv_ref, bv_ref, wo_ref, bo_ref,
                    swq_ref, sbq_ref, swk_ref, sbk_ref, swv_ref, sbv_ref, swo_ref, sbo_ref,
                    w1_ref, b1_ref, w2_ref, b2_ref,
                    ln1g_ref, ln1b_ref, ln2g_ref, ln2b_ref, ln3g_ref, ln3b_ref,
                    lnfg_ref, lnfb_ref,
                    o_ref):
    # One grid step == one batch element; whole N-layer decoder + final LN fused.
    x = x_ref[0].astype(jnp.float32)        # (St, D)
    mem = mem_ref[0].astype(jnp.float32)    # (Ss, D)
    sbias = sbias_ref[0]                    # (St, St)
    cbias = cbias_ref[0]                    # (St, Ss)
    for l in range(N_LAYERS):
        y = _ln2d(x, ln1g_ref[l], ln1b_ref[l])
        x = x + _mha2d(y, y, sbias,
                       wq_ref[l], bq_ref[l], wk_ref[l], bk_ref[l],
                       wv_ref[l], bv_ref[l], wo_ref[l], bo_ref[l])
        y = _ln2d(x, ln2g_ref[l], ln2b_ref[l])
        x = x + _mha2d(y, mem, cbias,
                       swq_ref[l], sbq_ref[l], swk_ref[l], sbk_ref[l],
                       swv_ref[l], sbv_ref[l], swo_ref[l], sbo_ref[l])
        y = _ln2d(x, ln3g_ref[l], ln3b_ref[l])
        x = x + _ffn2d(y, w1_ref[l], b1_ref[l], w2_ref[l], b2_ref[l])
    x = _ln2d(x, lnfg_ref[...], lnfb_ref[...])
    o_ref[0] = x.astype(o_ref.dtype)


# ------------------------- pallas_call wrappers -------------------------

def _batch_spec(shape):
    # Activation tile: one batch element per grid step; last two dims == full extents.
    return pl.BlockSpec(shape, lambda b: (b, 0, 0))


def _resident_spec(arr):
    # Whole weight array resident in VMEM; same block for every grid step.
    idx = (0,) * arr.ndim
    return pl.BlockSpec(arr.shape, lambda b, _idx=idx: _idx)


def _mask_to_bias(mask, sq, sk):
    m = mask.astype(jnp.float32)
    m = jnp.broadcast_to(m, (m.shape[0], sq, sk))
    return (1.0 - m) * NEG_INF


def embed(tokens, table, pe):
    # Embeddings: lut(x) * sqrt(d_model); PositionalEncoding: + pe[:S] (JAX glue: gather)
    x = table[tokens] * math.sqrt(D_MODEL)
    return (x + pe[: tokens.shape[1]][None, :, :]).astype(jnp.float32)


def encode(params, src, src_mask):
    x = embed(src, params["src_emb"], params["pe"])                 # (B, S, D)
    B, S, D = x.shape
    bias = _mask_to_bias(src_mask, S, S)                            # (B, S, S)
    ep = params["enc"]
    weights = [ep["wq"], ep["bq"], ep["wk"], ep["bk"], ep["wv"], ep["bv"], ep["wo"], ep["bo"],
               ep["w1"], ep["b1"], ep["w2"], ep["b2"],
               ep["ln1_g"], ep["ln1_b"], ep["ln2_g"], ep["ln2_b"],
               params["enc_ln_g"], params["enc_ln_b"]]
    in_specs = [_batch_spec((1, S, D)), _batch_spec((1, S, S))] + [_resident_spec(w) for w in weights]
    flops = 2 * B * N_LAYERS * (4 * S * D * D + 2 * S * S * D + 2 * S * D * D_FF)
    trans = B * N_LAYERS * N_HEADS * S * S
    nbytes = sum(int(a.size) * 4 for a in [x, bias] + weights) + B * S * D * 4
    return pl.pallas_call(
        _encoder_kernel,
        grid=(B,),
        in_specs=in_specs,
        out_specs=_batch_spec((1, S, D)),
        out_shape=jax.ShapeDtypeStruct((B, S, D), jnp.float32),
        compiler_params=pltpu.CompilerParams(dimension_semantics=("parallel",)),
        cost_estimate=pl.CostEstimate(flops=int(flops), transcendentals=int(trans),
                                      bytes_accessed=int(nbytes)),
    )(x, bias, *weights)


def decode(params, memory, src_mask, tgt, tgt_mask):
    x = embed(tgt, params["tgt_emb"], params["pe"])                 # (B, St, D)
    B, St, D = x.shape
    Ss = memory.shape[1]
    self_bias = _mask_to_bias(tgt_mask, St, St)                     # (B, St, St)
    cross_bias = _mask_to_bias(src_mask, St, Ss)                    # (B, St, Ss)
    dp = params["dec"]
    weights = [dp["wq"], dp["bq"], dp["wk"], dp["bk"], dp["wv"], dp["bv"], dp["wo"], dp["bo"],
               dp["swq"], dp["sbq"], dp["swk"], dp["sbk"], dp["swv"], dp["sbv"], dp["swo"], dp["sbo"],
               dp["w1"], dp["b1"], dp["w2"], dp["b2"],
               dp["ln1_g"], dp["ln1_b"], dp["ln2_g"], dp["ln2_b"], dp["ln3_g"], dp["ln3_b"],
               params["dec_ln_g"], params["dec_ln_b"]]
    in_specs = ([_batch_spec((1, St, D)), _batch_spec((1, Ss, D)),
                 _batch_spec((1, St, St)), _batch_spec((1, St, Ss))]
                + [_resident_spec(w) for w in weights])
    flops = 2 * B * N_LAYERS * (8 * St * D * D + 2 * St * St * D + 2 * St * Ss * D
                                + 2 * St * D * D_FF)
    trans = B * N_LAYERS * N_HEADS * (St * St + St * Ss)
    nbytes = (sum(int(a.size) * 4 for a in [x, memory, self_bias, cross_bias] + weights)
              + B * St * D * 4)
    return pl.pallas_call(
        _decoder_kernel,
        grid=(B,),
        in_specs=in_specs,
        out_specs=_batch_spec((1, St, D)),
        out_shape=jax.ShapeDtypeStruct((B, St, D), jnp.float32),
        compiler_params=pltpu.CompilerParams(dimension_semantics=("parallel",)),
        cost_estimate=pl.CostEstimate(flops=int(flops), transcendentals=int(trans),
                                      bytes_accessed=int(nbytes)),
    )(x, memory, self_bias, cross_bias, *weights)


def encoder_decoder_forward(params, src, tgt, src_mask, tgt_mask):
    # EncoderDecoder.forward: decode(encode(src, src_mask), src_mask, tgt, tgt_mask)
    # TODO(synk): generator (final Linear + log_softmax) is defined in __init__ but never
    # called in forward(), so it is intentionally not applied here.
    memory = encode(params, src, src_mask)
    return decode(params, memory, src_mask, tgt, tgt_mask)


# ------------------------- deterministic parameter init (stacked per layer) -------------------------

def _attn_stack(key):
    ks = jax.random.split(key, 4)
    p = {}
    for name, k in zip("qkvo", ks):
        p["w" + name] = jax.random.normal(k, (N_LAYERS, D_MODEL, D_MODEL), jnp.float32) * 0.02
        p["b" + name] = jnp.zeros((N_LAYERS, 1, D_MODEL), jnp.float32)
    return p


def _encoder_params(key):
    ka, k1, k2 = jax.random.split(key, 3)
    p = _attn_stack(ka)
    p["w1"] = jax.random.normal(k1, (N_LAYERS, D_MODEL, D_FF), jnp.float32) * 0.02
    p["b1"] = jnp.zeros((N_LAYERS, 1, D_FF), jnp.float32)
    p["w2"] = jax.random.normal(k2, (N_LAYERS, D_FF, D_MODEL), jnp.float32) * 0.02
    p["b2"] = jnp.zeros((N_LAYERS, 1, D_MODEL), jnp.float32)
    for i in ("1", "2"):
        p["ln" + i + "_g"] = jnp.ones((N_LAYERS, 1, D_MODEL), jnp.float32)
        p["ln" + i + "_b"] = jnp.zeros((N_LAYERS, 1, D_MODEL), jnp.float32)
    return p


def _decoder_params(key):
    ka, ks_, k1, k2 = jax.random.split(key, 4)
    p = _attn_stack(ka)
    src = _attn_stack(ks_)
    for name in "qkvo":
        p["sw" + name] = src["w" + name]
        p["sb" + name] = src["b" + name]
    p["w1"] = jax.random.normal(k1, (N_LAYERS, D_MODEL, D_FF), jnp.float32) * 0.02
    p["b1"] = jnp.zeros((N_LAYERS, 1, D_FF), jnp.float32)
    p["w2"] = jax.random.normal(k2, (N_LAYERS, D_FF, D_MODEL), jnp.float32) * 0.02
    p["b2"] = jnp.zeros((N_LAYERS, 1, D_MODEL), jnp.float32)
    for i in ("1", "2", "3"):
        p["ln" + i + "_g"] = jnp.ones((N_LAYERS, 1, D_MODEL), jnp.float32)
        p["ln" + i + "_b"] = jnp.zeros((N_LAYERS, 1, D_MODEL), jnp.float32)
    return p


def _positional_encoding(max_len, d_model):
    pos = jnp.arange(max_len, dtype=jnp.float32)[:, None]
    div = jnp.exp(jnp.arange(0, d_model, 2, dtype=jnp.float32) * (-math.log(10000.0) / d_model))
    pe = jnp.zeros((max_len, d_model), jnp.float32)
    pe = pe.at[:, 0::2].set(jnp.sin(pos * div))
    pe = pe.at[:, 1::2].set(jnp.cos(pos * div))
    return pe


def init_params(key):
    keys = jax.random.split(key, 4)
    return {
        "src_emb": jax.random.normal(keys[0], (VOCAB, D_MODEL), jnp.float32) * 0.02,
        "tgt_emb": jax.random.normal(keys[1], (VOCAB, D_MODEL), jnp.float32) * 0.02,
        "pe": _positional_encoding(MAX_LEN, D_MODEL),
        "enc": _encoder_params(keys[2]),
        "dec": _decoder_params(keys[3]),
        "enc_ln_g": jnp.ones((1, D_MODEL), jnp.float32),
        "enc_ln_b": jnp.zeros((1, D_MODEL), jnp.float32),
        "dec_ln_g": jnp.ones((1, D_MODEL), jnp.float32),
        "dec_ln_b": jnp.zeros((1, D_MODEL), jnp.float32),
    }


# ------------------------- driver -------------------------

if __name__ == "__main__":
    key = jax.random.PRNGKey(0)
    kp, ks, kt = jax.random.split(key, 3)

    B, S_SRC, S_TGT = 2, 8, 8
    params = init_params(kp)

    src = jax.random.randint(ks, (B, S_SRC), 0, VOCAB, dtype=jnp.int32)
    tgt = jax.random.randint(kt, (B, S_TGT), 0, VOCAB, dtype=jnp.int32)
    src_mask = jnp.ones((B, 1, S_SRC), jnp.float32)                       # (B, 1, S_src) padding mask
    tgt_mask = jnp.broadcast_to(                                          # (B, S_tgt, S_tgt) causal
        jnp.tril(jnp.ones((S_TGT, S_TGT), jnp.float32)), (B, S_TGT, S_TGT))

    fwd = jax.jit(encoder_decoder_forward)
    out = fwd(params, src, tgt, src_mask, tgt_mask)                       # (B, S_tgt, D_MODEL)
    out = jax.block_until_ready(out)
    assert out.shape == (B, S_TGT, D_MODEL) and out.dtype == jnp.float32
    assert bool(jnp.all(jnp.isfinite(out)))
    print("KERNEL_OK")
</pallas_src>

<mosaic_0001>
module attributes {stable_mosaic.version = 11 : i64} {
  func.func @_encoder_kernel(%arg0: i32, %arg1: memref<1x8x32xf32, #tpu.memory_space<vmem>>, %arg2: memref<1x8x8xf32, #tpu.memory_space<vmem>>, %arg3: memref<2x32x32xf32, #tpu.memory_space<vmem>>, %arg4: memref<2x1x32xf32, #tpu.memory_space<vmem>>, %arg5: memref<2x32x32xf32, #tpu.memory_space<vmem>>, %arg6: memref<2x1x32xf32, #tpu.memory_space<vmem>>, %arg7: memref<2x32x32xf32, #tpu.memory_space<vmem>>, %arg8: memref<2x1x32xf32, #tpu.memory_space<vmem>>, %arg9: memref<2x32x32xf32, #tpu.memory_space<vmem>>, %arg10: memref<2x1x32xf32, #tpu.memory_space<vmem>>, %arg11: memref<2x32x64xf32, #tpu.memory_space<vmem>>, %arg12: memref<2x1x64xf32, #tpu.memory_space<vmem>>, %arg13: memref<2x64x32xf32, #tpu.memory_space<vmem>>, %arg14: memref<2x1x32xf32, #tpu.memory_space<vmem>>, %arg15: memref<2x1x32xf32, #tpu.memory_space<vmem>>, %arg16: memref<2x1x32xf32, #tpu.memory_space<vmem>>, %arg17: memref<2x1x32xf32, #tpu.memory_space<vmem>>, %arg18: memref<2x1x32xf32, #tpu.memory_space<vmem>>, %arg19: memref<1x32xf32, #tpu.memory_space<vmem>>, %arg20: memref<1x32xf32, #tpu.memory_space<vmem>>, %arg21: memref<1x8x32xf32, #tpu.memory_space<vmem>>) attributes {dimension_semantics = [#tpu.dimension_semantics<parallel>], iteration_bounds = array<i64: 2>, scalar_prefetch = 0 : i64, scratch_operands = 0 : i64, tpu.core_type = #tpu.core_type<tc>, window_params = [{transform_indices = @transform_0, window_bounds = array<i64: 1, 8, 32>}, {transform_indices = @transform_1, window_bounds = array<i64: 1, 8, 8>}, {pipeline_mode = #tpu.pipeline_mode<synchronous>, transform_indices = @transform_2, window_bounds = array<i64: 2, 32, 32>}, {pipeline_mode = #tpu.pipeline_mode<synchronous>, transform_indices = @transform_3, window_bounds = array<i64: 2, 1, 32>}, {pipeline_mode = #tpu.pipeline_mode<synchronous>, transform_indices = @transform_4, window_bounds = array<i64: 2, 32, 32>}, {pipeline_mode = #tpu.pipeline_mode<synchronous>, transform_indices = @transform_5, window_bounds = array<i64: 2, 1, 32>}, {pipeline_mode = #tpu.pipeline_mode<synchronous>, transform_indices = @transform_6, window_bounds = array<i64: 2, 32, 32>}, {pipeline_mode = #tpu.pipeline_mode<synchronous>, transform_indices = @transform_7, window_bounds = array<i64: 2, 1, 32>}, {pipeline_mode = #tpu.pipeline_mode<synchronous>, transform_indices = @transform_8, window_bounds = array<i64: 2, 32, 32>}, {pipeline_mode = #tpu.pipeline_mode<synchronous>, transform_indices = @transform_9, window_bounds = array<i64: 2, 1, 32>}, {pipeline_mode = #tpu.pipeline_mode<synchronous>, transform_indices = @transform_10, window_bounds = array<i64: 2, 32, 64>}, {pipeline_mode = #tpu.pipeline_mode<synchronous>, transform_indices = @transform_11, window_bounds = array<i64: 2, 1, 64>}, {pipeline_mode = #tpu.pipeline_mode<synchronous>, transform_indices = @transform_12, window_bounds = array<i64: 2, 64, 32>}, {pipeline_mode = #tpu.pipeline_mode<synchronous>, transform_indices = @transform_13, window_bounds = array<i64: 2, 1, 32>}, {pipeline_mode = #tpu.pipeline_mode<synchronous>, transform_indices = @transform_14, window_bounds = array<i64: 2, 1, 32>}, {pipeline_mode = #tpu.pipeline_mode<synchronous>, transform_indices = @transform_15, window_bounds = array<i64: 2, 1, 32>}, {pipeline_mode = #tpu.pipeline_mode<synchronous>, transform_indices = @transform_16, window_bounds = array<i64: 2, 1, 32>}, {pipeline_mode = #tpu.pipeline_mode<synchronous>, transform_indices = @transform_17, window_bounds = array<i64: 2, 1, 32>}, {pipeline_mode = #tpu.pipeline_mode<synchronous>, transform_indices = @transform_18, window_bounds = array<i64: 1, 32>}, {pipeline_mode = #tpu.pipeline_mode<synchronous>, transform_indices = @transform_19, window_bounds = array<i64: 1, 32>}, {transform_indices = @transform_20, window_bounds = array<i64: 1, 8, 32>}]} {
    %c0 = arith.constant 0 : index
    %c0_0 = arith.constant 0 : index
    %c0_1 = arith.constant 0 : index
    %0 = vector.load %arg1[%c0, %c0_0, %c0_1] : memref<1x8x32xf32, #tpu.memory_space<vmem>>, vector<1x8x32xf32>
    %1 = vector.shape_cast %0 : vector<1x8x32xf32> to vector<8x32xf32>
    %c0_2 = arith.constant 0 : index
    %c0_3 = arith.constant 0 : index
    %c0_4 = arith.constant 0 : index
    %2 = vector.load %arg2[%c0_2, %c0_3, %c0_4] : memref<1x8x8xf32, #tpu.memory_space<vmem>>, vector<1x8x8xf32>
    %3 = vector.shape_cast %2 : vector<1x8x8xf32> to vector<8x8xf32>
    %c0_5 = arith.constant 0 : index
    %c0_6 = arith.constant 0 : index
    %c0_7 = arith.constant 0 : index
    %4 = vector.load %arg15[%c0_5, %c0_6, %c0_7] : memref<2x1x32xf32, #tpu.memory_space<vmem>>, vector<1x1x32xf32>
    %5 = vector.shape_cast %4 : vector<1x1x32xf32> to vector<1x32xf32>
    %c0_8 = arith.constant 0 : index
    %c0_9 = arith.constant 0 : index
    %c0_10 = arith.constant 0 : index
    %6 = vector.load %arg16[%c0_8, %c0_9, %c0_10] : memref<2x1x32xf32, #tpu.memory_space<vmem>>, vector<1x1x32xf32>
    %7 = vector.shape_cast %6 : vector<1x1x32xf32> to vector<1x32xf32>
    %cst = arith.constant dense<0.000000e+00> : vector<8xf32>
    %8 = vector.multi_reduction <add>, %1, %cst [1] : vector<8x32xf32> to vector<8xf32>
    %9 = vector.shape_cast %8 : vector<8xf32> to vector<8x1xf32>
    %cst_11 = arith.constant 3.200000e+01 : f32
    %10 = vector.broadcast %cst_11 : f32 to vector<8x1xf32>
    %11 = arith.divf %9, %10 : vector<8x1xf32>
    %12 = vector.broadcast %11 : vector<8x1xf32> to vector<8x32xf32>
    %13 = arith.subf %1, %12 : vector<8x32xf32>
    %14 = arith.mulf %13, %13 : vector<8x32xf32>
    %cst_12 = arith.constant dense<0.000000e+00> : vector<8xf32>
    %15 = vector.multi_reduction <add>, %14, %cst_12 [1] : vector<8x32xf32> to vector<8xf32>
    %16 = vector.shape_cast %15 : vector<8xf32> to vector<8x1xf32>
    %cst_13 = arith.constant 3.200000e+01 : f32
    %17 = vector.broadcast %cst_13 : f32 to vector<8x1xf32>
    %18 = arith.divf %16, %17 : vector<8x1xf32>
    %cst_14 = arith.constant 9.99999997E-7 : f32
    %19 = vector.broadcast %cst_14 : f32 to vector<8x1xf32>
    %20 = arith.addf %18, %19 : vector<8x1xf32>
    %21 = math.rsqrt %20 : vector<8x1xf32>
    %22 = vector.broadcast %21 : vector<8x1xf32> to vector<8x32xf32>
    %23 = arith.mulf %13, %22 : vector<8x32xf32>
    %24 = vector.broadcast %5 : vector<1x32xf32> to vector<8x32xf32>
    %25 = arith.mulf %23, %24 : vector<8x32xf32>
    %26 = vector.broadcast %7 : vector<1x32xf32> to vector<8x32xf32>
    %27 = arith.addf %25, %26 : vector<8x32xf32>
    %c0_15 = arith.constant 0 : index
    %c0_16 = arith.constant 0 : index
    %c0_17 = arith.constant 0 : index
    %28 = vector.load %arg3[%c0_15, %c0_16, %c0_17] : memref<2x32x32xf32, #tpu.memory_space<vmem>>, vector<1x32x32xf32>
    %29 = vector.shape_cast %28 : vector<1x32x32xf32> to vector<32x32xf32>
    %c0_18 = arith.constant 0 : index
    %c0_19 = arith.constant 0 : index
    %c0_20 = arith.constant 0 : index
    %30 = vector.load %arg4[%c0_18, %c0_19, %c0_20] : memref<2x1x32xf32, #tpu.memory_space<vmem>>, vector<1x1x32xf32>
    %31 = vector.shape_cast %30 : vector<1x1x32xf32> to vector<1x32xf32>
    %c0_21 = arith.constant 0 : index
    %c0_22 = arith.constant 0 : index
    %c0_23 = arith.constant 0 : index
    %32 = vector.load %arg5[%c0_21, %c0_22, %c0_23] : memref<2x32x32xf32, #tpu.memory_space<vmem>>, vector<1x32x32xf32>
    %33 = vector.shape_cast %32 : vector<1x32x32xf32> to vector<32x32xf32>
    %c0_24 = arith.constant 0 : index
    %c0_25 = arith.constant 0 : index
    %c0_26 = arith.constant 0 : index
    %34 = vector.load %arg6[%c0_24, %c0_25, %c0_26] : memref<2x1x32xf32, #tpu.memory_space<vmem>>, vector<1x1x32xf32>
    %35 = vector.shape_cast %34 : vector<1x1x32xf32> to vector<1x32xf32>
    %c0_27 = arith.constant 0 : index
    %c0_28 = arith.constant 0 : index
    %c0_29 = arith.constant 0 : index
    %36 = vector.load %arg7[%c0_27, %c0_28, %c0_29] : memref<2x32x32xf32, #tpu.memory_space<vmem>>, vector<1x32x32xf32>
    %37 = vector.shape_cast %36 : vector<1x32x32xf32> to vector<32x32xf32>
    %c0_30 = arith.constant 0 : index
    %c0_31 = arith.constant 0 : index
    %c0_32 = arith.constant 0 : index
    %38 = vector.load %arg8[%c0_30, %c0_31, %c0_32] : memref<2x1x32xf32, #tpu.memory_space<vmem>>, vector<1x1x32xf32>
    %39 = vector.shape_cast %38 : vector<1x1x32xf32> to vector<1x32xf32>
    %c0_33 = arith.constant 0 : index
    %c0_34 = arith.constant 0 : index
    %c0_35 = arith.constant 0 : index
    %40 = vector.load %arg9[%c0_33, %c0_34, %c0_35] : memref<2x32x32xf32, #tpu.memory_space<vmem>>, vector<1x32x32xf32>
    %41 = vector.shape_cast %40 : vector<1x32x32xf32> to vector<32x32xf32>
    %c0_36 = arith.constant 0 : index
    %c0_37 = arith.constant 0 : index
    %c0_38 = arith.constant 0 : index
    %42 = vector.load %arg10[%c0_36, %c0_37, %c0_38] : memref<2x1x32xf32, #tpu.memory_space<vmem>>, vector<1x1x32xf32>
    %43 = vector.shape_cast %42 : vector<1x1x32xf32> to vector<1x32xf32>
    %cst_39 = arith.constant dense<0.000000e+00> : vector<8x32xf32>
    %44 = tpu.matmul %27, %29, %cst_39 {dimension_numbers = #tpu.dot_dimension_numbers<[1], [0], [0], [1], [0, 0, 1, 1], [], []>} : vector<8x32xf32>, vector<32x32xf32>, vector<8x32xf32> -> vector<8x32xf32>
    %45 = vector.broadcast %31 : vector<1x32xf32> to vector<8x32xf32>
    %46 = arith.addf %44, %45 : vector<8x32xf32>
    %cst_40 = arith.constant dense<0.000000e+00> : vector<8x32xf32>
    %47 = tpu.matmul %27, %33, %cst_40 {dimension_numbers = #tpu.dot_dimension_numbers<[1], [0], [0], [1], [0, 0, 1, 1], [], []>} : vector<8x32xf32>, vector<32x32xf32>, vector<8x32xf32> -> vector<8x32xf32>
    %48 = vector.broadcast %35 : vector<1x32xf32> to vector<8x32xf32>
    %49 = arith.addf %47, %48 : vector<8x32xf32>
    %cst_41 = arith.constant dense<0.000000e+00> : vector<8x32xf32>
    %50 = tpu.matmul %27, %37, %cst_41 {dimension_numbers = #tpu.dot_dimension_numbers<[1], [0], [0], [1], [0, 0, 1, 1], [], []>} : vector<8x32xf32>, vector<32x32xf32>, vector<8x32xf32> -> vector<8x32xf32>
    %51 = vector.broadcast %39 : vector<1x32xf32> to vector<8x32xf32>
    %52 = arith.addf %50, %51 : vector<8x32xf32>
    %53 = vector.extract_strided_slice %46 {offsets = [0, 0], sizes = [8, 8], strides = [1, 1]} : vector<8x32xf32> to vector<8x8xf32>
    %54 = vector.extract_strided_slice %49 {offsets = [0, 0], sizes = [8, 8], strides = [1, 1]} : vector<8x32xf32> to vector<8x8xf32>
    %55 = vector.extract_strided_slice %52 {offsets = [0, 0], sizes = [8, 8], strides = [1, 1]} : vector<8x32xf32> to vector<8x8xf32>
    %cst_42 = arith.constant dense<0.000000e+00> : vector<8x8xf32>
    %56 = tpu.matmul %53, %54, %cst_42 {dimension_numbers = #tpu.dot_dimension_numbers<[1], [1], [0], [0], [0, 0, 1, 0], [], []>} : vector<8x8xf32>, vector<8x8xf32>, vector<8x8xf32> -> vector<8x8xf32>
    %cst_43 = arith.constant 0.353553385 : f32
    %57 = vector.broadcast %cst_43 : f32 to vector<8x8xf32>
    %58 = arith.mulf %56, %57 : vector<8x8xf32>
    %59 = arith.addf %58, %3 : vector<8x8xf32>
    %cst_44 = arith.constant dense<0xFF800000> : vector<8xf32>
    %60 = vector.multi_reduction <maximumf>, %59, %cst_44 [1] : vector<8x8xf32> to vector<8xf32>
    %61 = vector.shape_cast %60 : vector<8xf32> to vector<8x1xf32>
    %62 = vector.broadcast %61 : vector<8x1xf32> to vector<8x8xf32>
    %63 = arith.subf %59, %62 : vector<8x8xf32>
    %64 = math.exp %63 : vector<8x8xf32>
    %cst_45 = arith.constant dense<0.000000e+00> : vector<8xf32>
    %65 = vector.multi_reduction <add>, %64, %cst_45 [1] : vector<8x8xf32> to vector<8xf32>
    %66 = vector.shape_cast %65 : vector<8xf32> to vector<8x1xf32>
    %67 = tpu.reciprocal %66 {approx = true} : vector<8x1xf32> -> vector<8x1xf32>
    %68 = vector.broadcast %67 : vector<8x1xf32> to vector<8x8xf32>
    %69 = arith.mulf %64, %68 : vector<8x8xf32>
    %cst_46 = arith.constant dense<0.000000e+00> : vector<8x8xf32>
    %70 = tpu.matmul %69, %55, %cst_46 {dimension_numbers = #tpu.dot_dimension_numbers<[1], [0], [0], [1], [0, 0, 1, 1], [], []>} : vector<8x8xf32>, vector<8x8xf32>, vector<8x8xf32> -> vector<8x8xf32>
    %71 = vector.extract_strided_slice %41 {offsets = [0, 0], sizes = [8, 32], strides = [1, 1]} : vector<32x32xf32> to vector<8x32xf32>
    %cst_47 = arith.constant dense<0.000000e+00> : vector<8x32xf32>
    %72 = tpu.matmul %70, %71, %cst_47 {dimension_numbers = #tpu.dot_dimension_numbers<[1], [0], [0], [1], [0, 0, 1, 1], [], []>} : vector<8x8xf32>, vector<8x32xf32>, vector<8x32xf32> -> vector<8x32xf32>
    %73 = vector.extract_strided_slice %46 {offsets = [0, 8], sizes = [8, 8], strides = [1, 1]} : vector<8x32xf32> to vector<8x8xf32>
    %74 = vector.extract_strided_slice %49 {offsets = [0, 8], sizes = [8, 8], strides = [1, 1]} : vector<8x32xf32> to vector<8x8xf32>
    %75 = vector.extract_strided_slice %52 {offsets = [0, 8], sizes = [8, 8], strides = [1, 1]} : vector<8x32xf32> to vector<8x8xf32>
    %cst_48 = arith.constant dense<0.000000e+00> : vector<8x8xf32>
    %76 = tpu.matmul %73, %74, %cst_48 {dimension_numbers = #tpu.dot_dimension_numbers<[1], [1], [0], [0], [0, 0, 1, 0], [], []>} : vector<8x8xf32>, vector<8x8xf32>, vector<8x8xf32> -> vector<8x8xf32>
    %cst_49 = arith.constant 0.353553385 : f32
    %77 = vector.broadcast %cst_49 : f32 to vector<8x8xf32>
    %78 = arith.mulf %76, %77 : vector<8x8xf32>
    %79 = arith.addf %78, %3 : vector<8x8xf32>
    %cst_50 = arith.constant dense<0xFF800000> : vector<8xf32>
    %80 = vector.multi_reduction <maximumf>, %79, %cst_50 [1] : vector<8x8xf32> to vector<8xf32>
    %81 = vector.shape_cast %80 : vector<8xf32> to vector<8x1xf32>
    %82 = vector.broadcast %81 : vector<8x1xf32> to vector<8x8xf32>
    %83 = arith.subf %79, %82 : vector<8x8xf32>
    %84 = math.exp %83 : vector<8x8xf32>
    %cst_51 = arith.constant dense<0.000000e+00> : vector<8xf32>
    %85 = vector.multi_reduction <add>, %84, %cst_51 [1] : vector<8x8xf32> to vector<8xf32>
    %86 = vector.shape_cast %85 : vector<8xf32> to vector<8x1xf32>
    %87 = tpu.reciprocal %86 {approx = true} : vector<8x1xf32> -> vector<8x1xf32>
    %88 = vector.broadcast %87 : vector<8x1xf32> to vector<8x8xf32>
    %89 = arith.mulf %84, %88 : vector<8x8xf32>
    %cst_52 = arith.constant dense<0.000000e+00> : vector<8x8xf32>
    %90 = tpu.matmul %89, %75, %cst_52 {dimension_numbers = #tpu.dot_dimension_numbers<[1], [0], [0], [1], [0, 0, 1, 1], [], []>} : vector<8x8xf32>, vector<8x8xf32>, vector<8x8xf32> -> vector<8x8xf32>
    %91 = vector.extract_strided_slice %41 {offsets = [8, 0], sizes = [8, 32], strides = [1, 1]} : vector<32x32xf32> to vector<8x32xf32>
    %cst_53 = arith.constant dense<0.000000e+00> : vector<8x32xf32>
    %92 = tpu.matmul %90, %91, %cst_53 {dimension_numbers = #tpu.dot_dimension_numbers<[1], [0], [0], [1], [0, 0, 1, 1], [], []>} : vector<8x8xf32>, vector<8x32xf32>, vector<8x32xf32> -> vector<8x32xf32>
    %93 = arith.addf %72, %92 : vector<8x32xf32>
    %94 = vector.extract_strided_slice %46 {offsets = [0, 16], sizes = [8, 8], strides = [1, 1]} : vector<8x32xf32> to vector<8x8xf32>
    %95 = vector.extract_strided_slice %49 {offsets = [0, 16], sizes = [8, 8], strides = [1, 1]} : vector<8x32xf32> to vector<8x8xf32>
    %96 = vector.extract_strided_slice %52 {offsets = [0, 16], sizes = [8, 8], strides = [1, 1]} : vector<8x32xf32> to vector<8x8xf32>
    %cst_54 = arith.constant dense<0.000000e+00> : vector<8x8xf32>
    %97 = tpu.matmul %94, %95, %cst_54 {dimension_numbers = #tpu.dot_dimension_numbers<[1], [1], [0], [0], [0, 0, 1, 0], [], []>} : vector<8x8xf32>, vector<8x8xf32>, vector<8x8xf32> -> vector<8x8xf32>
    %cst_55 = arith.constant 0.353553385 : f32
    %98 = vector.broadcast %cst_55 : f32 to vector<8x8xf32>
    %99 = arith.mulf %97, %98 : vector<8x8xf32>
    %100 = arith.addf %99, %3 : vector<8x8xf32>
    %cst_56 = arith.constant dense<0xFF800000> : vector<8xf32>
    %101 = vector.multi_reduction <maximumf>, %100, %cst_56 [1] : vector<8x8xf32> to vector<8xf32>
    %102 = vector.shape_cast %101 : vector<8xf32> to vector<8x1xf32>
    %103 = vector.broadcast %102 : vector<8x1xf32> to vector<8x8xf32>
    %104 = arith.subf %100, %103 : vector<8x8xf32>
    %105 = math.exp %104 : vector<8x8xf32>
    %cst_57 = arith.constant dense<0.000000e+00> : vector<8xf32>
    %106 = vector.multi_reduction <add>, %105, %cst_57 [1] : vector<8x8xf32> to vector<8xf32>
    %107 = vector.shape_cast %106 : vector<8xf32> to vector<8x1xf32>
    %108 = tpu.reciprocal %107 {approx = true} : vector<8x1xf32> -> vector<8x1xf32>
    %109 = vector.broadcast %108 : vector<8x1xf32> to vector<8x8xf32>
    %110 = arith.mulf %105, %109 : vector<8x8xf32>
    %cst_58 = arith.constant dense<0.000000e+00> : vector<8x8xf32>
    %111 = tpu.matmul %110, %96, %cst_58 {dimension_numbers = #tpu.dot_dimension_numbers<[1], [0], [0], [1], [0, 0, 1, 1], [], []>} : vector<8x8xf32>, vector<8x8xf32>, vector<8x8xf32> -> vector<8x8xf32>
    %112 = vector.extract_strided_slice %41 {offsets = [16, 0], sizes = [8, 32], strides = [1, 1]} : vector<32x32xf32> to vector<8x32xf32>
    %cst_59 = arith.constant dense<0.000000e+00> : vector<8x32xf32>
    %113 = tpu.matmul %111, %112, %cst_59 {dimension_numbers = #tpu.dot_dimension_numbers<[1], [0], [0], [1], [0, 0, 1, 1], [], []>} : vector<8x8xf32>, vector<8x32xf32>, vector<8x32xf32> -> vector<8x32xf32>
    %114 = arith.addf %93, %113 : vector<8x32xf32>
    %115 = vector.extract_strided_slice %46 {offsets = [0, 24], sizes = [8, 8], strides = [1, 1]} : vector<8x32xf32> to vector<8x8xf32>
    %116 = vector.extract_strided_slice %49 {offsets = [0, 24], sizes = [8, 8], strides = [1, 1]} : vector<8x32xf32> to vector<8x8xf32>
    %117 = vector.extract_strided_slice %52 {offsets = [0, 24], sizes = [8, 8], strides = [1, 1]} : vector<8x32xf32> to vector<8x8xf32>
    %cst_60 = arith.constant dense<0.000000e+00> : vector<8x8xf32>
    %118 = tpu.matmul %115, %116, %cst_60 {dimension_numbers = #tpu.dot_dimension_numbers<[1], [1], [0], [0], [0, 0, 1, 0], [], []>} : vector<8x8xf32>, vector<8x8xf32>, vector<8x8xf32> -> vector<8x8xf32>
    %cst_61 = arith.constant 0.353553385 : f32
    %119 = vector.broadcast %cst_61 : f32 to vector<8x8xf32>
    %120 = arith.mulf %118, %119 : vector<8x8xf32>
    %121 = arith.addf %120, %3 : vector<8x8xf32>
    %cst_62 = arith.constant dense<0xFF800000> : vector<8xf32>
    %122 = vector.multi_reduction <maximumf>, %121, %cst_62 [1] : vector<8x8xf32> to vector<8xf32>
    %123 = vector.shape_cast %122 : vector<8xf32> to vector<8x1xf32>
    %124 = vector.broadcast %123 : vector<8x1xf32> to vector<8x8xf32>
    %125 = arith.subf %121, %124 : vector<8x8xf32>
    %126 = math.exp %125 : vector<8x8xf32>
    %cst_63 = arith.constant dense<0.000000e+00> : vector<8xf32>
    %127 = vector.multi_reduction <add>, %126, %cst_63 [1] : vector<8x8xf32> to vector<8xf32>
    %128 = vector.shape_cast %127 : vector<8xf32> to vector<8x1xf32>
    %129 = tpu.reciprocal %128 {approx = true} : vector<8x1xf32> -> vector<8x1xf32>
    %130 = vector.broadcast %129 : vector<8x1xf32> to vector<8x8xf32>
    %131 = arith.mulf %126, %130 : vector<8x8xf32>
    %cst_64 = arith.constant dense<0.000000e+00> : vector<8x8xf32>
    %132 = tpu.matmul %131, %117, %cst_64 {dimension_numbers = #tpu.dot_dimension_numbers<[1], [0], [0], [1], [0, 0, 1, 1], [], []>} : vector<8x8xf32>, vector<8x8xf32>, vector<8x8xf32> -> vector<8x8xf32>
    %133 = vector.extract_strided_slice %41 {offsets = [24, 0], sizes = [8, 32], strides = [1, 1]} : vector<32x32xf32> to vector<8x32xf32>
    %cst_65 = arith.constant dense<0.000000e+00> : vector<8x32xf32>
    %134 = tpu.matmul %132, %133, %cst_65 {dimension_numbers = #tpu.dot_dimension_numbers<[1], [0], [0], [1], [0, 0, 1, 1], [], []>} : vector<8x8xf32>, vector<8x32xf32>, vector<8x32xf32> -> vector<8x32xf32>
    %135 = arith.addf %114, %134 : vector<8x32xf32>
    %136 = vector.broadcast %43 : vector<1x32xf32> to vector<8x32xf32>
    %137 = arith.addf %135, %136 : vector<8x32xf32>
    %138 = arith.addf %1, %137 : vector<8x32xf32>
    %c0_66 = arith.constant 0 : index
    %c0_67 = arith.constant 0 : index
    %c0_68 = arith.constant 0 : index
    %139 = vector.load %arg17[%c0_66, %c0_67, %c0_68] : memref<2x1x32xf32, #tpu.memory_space<vmem>>, vector<1x1x32xf32>
    %140 = vector.shape_cast %139 : vector<1x1x32xf32> to vector<1x32xf32>
    %c0_69 = arith.constant 0 : index
    %c0_70 = arith.constant 0 : index
    %c0_71 = arith.constant 0 : index
    %141 = vector.load %arg18[%c0_69, %c0_70, %c0_71] : memref<2x1x32xf32, #tpu.memory_space<vmem>>, vector<1x1x32xf32>
    %142 = vector.shape_cast %141 : vector<1x1x32xf32> to vector<1x32xf32>
    %cst_72 = arith.constant dense<0.000000e+00> : vector<8xf32>
    %143 = vector.multi_reduction <add>, %138, %cst_72 [1] : vector<8x32xf32> to vector<8xf32>
    %144 = vector.shape_cast %143 : vector<8xf32> to vector<8x1xf32>
    %cst_73 = arith.constant 3.200000e+01 : f32
    %145 = vector.broadcast %cst_73 : f32 to vector<8x1xf32>
    %146 = arith.divf %144, %145 : vector<8x1xf32>
    %147 = vector.broadcast %146 : vector<8x1xf32> to vector<8x32xf32>
    %148 = arith.subf %138, %147 : vector<8x32xf32>
    %149 = arith.mulf %148, %148 : vector<8x32xf32>
    %cst_74 = arith.constant dense<0.000000e+00> : vector<8xf32>
    %150 = vector.multi_reduction <add>, %149, %cst_74 [1] : vector<8x32xf32> to vector<8xf32>
    %151 = vector.shape_cast %150 : vector<8xf32> to vector<8x1xf32>
    %cst_75 = arith.constant 3.200000e+01 : f32
    %152 = vector.broadcast %cst_75 : f32 to vector<8x1xf32>
    %153 = arith.divf %151, %152 : vector<8x1xf32>
    %cst_76 = arith.constant 9.99999997E-7 : f32
    %154 = vector.broadcast %cst_76 : f32 to vector<8x1xf32>
    %155 = arith.addf %153, %154 : vector<8x1xf32>
    %156 = math.rsqrt %155 : vector<8x1xf32>
    %157 = vector.broadcast %156 : vector<8x1xf32> to vector<8x32xf32>
    %158 = arith.mulf %148, %157 : vector<8x32xf32>
    %159 = vector.broadcast %140 : vector<1x32xf32> to vector<8x32xf32>
    %160 = arith.mulf %158, %159 : vector<8x32xf32>
    %161 = vector.broadcast %142 : vector<1x32xf32> to vector<8x32xf32>
    %162 = arith.addf %160, %161 : vector<8x32xf32>
    %c0_77 = arith.constant 0 : index
    %c0_78 = arith.constant 0 : index
    %c0_79 = arith.constant 0 : index
    %163 = vector.load %arg11[%c0_77, %c0_78, %c0_79] : memref<2x32x64xf32, #tpu.memory_space<vmem>>, vector<1x32x64xf32>
    %164 = vector.shape_cast %163 : vector<1x32x64xf32> to vector<32x64xf32>
    %c0_80 = arith.constant 0 : index
    %c0_81 = arith.constant 0 : index
    %c0_82 = arith.constant 0 : index
    %165 = vector.load %arg12[%c0_80, %c0_81, %c0_82] : memref<2x1x64xf32, #tpu.memory_space<vmem>>, vector<1x1x64xf32>
    %166 = vector.shape_cast %165 : vector<1x1x64xf32> to vector<1x64xf32>
    %c0_83 = arith.constant 0 : index
    %c0_84 = arith.constant 0 : index
    %c0_85 = arith.constant 0 : index
    %167 = vector.load %arg13[%c0_83, %c0_84, %c0_85] : memref<2x64x32xf32, #tpu.memory_space<vmem>>, vector<1x64x32xf32>
    %168 = vector.shape_cast %167 : vector<1x64x32xf32> to vector<64x32xf32>
    %c0_86 = arith.constant 0 : index
    %c0_87 = arith.constant 0 : index
    %c0_88 = arith.constant 0 : index
    %169 = vector.load %arg14[%c0_86, %c0_87, %c0_88] : memref<2x1x32xf32, #tpu.memory_space<vmem>>, vector<1x1x32xf32>
    %170 = vector.shape_cast %169 : vector<1x1x32xf32> to vector<1x32xf32>
    %cst_89 = arith.constant dense<0.000000e+00> : vector<8x64xf32>
    %171 = tpu.matmul %162, %164, %cst_89 {dimension_numbers = #tpu.dot_dimension_numbers<[1], [0], [0], [1], [0, 0, 1, 1], [], []>} : vector<8x32xf32>, vector<32x64xf32>, vector<8x64xf32> -> vector<8x64xf32>
    %172 = vector.broadcast %166 : vector<1x64xf32> to vector<8x64xf32>
    %173 = arith.addf %171, %172 : vector<8x64xf32>
    %cst_90 = arith.constant 0.000000e+00 : f32
    %174 = vector.broadcast %cst_90 : f32 to vector<8x64xf32>
    %175 = arith.maximumf %173, %174 : vector<8x64xf32>
    %cst_91 = arith.constant dense<0.000000e+00> : vector<8x32xf32>
    %176 = tpu.matmul %175, %168, %cst_91 {dimension_numbers = #tpu.dot_dimension_numbers<[1], [0], [0], [1], [0, 0, 1, 1], [], []>} : vector<8x64xf32>, vector<64x32xf32>, vector<8x32xf32> -> vector<8x32xf32>
    %177 = vector.broadcast %170 : vector<1x32xf32> to vector<8x32xf32>
    %178 = arith.addf %176, %177 : vector<8x32xf32>
    %179 = arith.addf %138, %178 : vector<8x32xf32>
    %c1 = arith.constant 1 : index
    %c0_92 = arith.constant 0 : index
    %c0_93 = arith.constant 0 : index
    %180 = vector.load %arg15[%c1, %c0_92, %c0_93] : memref<2x1x32xf32, #tpu.memory_space<vmem>>, vector<1x1x32xf32>
    %181 = vector.shape_cast %180 : vector<1x1x32xf32> to vector<1x32xf32>
    %c1_94 = arith.constant 1 : index
    %c0_95 = arith.constant 0 : index
    %c0_96 = arith.constant 0 : index
    %182 = vector.load %arg16[%c1_94, %c0_95, %c0_96] : memref<2x1x32xf32, #tpu.memory_space<vmem>>, vector<1x1x32xf32>
    %183 = vector.shape_cast %182 : vector<1x1x32xf32> to vector<1x32xf32>
    %cst_97 = arith.constant dense<0.000000e+00> : vector<8xf32>
    %184 = vector.multi_reduction <add>, %179, %cst_97 [1] : vector<8x32xf32> to vector<8xf32>
    %185 = vector.shape_cast %184 : vector<8xf32> to vector<8x1xf32>
    %cst_98 = arith.constant 3.200000e+01 : f32
    %186 = vector.broadcast %cst_98 : f32 to vector<8x1xf32>
    %187 = arith.divf %185, %186 : vector<8x1xf32>
    %188 = vector.broadcast %187 : vector<8x1xf32> to vector<8x32xf32>
    %189 = arith.subf %179, %188 : vector<8x32xf32>
    %190 = arith.mulf %189, %189 : vector<8x32xf32>
    %cst_99 = arith.constant dense<0.000000e+00> : vector<8xf32>
    %191 = vector.multi_reduction <add>, %190, %cst_99 [1] : vector<8x32xf32> to vector<8xf32>
    %192 = vector.shape_cast %191 : vector<8xf32> to vector<8x1xf32>
    %cst_100 = arith.constant 3.200000e+01 : f32
    %193 = vector.broadcast %cst_100 : f32 to vector<8x1xf32>
    %194 = arith.divf %192, %193 : vector<8x1xf32>
    %cst_101 = arith.constant 9.99999997E-7 : f32
    %195 = vector.broadcast %cst_101 : f32 to vector<8x1xf32>
    %196 = arith.addf %194, %195 : vector<8x1xf32>
    %197 = math.rsqrt %196 : vector<8x1xf32>
    %198 = vector.broadcast %197 : vector<8x1xf32> to vector<8x32xf32>
    %199 = arith.mulf %189, %198 : vector<8x32xf32>
    %200 = vector.broadcast %181 : vector<1x32xf32> to vector<8x32xf32>
    %201 = arith.mulf %199, %200 : vector<8x32xf32>
    %202 = vector.broadcast %183 : vector<1x32xf32> to vector<8x32xf32>
    %203 = arith.addf %201, %202 : vector<8x32xf32>
    %c1_102 = arith.constant 1 : index
    %c0_103 = arith.constant 0 : index
    %c0_104 = arith.constant 0 : index
    %204 = vector.load %arg3[%c1_102, %c0_103, %c0_104] : memref<2x32x32xf32, #tpu.memory_space<vmem>>, vector<1x32x32xf32>
    %205 = vector.shape_cast %204 : vector<1x32x32xf32> to vector<32x32xf32>
    %c1_105 = arith.constant 1 : index
    %c0_106 = arith.constant 0 : index
    %c0_107 = arith.constant 0 : index
    %206 = vector.load %arg4[%c1_105, %c0_106, %c0_107] : memref<2x1x32xf32, #tpu.memory_space<vmem>>, vector<1x1x32xf32>
    %207 = vector.shape_cast %206 : vector<1x1x32xf32> to vector<1x32xf32>
    %c1_108 = arith.constant 1 : index
    %c0_109 = arith.constant 0 : index
    %c0_110 = arith.constant 0 : index
    %208 = vector.load %arg5[%c1_108, %c0_109, %c0_110] : memref<2x32x32xf32, #tpu.memory_space<vmem>>, vector<1x32x32xf32>
    %209 = vector.shape_cast %208 : vector<1x32x32xf32> to vector<32x32xf32>
    %c1_111 = arith.constant 1 : index
    %c0_112 = arith.constant 0 : index
    %c0_113 = arith.constant 0 : index
    %210 = vector.load %arg6[%c1_111, %c0_112, %c0_113] : memref<2x1x32xf32, #tpu.memory_space<vmem>>, vector<1x1x32xf32>
    %211 = vector.shape_cast %210 : vector<1x1x32xf32> to vector<1x32xf32>
    %c1_114 = arith.constant 1 : index
    %c0_115 = arith.constant 0 : index
    %c0_116 = arith.constant 0 : index
    %212 = vector.load %arg7[%c1_114, %c0_115, %c0_116] : memref<2x32x32xf32, #tpu.memory_space<vmem>>, vector<1x32x32xf32>
    %213 = vector.shape_cast %212 : vector<1x32x32xf32> to vector<32x32xf32>
    %c1_117 = arith.constant 1 : index
    %c0_118 = arith.constant 0 : index
    %c0_119 = arith.constant 0 : index
    %214 = vector.load %arg8[%c1_117, %c0_118, %c0_119] : memref<2x1x32xf32, #tpu.memory_space<vmem>>, vector<1x1x32xf32>
    %215 = vector.shape_cast %214 : vector<1x1x32xf32> to vector<1x32xf32>
    %c1_120 = arith.constant 1 : index
    %c0_121 = arith.constant 0 : index
    %c0_122 = arith.constant 0 : index
    %216 = vector.load %arg9[%c1_120, %c0_121, %c0_122] : memref<2x32x32xf32, #tpu.memory_space<vmem>>, vector<1x32x32xf32>
    %217 = vector.shape_cast %216 : vector<1x32x32xf32> to vector<32x32xf32>
    %c1_123 = arith.constant 1 : index
    %c0_124 = arith.constant 0 : index
    %c0_125 = arith.constant 0 : index
    %218 = vector.load %arg10[%c1_123, %c0_124, %c0_125] : memref<2x1x32xf32, #tpu.memory_space<vmem>>, vector<1x1x32xf32>
    %219 = vector.shape_cast %218 : vector<1x1x32xf32> to vector<1x32xf32>
    %cst_126 = arith.constant dense<0.000000e+00> : vector<8x32xf32>
    %220 = tpu.matmul %203, %205, %cst_126 {dimension_numbers = #tpu.dot_dimension_numbers<[1], [0], [0], [1], [0, 0, 1, 1], [], []>} : vector<8x32xf32>, vector<32x32xf32>, vector<8x32xf32> -> vector<8x32xf32>
    %221 = vector.broadcast %207 : vector<1x32xf32> to vector<8x32xf32>
    %222 = arith.addf %220, %221 : vector<8x32xf32>
    %cst_127 = arith.constant dense<0.000000e+00> : vector<8x32xf32>
    %223 = tpu.matmul %203, %209, %cst_127 {dimension_numbers = #tpu.dot_dimension_numbers<[1], [0], [0], [1], [0, 0, 1, 1], [], []>} : vector<8x32xf32>, vector<32x32xf32>, vector<8x32xf32> -> vector<8x32xf32>
    %224 = vector.broadcast %211 : vector<1x32xf32> to vector<8x32xf32>
    %225 = arith.addf %223, %224 : vector<8x32xf32>
    %cst_128 = arith.constant dense<0.000000e+00> : vector<8x32xf32>
    %226 = tpu.matmul %203, %213, %cst_128 {dimension_numbers = #tpu.dot_dimension_numbers<[1], [0], [0], [1], [0, 0, 1, 1], [], []>} : vector<8x32xf32>, vector<32x32xf32>, vector<8x32xf32> -> vector<8x32xf32>
    %227 = vector.broadcast %215 : vector<1x32xf32> to vector<8x32xf32>
    %228 = arith.addf %226, %227 : vector<8x32xf32>
    %229 = vector.extract_strided_slice %222 {offsets = [0, 0], sizes = [8, 8], strides = [1, 1]} : vector<8x32xf32> to vector<8x8xf32>
    %230 = vector.extract_strided_slice %225 {offsets = [0, 0], sizes = [8, 8], strides = [1, 1]} : vector<8x32xf32> to vector<8x8xf32>
    %231 = vector.extract_strided_slice %228 {offsets = [0, 0], sizes = [8, 8], strides = [1, 1]} : vector<8x32xf32> to vector<8x8xf32>
    %cst_129 = arith.constant dense<0.000000e+00> : vector<8x8xf32>
    %232 = tpu.matmul %229, %230, %cst_129 {dimension_numbers = #tpu.dot_dimension_numbers<[1], [1], [0], [0], [0, 0, 1, 0], [], []>} : vector<8x8xf32>, vector<8x8xf32>, vector<8x8xf32> -> vector<8x8xf32>
    %cst_130 = arith.constant 0.353553385 : f32
    %233 = vector.broadcast %cst_130 : f32 to vector<8x8xf32>
    %234 = arith.mulf %232, %233 : vector<8x8xf32>
    %235 = arith.addf %234, %3 : vector<8x8xf32>
    %cst_131 = arith.constant dense<0xFF800000> : vector<8xf32>
    %236 = vector.multi_reduction <maximumf>, %235, %cst_131 [1] : vector<8x8xf32> to vector<8xf32>
    %237 = vector.shape_cast %236 : vector<8xf32> to vector<8x1xf32>
    %238 = vector.broadcast %237 : vector<8x1xf32> to vector<8x8xf32>
    %239 = arith.subf %235, %238 : vector<8x8xf32>
    %240 = math.exp %239 : vector<8x8xf32>
    %cst_132 = arith.constant dense<0.000000e+00> : vector<8xf32>
    %241 = vector.multi_reduction <add>, %240, %cst_132 [1] : vector<8x8xf32> to vector<8xf32>
    %242 = vector.shape_cast %241 : vector<8xf32> to vector<8x1xf32>
    %243 = tpu.reciprocal %242 {approx = true} : vector<8x1xf32> -> vector<8x1xf32>
    %244 = vector.broadcast %243 : vector<8x1xf32> to vector<8x8xf32>
    %245 = arith.mulf %240, %244 : vector<8x8xf32>
    %cst_133 = arith.constant dense<0.000000e+00> : vector<8x8xf32>
    %246 = tpu.matmul %245, %231, %cst_133 {dimension_numbers = #tpu.dot_dimension_numbers<[1], [0], [0], [1], [0, 0, 1, 1], [], []>} : vector<8x8xf32>, vector<8x8xf32>, vector<8x8xf32> -> vector<8x8xf32>
    %247 = vector.extract_strided_slice %217 {offsets = [0, 0], sizes = [8, 32], strides = [1, 1]} : vector<32x32xf32> to vector<8x32xf32>
    %cst_134 = arith.constant dense<0.000000e+00> : vector<8x32xf32>
    %248 = tpu.matmul %246, %247, %cst_134 {dimension_numbers = #tpu.dot_dimension_numbers<[1], [0], [0], [1], [0, 0, 1, 1], [], []>} : vector<8x8xf32>, vector<8x32xf32>, vector<8x32xf32> -> vector<8x32xf32>
    %249 = vector.extract_strided_slice %222 {offsets = [0, 8], sizes = [8, 8], strides = [1, 1]} : vector<8x32xf32> to vector<8x8xf32>
    %250 = vector.extract_strided_slice %225 {offsets = [0, 8], sizes = [8, 8], strides = [1, 1]} : vector<8x32xf32> to vector<8x8xf32>
    %251 = vector.extract_strided_slice %228 {offsets = [0, 8], sizes = [8, 8], strides = [1, 1]} : vector<8x32xf32> to vector<8x8xf32>
    %cst_135 = arith.constant dense<0.000000e+00> : vector<8x8xf32>
    %252 = tpu.matmul %249, %250, %cst_135 {dimension_numbers = #tpu.dot_dimension_numbers<[1], [1], [0], [0], [0, 0, 1, 0], [], []>} : vector<8x8xf32>, vector<8x8xf32>, vector<8x8xf32> -> vector<8x8xf32>
    %cst_136 = arith.constant 0.353553385 : f32
    %253 = vector.broadcast %cst_136 : f32 to vector<8x8xf32>
    %254 = arith.mulf %252, %253 : vector<8x8xf32>
    %255 = arith.addf %254, %3 : vector<8x8xf32>
    %cst_137 = arith.constant dense<0xFF800000> : vector<8xf32>
    %256 = vector.multi_reduction <maximumf>, %255, %cst_137 [1] : vector<8x8xf32> to vector<8xf32>
    %257 = vector.shape_cast %256 : vector<8xf32> to vector<8x1xf32>
    %258 = vector.broadcast %257 : vector<8x1xf32> to vector<8x8xf32>
    %259 = arith.subf %255, %258 : vector<8x8xf32>
    %260 = math.exp %259 : vector<8x8xf32>
    %cst_138 = arith.constant dense<0.000000e+00> : vector<8xf32>
    %261 = vector.multi_reduction <add>, %260, %cst_138 [1] : vector<8x8xf32> to vector<8xf32>
    %262 = vector.shape_cast %261 : vector<8xf32> to vector<8x1xf32>
    %263 = tpu.reciprocal %262 {approx = true} : vector<8x1xf32> -> vector<8x1xf32>
    %264 = vector.broadcast %263 : vector<8x1xf32> to vector<8x8xf32>
    %265 = arith.mulf %260, %264 : vector<8x8xf32>
    %cst_139 = arith.constant dense<0.000000e+00> : vector<8x8xf32>
    %266 = tpu.matmul %265, %251, %cst_139 {dimension_numbers = #tpu.dot_dimension_numbers<[1], [0], [0], [1], [0, 0, 1, 1], [], []>} : vector<8x8xf32>, vector<8x8xf32>, vector<8x8xf32> -> vector<8x8xf32>
    %267 = vector.extract_strided_slice %217 {offsets = [8, 0], sizes = [8, 32], strides = [1, 1]} : vector<32x32xf32> to vector<8x32xf32>
    %cst_140 = arith.constant dense<0.000000e+00> : vector<8x32xf32>
    %268 = tpu.matmul %266, %267, %cst_140 {dimension_numbers = #tpu.dot_dimension_numbers<[1], [0], [0], [1], [0, 0, 1, 1], [], []>} : vector<8x8xf32>, vector<8x32xf32>, vector<8x32xf32> -> vector<8x32xf32>
    %269 = arith.addf %248, %268 : vector<8x32xf32>
    %270 = vector.extract_strided_slice %222 {offsets = [0, 16], sizes = [8, 8], strides = [1, 1]} : vector<8x32xf32> to vector<8x8xf32>
    %271 = vector.extract_strided_slice %225 {offsets = [0, 16], sizes = [8, 8], strides = [1, 1]} : vector<8x32xf32> to vector<8x8xf32>
    %272 = vector.extract_strided_slice %228 {offsets = [0, 16], sizes = [8, 8], strides = [1, 1]} : vector<8x32xf32> to vector<8x8xf32>
    %cst_141 = arith.constant dense<0.000000e+00> : vector<8x8xf32>
    %273 = tpu.matmul %270, %271, %cst_141 {dimension_numbers = #tpu.dot_dimension_numbers<[1], [1], [0], [0], [0, 0, 1, 0], [], []>} : vector<8x8xf32>, vector<8x8xf32>, vector<8x8xf32> -> vector<8x8xf32>
    %cst_142 = arith.constant 0.353553385 : f32
    %274 = vector.broadcast %cst_142 : f32 to vector<8x8xf32>
    %275 = arith.mulf %273, %274 : vector<8x8xf32>
    %276 = arith.addf %275, %3 : vector<8x8xf32>
    %cst_143 = arith.constant dense<0xFF800000> : vector<8xf32>
    %277 = vector.multi_reduction <maximumf>, %276, %cst_143 [1] : vector<8x8xf32> to vector<8xf32>
    %278 = vector.shape_cast %277 : vector<8xf32> to vector<8x1xf32>
    %279 = vector.broadcast %278 : vector<8x1xf32> to vector<8x8xf32>
    %280 = arith.subf %276, %279 : vector<8x8xf32>
    %281 = math.exp %280 : vector<8x8xf32>
    %cst_144 = arith.constant dense<0.000000e+00> : vector<8xf32>
    %282 = vector.multi_reduction <add>, %281, %cst_144 [1] : vector<8x8xf32> to vector<8xf32>
    %283 = vector.shape_cast %282 : vector<8xf32> to vector<8x1xf32>
    %284 = tpu.reciprocal %283 {approx = true} : vector<8x1xf32> -> vector<8x1xf32>
    %285 = vector.broadcast %284 : vector<8x1xf32> to vector<8x8xf32>
    %286 = arith.mulf %281, %285 : vector<8x8xf32>
    %cst_145 = arith.constant dense<0.000000e+00> : vector<8x8xf32>
    %287 = tpu.matmul %286, %272, %cst_145 {dimension_numbers = #tpu.dot_dimension_numbers<[1], [0], [0], [1], [0, 0, 1, 1], [], []>} : vector<8x8xf32>, vector<8x8xf32>, vector<8x8xf32> -> vector<8x8xf32>
    %288 = vector.extract_strided_slice %217 {offsets = [16, 0], sizes = [8, 32], strides = [1, 1]} : vector<32x32xf32> to vector<8x32xf32>
    %cst_146 = arith.constant dense<0.000000e+00> : vector<8x32xf32>
    %289 = tpu.matmul %287, %288, %cst_146 {dimension_numbers = #tpu.dot_dimension_numbers<[1], [0], [0], [1], [0, 0, 1, 1], [], []>} : vector<8x8xf32>, vector<8x32xf32>, vector<8x32xf32> -> vector<8x32xf32>
    %290 = arith.addf %269, %289 : vector<8x32xf32>
    %291 = vector.extract_strided_slice %222 {offsets = [0, 24], sizes = [8, 8], strides = [1, 1]} : vector<8x32xf32> to vector<8x8xf32>
    %292 = vector.extract_strided_slice %225 {offsets = [0, 24], sizes = [8, 8], strides = [1, 1]} : vector<8x32xf32> to vector<8x8xf32>
    %293 = vector.extract_strided_slice %228 {offsets = [0, 24], sizes = [8, 8], strides = [1, 1]} : vector<8x32xf32> to vector<8x8xf32>
    %cst_147 = arith.constant dense<0.000000e+00> : vector<8x8xf32>
    %294 = tpu.matmul %291, %292, %cst_147 {dimension_numbers = #tpu.dot_dimension_numbers<[1], [1], [0], [0], [0, 0, 1, 0], [], []>} : vector<8x8xf32>, vector<8x8xf32>, vector<8x8xf32> -> vector<8x8xf32>
    %cst_148 = arith.constant 0.353553385 : f32
    %295 = vector.broadcast %cst_148 : f32 to vector<8x8xf32>
    %296 = arith.mulf %294, %295 : vector<8x8xf32>
    %297 = arith.addf %296, %3 : vector<8x8xf32>
    %cst_149 = arith.constant dense<0xFF800000> : vector<8xf32>
    %298 = vector.multi_reduction <maximumf>, %297, %cst_149 [1] : vector<8x8xf32> to vector<8xf32>
    %299 = vector.shape_cast %298 : vector<8xf32> to vector<8x1xf32>
    %300 = vector.broadcast %299 : vector<8x1xf32> to vector<8x8xf32>
    %301 = arith.subf %297, %300 : vector<8x8xf32>
    %302 = math.exp %301 : vector<8x8xf32>
    %cst_150 = arith.constant dense<0.000000e+00> : vector<8xf32>
    %303 = vector.multi_reduction <add>, %302, %cst_150 [1] : vector<8x8xf32> to vector<8xf32>
    %304 = vector.shape_cast %303 : vector<8xf32> to vector<8x1xf32>
    %305 = tpu.reciprocal %304 {approx = true} : vector<8x1xf32> -> vector<8x1xf32>
    %306 = vector.broadcast %305 : vector<8x1xf32> to vector<8x8xf32>
    %307 = arith.mulf %302, %306 : vector<8x8xf32>
    %cst_151 = arith.constant dense<0.000000e+00> : vector<8x8xf32>
    %308 = tpu.matmul %307, %293, %cst_151 {dimension_numbers = #tpu.dot_dimension_numbers<[1], [0], [0], [1], [0, 0, 1, 1], [], []>} : vector<8x8xf32>, vector<8x8xf32>, vector<8x8xf32> -> vector<8x8xf32>
    %309 = vector.extract_strided_slice %217 {offsets = [24, 0], sizes = [8, 32], strides = [1, 1]} : vector<32x32xf32> to vector<8x32xf32>
    %cst_152 = arith.constant dense<0.000000e+00> : vector<8x32xf32>
    %310 = tpu.matmul %308, %309, %cst_152 {dimension_numbers = #tpu.dot_dimension_numbers<[1], [0], [0], [1], [0, 0, 1, 1], [], []>} : vector<8x8xf32>, vector<8x32xf32>, vector<8x32xf32> -> vector<8x32xf32>
    %311 = arith.addf %290, %310 : vector<8x32xf32>
    %312 = vector.broadcast %219 : vector<1x32xf32> to vector<8x32xf32>
    %313 = arith.addf %311, %312 : vector<8x32xf32>
    %314 = arith.addf %179, %313 : vector<8x32xf32>
    %c1_153 = arith.constant 1 : index
    %c0_154 = arith.constant 0 : index
    %c0_155 = arith.constant 0 : index
    %315 = vector.load %arg17[%c1_153, %c0_154, %c0_155] : memref<2x1x32xf32, #tpu.memory_space<vmem>>, vector<1x1x32xf32>
    %316 = vector.shape_cast %315 : vector<1x1x32xf32> to vector<1x32xf32>
    %c1_156 = arith.constant 1 : index
    %c0_157 = arith.constant 0 : index
    %c0_158 = arith.constant 0 : index
    %317 = vector.load %arg18[%c1_156, %c0_157, %c0_158] : memref<2x1x32xf32, #tpu.memory_space<vmem>>, vector<1x1x32xf32>
    %318 = vector.shape_cast %317 : vector<1x1x32xf32> to vector<1x32xf32>
    %cst_159 = arith.constant dense<0.000000e+00> : vector<8xf32>
    %319 = vector.multi_reduction <add>, %314, %cst_159 [1] : vector<8x32xf32> to vector<8xf32>
    %320 = vector.shape_cast %319 : vector<8xf32> to vector<8x1xf32>
    %cst_160 = arith.constant 3.200000e+01 : f32
    %321 = vector.broadcast %cst_160 : f32 to vector<8x1xf32>
    %322 = arith.divf %320, %321 : vector<8x1xf32>
    %323 = vector.broadcast %322 : vector<8x1xf32> to vector<8x32xf32>
    %324 = arith.subf %314, %323 : vector<8x32xf32>
    %325 = arith.mulf %324, %324 : vector<8x32xf32>
    %cst_161 = arith.constant dense<0.000000e+00> : vector<8xf32>
    %326 = vector.multi_reduction <add>, %325, %cst_161 [1] : vector<8x32xf32> to vector<8xf32>
    %327 = vector.shape_cast %326 : vector<8xf32> to vector<8x1xf32>
    %cst_162 = arith.constant 3.200000e+01 : f32
    %328 = vector.broadcast %cst_162 : f32 to vector<8x1xf32>
    %329 = arith.divf %327, %328 : vector<8x1xf32>
    %cst_163 = arith.constant 9.99999997E-7 : f32
    %330 = vector.broadcast %cst_163 : f32 to vector<8x1xf32>
    %331 = arith.addf %329, %330 : vector<8x1xf32>
    %332 = math.rsqrt %331 : vector<8x1xf32>
    %333 = vector.broadcast %332 : vector<8x1xf32> to vector<8x32xf32>
    %334 = arith.mulf %324, %333 : vector<8x32xf32>
    %335 = vector.broadcast %316 : vector<1x32xf32> to vector<8x32xf32>
    %336 = arith.mulf %334, %335 : vector<8x32xf32>
    %337 = vector.broadcast %318 : vector<1x32xf32> to vector<8x32xf32>
    %338 = arith.addf %336, %337 : vector<8x32xf32>
    %c1_164 = arith.constant 1 : index
    %c0_165 = arith.constant 0 : index
    %c0_166 = arith.constant 0 : index
    %339 = vector.load %arg11[%c1_164, %c0_165, %c0_166] : memref<2x32x64xf32, #tpu.memory_space<vmem>>, vector<1x32x64xf32>
    %340 = vector.shape_cast %339 : vector<1x32x64xf32> to vector<32x64xf32>
    %c1_167 = arith.constant 1 : index
    %c0_168 = arith.constant 0 : index
    %c0_169 = arith.constant 0 : index
    %341 = vector.load %arg12[%c1_167, %c0_168, %c0_169] : memref<2x1x64xf32, #tpu.memory_space<vmem>>, vector<1x1x64xf32>
    %342 = vector.shape_cast %341 : vector<1x1x64xf32> to vector<1x64xf32>
    %c1_170 = arith.constant 1 : index
    %c0_171 = arith.constant 0 : index
    %c0_172 = arith.constant 0 : index
    %343 = vector.load %arg13[%c1_170, %c0_171, %c0_172] : memref<2x64x32xf32, #tpu.memory_space<vmem>>, vector<1x64x32xf32>
    %344 = vector.shape_cast %343 : vector<1x64x32xf32> to vector<64x32xf32>
    %c1_173 = arith.constant 1 : index
    %c0_174 = arith.constant 0 : index
    %c0_175 = arith.constant 0 : index
    %345 = vector.load %arg14[%c1_173, %c0_174, %c0_175] : memref<2x1x32xf32, #tpu.memory_space<vmem>>, vector<1x1x32xf32>
    %346 = vector.shape_cast %345 : vector<1x1x32xf32> to vector<1x32xf32>
    %cst_176 = arith.constant dense<0.000000e+00> : vector<8x64xf32>
    %347 = tpu.matmul %338, %340, %cst_176 {dimension_numbers = #tpu.dot_dimension_numbers<[1], [0], [0], [1], [0, 0, 1, 1], [], []>} : vector<8x32xf32>, vector<32x64xf32>, vector<8x64xf32> -> vector<8x64xf32>
    %348 = vector.broadcast %342 : vector<1x64xf32> to vector<8x64xf32>
    %349 = arith.addf %347, %348 : vector<8x64xf32>
    %cst_177 = arith.constant 0.000000e+00 : f32
    %350 = vector.broadcast %cst_177 : f32 to vector<8x64xf32>
    %351 = arith.maximumf %349, %350 : vector<8x64xf32>
    %cst_178 = arith.constant dense<0.000000e+00> : vector<8x32xf32>
    %352 = tpu.matmul %351, %344, %cst_178 {dimension_numbers = #tpu.dot_dimension_numbers<[1], [0], [0], [1], [0, 0, 1, 1], [], []>} : vector<8x64xf32>, vector<64x32xf32>, vector<8x32xf32> -> vector<8x32xf32>
    %353 = vector.broadcast %346 : vector<1x32xf32> to vector<8x32xf32>
    %354 = arith.addf %352, %353 : vector<8x32xf32>
    %355 = arith.addf %314, %354 : vector<8x32xf32>
    %c0_179 = arith.constant 0 : index
    %c0_180 = arith.constant 0 : index
    %356 = vector.load %arg19[%c0_179, %c0_180] : memref<1x32xf32, #tpu.memory_space<vmem>>, vector<1x32xf32>
    %c0_181 = arith.constant 0 : index
    %c0_182 = arith.constant 0 : index
    %357 = vector.load %arg20[%c0_181, %c0_182] : memref<1x32xf32, #tpu.memory_space<vmem>>, vector<1x32xf32>
    %cst_183 = arith.constant dense<0.000000e+00> : vector<8xf32>
    %358 = vector.multi_reduction <add>, %355, %cst_183 [1] : vector<8x32xf32> to vector<8xf32>
    %359 = vector.shape_cast %358 : vector<8xf32> to vector<8x1xf32>
    %cst_184 = arith.constant 3.200000e+01 : f32
    %360 = vector.broadcast %cst_184 : f32 to vector<8x1xf32>
    %361 = arith.divf %359, %360 : vector<8x1xf32>
    %362 = vector.broadcast %361 : vector<8x1xf32> to vector<8x32xf32>
    %363 = arith.subf %355, %362 : vector<8x32xf32>
    %364 = arith.mulf %363, %363 : vector<8x32xf32>
    %cst_185 = arith.constant dense<0.000000e+00> : vector<8xf32>
    %365 = vector.multi_reduction <add>, %364, %cst_185 [1] : vector<8x32xf32> to vector<8xf32>
    %366 = vector.shape_cast %365 : vector<8xf32> to vector<8x1xf32>
    %cst_186 = arith.constant 3.200000e+01 : f32
    %367 = vector.broadcast %cst_186 : f32 to vector<8x1xf32>
    %368 = arith.divf %366, %367 : vector<8x1xf32>
    %cst_187 = arith.constant 9.99999997E-7 : f32
    %369 = vector.broadcast %cst_187 : f32 to vector<8x1xf32>
    %370 = arith.addf %368, %369 : vector<8x1xf32>
    %371 = math.rsqrt %370 : vector<8x1xf32>
    %372 = vector.broadcast %371 : vector<8x1xf32> to vector<8x32xf32>
    %373 = arith.mulf %363, %372 : vector<8x32xf32>
    %374 = vector.broadcast %356 : vector<1x32xf32> to vector<8x32xf32>
    %375 = arith.mulf %373, %374 : vector<8x32xf32>
    %376 = vector.broadcast %357 : vector<1x32xf32> to vector<8x32xf32>
    %377 = arith.addf %375, %376 : vector<8x32xf32>
    %c0_188 = arith.constant 0 : index
    %c0_189 = arith.constant 0 : index
    %c0_190 = arith.constant 0 : index
    %378 = vector.load %arg21[%c0_188, %c0_189, %c0_190] : memref<1x8x32xf32, #tpu.memory_space<vmem>>, vector<1x8x32xf32>
    %379 = vector.shape_cast %378 : vector<1x8x32xf32> to vector<8x32xf32>
    %380 = vector.shape_cast %377 : vector<8x32xf32> to vector<1x8x32xf32>
    tpu.vector_store %arg21[%c0_188, %c0_189, %c0_190], %380 {strides = array<i32>} : memref<1x8x32xf32, #tpu.memory_space<vmem>>, vector<1x8x32xf32>,
    return
  }
  func.func @transform_0(%arg0: i32) -> (i32, i32, i32) {
    %c0_i32 = arith.constant 0 : i32
    %c0_i32_0 = arith.constant 0 : i32
    %c0_i32_1 = arith.constant 0 : i32
    return %arg0, %c0_i32, %c0_i32_0 : i32, i32, i32
  }
  func.func @transform_1(%arg0: i32) -> (i32, i32, i32) {
    %c0_i32 = arith.constant 0 : i32
    %c0_i32_0 = arith.constant 0 : i32
    %c0_i32_1 = arith.constant 0 : i32
    return %arg0, %c0_i32, %c0_i32_0 : i32, i32, i32
  }
  func.func @transform_2(%arg0: i32) -> (i32, i32, i32) {
    %c0_i32 = arith.constant 0 : i32
    %c0_i32_0 = arith.constant 0 : i32
    %c0_i32_1 = arith.constant 0 : i32
    %c0_i32_2 = arith.constant 0 : i32
    return %c0_i32, %c0_i32_0, %c0_i32_1 : i32, i32, i32
  }
  func.func @transform_3(%arg0: i32) -> (i32, i32, i32) {
    %c0_i32 = arith.constant 0 : i32
    %c0_i32_0 = arith.constant 0 : i32
    %c0_i32_1 = arith.constant 0 : i32
    %c0_i32_2 = arith.constant 0 : i32
    return %c0_i32, %c0_i32_0, %c0_i32_1 : i32, i32, i32
  }
  func.func @transform_4(%arg0: i32) -> (i32, i32, i32) {
    %c0_i32 = arith.constant 0 : i32
    %c0_i32_0 = arith.constant 0 : i32
    %c0_i32_1 = arith.constant 0 : i32
    %c0_i32_2 = arith.constant 0 : i32
    return %c0_i32, %c0_i32_0, %c0_i32_1 : i32, i32, i32
  }
  func.func @transform_5(%arg0: i32) -> (i32, i32, i32) {
    %c0_i32 = arith.constant 0 : i32
    %c0_i32_0 = arith.constant 0 : i32
    %c0_i32_1 = arith.constant 0 : i32
    %c0_i32_2 = arith.constant 0 : i32
    return %c0_i32, %c0_i32_0, %c0_i32_1 : i32, i32, i32
  }
  func.func @transform_6(%arg0: i32) -> (i32, i32, i32) {
    %c0_i32 = arith.constant 0 : i32
    %c0_i32_0 = arith.constant 0 : i32
    %c0_i32_1 = arith.constant 0 : i32
    %c0_i32_2 = arith.constant 0 : i32
    return %c0_i32, %c0_i32_0, %c0_i32_1 : i32, i32, i32
  }
  func.func @transform_7(%arg0: i32) -> (i32, i32, i32) {
    %c0_i32 = arith.constant 0 : i32
    %c0_i32_0 = arith.constant 0 : i32
    %c0_i32_1 = arith.constant 0 : i32
    %c0_i32_2 = arith.constant 0 : i32
    return %c0_i32, %c0_i32_0, %c0_i32_1 : i32, i32, i32
  }
  func.func @transform_8(%arg0: i32) -> (i32, i32, i32) {
    %c0_i32 = arith.constant 0 : i32
    %c0_i32_0 = arith.constant 0 : i32
    %c0_i32_1 = arith.constant 0 : i32
    %c0_i32_2 = arith.constant 0 : i32
    return %c0_i32, %c0_i32_0, %c0_i32_1 : i32, i32, i32
  }
  func.func @transform_9(%arg0: i32) -> (i32, i32, i32) {
    %c0_i32 = arith.constant 0 : i32
    %c0_i32_0 = arith.constant 0 : i32
    %c0_i32_1 = arith.constant 0 : i32
    %c0_i32_2 = arith.constant 0 : i32
    return %c0_i32, %c0_i32_0, %c0_i32_1 : i32, i32, i32
  }
  func.func @transform_10(%arg0: i32) -> (i32, i32, i32) {
    %c0_i32 = arith.constant 0 : i32
    %c0_i32_0 = arith.constant 0 : i32
    %c0_i32_1 = arith.constant 0 : i32
    %c0_i32_2 = arith.constant 0 : i32
    return %c0_i32, %c0_i32_0, %c0_i32_1 : i32, i32, i32
  }
  func.func @transform_11(%arg0: i32) -> (i32, i32, i32) {
    %c0_i32 = arith.constant 0 : i32
    %c0_i32_0 = arith.constant 0 : i32
    %c0_i32_1 = arith.constant 0 : i32
    %c0_i32_2 = arith.constant 0 : i32
    return %c0_i32, %c0_i32_0, %c0_i32_1 : i32, i32, i32
  }
  func.func @transform_12(%arg0: i32) -> (i32, i32, i32) {
    %c0_i32 = arith.constant 0 : i32
    %c0_i32_0 = arith.constant 0 : i32
    %c0_i32_1 = arith.constant 0 : i32
    %c0_i32_2 = arith.constant 0 : i32
    return %c0_i32, %c0_i32_0, %c0_i32_1 : i32, i32, i32
  }
  func.func @transform_13(%arg0: i32) -> (i32, i32, i32) {
    %c0_i32 = arith.constant 0 : i32
    %c0_i32_0 = arith.constant 0 : i32
    %c0_i32_1 = arith.constant 0 : i32
    %c0_i32_2 = arith.constant 0 : i32
    return %c0_i32, %c0_i32_0, %c0_i32_1 : i32, i32, i32
  }
  func.func @transform_14(%arg0: i32) -> (i32, i32, i32) {
    %c0_i32 = arith.constant 0 : i32
    %c0_i32_0 = arith.constant 0 : i32
    %c0_i32_1 = arith.constant 0 : i32
    %c0_i32_2 = arith.constant 0 : i32
    return %c0_i32, %c0_i32_0, %c0_i32_1 : i32, i32, i32
  }
  func.func @transform_15(%arg0: i32) -> (i32, i32, i32) {
    %c0_i32 = arith.constant 0 : i32
    %c0_i32_0 = arith.constant 0 : i32
    %c0_i32_1 = arith.constant 0 : i32
    %c0_i32_2 = arith.constant 0 : i32
    return %c0_i32, %c0_i32_0, %c0_i32_1 : i32, i32, i32
  }
  func.func @transform_16(%arg0: i32) -> (i32, i32, i32) {
    %c0_i32 = arith.constant 0 : i32
    %c0_i32_0 = arith.constant 0 : i32
    %c0_i32_1 = arith.constant 0 : i32
    %c0_i32_2 = arith.constant 0 : i32
    return %c0_i32, %c0_i32_0, %c0_i32_1 : i32, i32, i32
  }
  func.func @transform_17(%arg0: i32) -> (i32, i32, i32) {
    %c0_i32 = arith.constant 0 : i32
    %c0_i32_0 = arith.constant 0 : i32
    %c0_i32_1 = arith.constant 0 : i32
    %c0_i32_2 = arith.constant 0 : i32
    return %c0_i32, %c0_i32_0, %c0_i32_1 : i32, i32, i32
  }
  func.func @transform_18(%arg0: i32) -> (i32, i32) {
    %c0_i32 = arith.constant 0 : i32
    %c0_i32_0 = arith.constant 0 : i32
    %c0_i32_1 = arith.constant 0 : i32
    return %c0_i32, %c0_i32_0 : i32, i32
  }
  func.func @transform_19(%arg0: i32) -> (i32, i32) {
    %c0_i32 = arith.constant 0 : i32
    %c0_i32_0 = arith.constant 0 : i32
    %c0_i32_1 = arith.constant 0 : i32
    return %c0_i32, %c0_i32_0 : i32, i32
  }
  func.func @transform_20(%arg0: i32) -> (i32, i32, i32) {
    %c0_i32 = arith.constant 0 : i32
    %c0_i32_0 = arith.constant 0 : i32
    %c0_i32_1 = arith.constant 0 : i32
    return %arg0, %c0_i32, %c0_i32_0 : i32, i32, i32
  }
}

module attributes {stable_mosaic.version = 11 : i64} {
  func.func @_decoder_kernel(%arg0: i32, %arg1: memref<1x8x32xf32, #tpu.memory_space<vmem>>, %arg2: memref<1x8x32xf32, #tpu.memory_space<vmem>>, %arg3: memref<1x8x8xf32, #tpu.memory_space<vmem>>, %arg4: memref<1x8x8xf32, #tpu.memory_space<vmem>>, %arg5: memref<2x32x32xf32, #tpu.memory_space<vmem>>, %arg6: memref<2x1x32xf32, #tpu.memory_space<vmem>>, %arg7: memref<2x32x32xf32, #tpu.memory_space<vmem>>, %arg8: memref<2x1x32xf32, #tpu.memory_space<vmem>>, %arg9: memref<2x32x32xf32, #tpu.memory_space<vmem>>, %arg10: memref<2x1x32xf32, #tpu.memory_space<vmem>>, %arg11: memref<2x32x32xf32, #tpu.memory_space<vmem>>, %arg12: memref<2x1x32xf32, #tpu.memory_space<vmem>>, %arg13: memref<2x32x32xf32, #tpu.memory_space<vmem>>, %arg14: memref<2x1x32xf32, #tpu.memory_space<vmem>>, %arg15: memref<2x32x32xf32, #tpu.memory_space<vmem>>, %arg16: memref<2x1x32xf32, #tpu.memory_space<vmem>>, %arg17: memref<2x32x32xf32, #tpu.memory_space<vmem>>, %arg18: memref<2x1x32xf32, #tpu.memory_space<vmem>>, %arg19: memref<2x32x32xf32, #tpu.memory_space<vmem>>, %arg20: memref<2x1x32xf32, #tpu.memory_space<vmem>>, %arg21: memref<2x32x64xf32, #tpu.memory_space<vmem>>, %arg22: memref<2x1x64xf32, #tpu.memory_space<vmem>>, %arg23: memref<2x64x32xf32, #tpu.memory_space<vmem>>, %arg24: memref<2x1x32xf32, #tpu.memory_space<vmem>>, %arg25: memref<2x1x32xf32, #tpu.memory_space<vmem>>, %arg26: memref<2x1x32xf32, #tpu.memory_space<vmem>>, %arg27: memref<2x1x32xf32, #tpu.memory_space<vmem>>, %arg28: memref<2x1x32xf32, #tpu.memory_space<vmem>>, %arg29: memref<2x1x32xf32, #tpu.memory_space<vmem>>, %arg30: memref<2x1x32xf32, #tpu.memory_space<vmem>>, %arg31: memref<1x32xf32, #tpu.memory_space<vmem>>, %arg32: memref<1x32xf32, #tpu.memory_space<vmem>>, %arg33: memref<1x8x32xf32, #tpu.memory_space<vmem>>) attributes {dimension_semantics = [#tpu.dimension_semantics<parallel>], iteration_bounds = array<i64: 2>, scalar_prefetch = 0 : i64, scratch_operands = 0 : i64, tpu.core_type = #tpu.core_type<tc>, window_params = [{transform_indices = @transform_0, window_bounds = array<i64: 1, 8, 32>}, {transform_indices = @transform_1, window_bounds = array<i64: 1, 8, 32>}, {transform_indices = @transform_2, window_bounds = array<i64: 1, 8, 8>}, {transform_indices = @transform_3, window_bounds = array<i64: 1, 8, 8>}, {pipeline_mode = #tpu.pipeline_mode<synchronous>, transform_indices = @transform_4, window_bounds = array<i64: 2, 32, 32>}, {pipeline_mode = #tpu.pipeline_mode<synchronous>, transform_indices = @transform_5, window_bounds = array<i64: 2, 1, 32>}, {pipeline_mode = #tpu.pipeline_mode<synchronous>, transform_indices = @transform_6, window_bounds = array<i64: 2, 32, 32>}, {pipeline_mode = #tpu.pipeline_mode<synchronous>, transform_indices = @transform_7, window_bounds = array<i64: 2, 1, 32>}, {pipeline_mode = #tpu.pipeline_mode<synchronous>, transform_indices = @transform_8, window_bounds = array<i64: 2, 32, 32>}, {pipeline_mode = #tpu.pipeline_mode<synchronous>, transform_indices = @transform_9, window_bounds = array<i64: 2, 1, 32>}, {pipeline_mode = #tpu.pipeline_mode<synchronous>, transform_indices = @transform_10, window_bounds = array<i64: 2, 32, 32>}, {pipeline_mode = #tpu.pipeline_mode<synchronous>, transform_indices = @transform_11, window_bounds = array<i64: 2, 1, 32>}, {pipeline_mode = #tpu.pipeline_mode<synchronous>, transform_indices = @transform_12, window_bounds = array<i64: 2, 32, 32>}, {pipeline_mode = #tpu.pipeline_mode<synchronous>, transform_indices = @transform_13, window_bounds = array<i64: 2, 1, 32>}, {pipeline_mode = #tpu.pipeline_mode<synchronous>, transform_indices = @transform_14, window_bounds = array<i64: 2, 32, 32>}, {pipeline_mode = #tpu.pipeline_mode<synchronous>, transform_indices = @transform_15, window_bounds = array<i64: 2, 1, 32>}, {pipeline_mode = #tpu.pipeline_mode<synchronous>, transform_indices = @transform_16, window_bounds = array<i64: 2, 32, 32>}, {pipeline_mode = #tpu.pipeline_mode<synchronous>, transform_indices = @transform_17, window_bounds = array<i64: 2, 1, 32>}, {pipeline_mode = #tpu.pipeline_mode<synchronous>, transform_indices = @transform_18, window_bounds = array<i64: 2, 32, 32>}, {pipeline_mode = #tpu.pipeline_mode<synchronous>, transform_indices = @transform_19, window_bounds = array<i64: 2, 1, 32>}, {pipeline_mode = #tpu.pipeline_mode<synchronous>, transform_indices = @transform_20, window_bounds = array<i64: 2, 32, 64>}, {pipeline_mode = #tpu.pipeline_mode<synchronous>, transform_indices = @transform_21, window_bounds = array<i64: 2, 1, 64>}, {pipeline_mode = #tpu.pipeline_mode<synchronous>, transform_indices = @transform_22, window_bounds = array<i64: 2, 64, 32>}, {pipeline_mode = #tpu.pipeline_mode<synchronous>, transform_indices = @transform_23, window_bounds = array<i64: 2, 1, 32>}, {pipeline_mode = #tpu.pipeline_mode<synchronous>, transform_indices = @transform_24, window_bounds = array<i64: 2, 1, 32>}, {pipeline_mode = #tpu.pipeline_mode<synchronous>, transform_indices = @transform_25, window_bounds = array<i64: 2, 1, 32>}, {pipeline_mode = #tpu.pipeline_mode<synchronous>, transform_indices = @transform_26, window_bounds = array<i64: 2, 1, 32>}, {pipeline_mode = #tpu.pipeline_mode<synchronous>, transform_indices = @transform_27, window_bounds = array<i64: 2, 1, 32>}, {pipeline_mode = #tpu.pipeline_mode<synchronous>, transform_indices = @transform_28, window_bounds = array<i64: 2, 1, 32>}, {pipeline_mode = #tpu.pipeline_mode<synchronous>, transform_indices = @transform_29, window_bounds = array<i64: 2, 1, 32>}, {pipeline_mode = #tpu.pipeline_mode<synchronous>, transform_indices = @transform_30, window_bounds = array<i64: 1, 32>}, {pipeline_mode = #tpu.pipeline_mode<synchronous>, transform_indices = @transform_31, window_bounds = array<i64: 1, 32>}, {transform_indices = @transform_32, window_bounds = array<i64: 1, 8, 32>}]} {
    %c0 = arith.constant 0 : index
    %c0_0 = arith.constant 0 : index
    %c0_1 = arith.constant 0 : index
    %0 = vector.load %arg1[%c0, %c0_0, %c0_1] : memref<1x8x32xf32, #tpu.memory_space<vmem>>, vector<1x8x32xf32>
    %1 = vector.shape_cast %0 : vector<1x8x32xf32> to vector<8x32xf32>
    %c0_2 = arith.constant 0 : index
    %c0_3 = arith.constant 0 : index
    %c0_4 = arith.constant 0 : index
    %2 = vector.load %arg2[%c0_2, %c0_3, %c0_4] : memref<1x8x32xf32, #tpu.memory_space<vmem>>, vector<1x8x32xf32>
    %3 = vector.shape_cast %2 : vector<1x8x32xf32> to vector<8x32xf32>
    %c0_5 = arith.constant 0 : index
    %c0_6 = arith.constant 0 : index
    %c0_7 = arith.constant 0 : index
    %4 = vector.load %arg3[%c0_5, %c0_6, %c0_7] : memref<1x8x8xf32, #tpu.memory_space<vmem>>, vector<1x8x8xf32>
    %5 = vector.shape_cast %4 : vector<1x8x8xf32> to vector<8x8xf32>
    %c0_8 = arith.constant 0 : index
    %c0_9 = arith.constant 0 : index
    %c0_10 = arith.constant 0 : index
    %6 = vector.load %arg4[%c0_8, %c0_9, %c0_10] : memref<1x8x8xf32, #tpu.memory_space<vmem>>, vector<1x8x8xf32>
    %7 = vector.shape_cast %6 : vector<1x8x8xf32> to vector<8x8xf32>
    %c0_11 = arith.constant 0 : index
    %c0_12 = arith.constant 0 : index
    %c0_13 = arith.constant 0 : index
    %8 = vector.load %arg25[%c0_11, %c0_12, %c0_13] : memref<2x1x32xf32, #tpu.memory_space<vmem>>, vector<1x1x32xf32>
    %9 = vector.shape_cast %8 : vector<1x1x32xf32> to vector<1x32xf32>
    %c0_14 = arith.constant 0 : index
    %c0_15 = arith.constant 0 : index
    %c0_16 = arith.constant 0 : index
    %10 = vector.load %arg26[%c0_14, %c0_15, %c0_16] : memref<2x1x32xf32, #tpu.memory_space<vmem>>, vector<1x1x32xf32>
    %11 = vector.shape_cast %10 : vector<1x1x32xf32> to vector<1x32xf32>
    %cst = arith.constant dense<0.000000e+00> : vector<8xf32>
    %12 = vector.multi_reduction <add>, %1, %cst [1] : vector<8x32xf32> to vector<8xf32>
    %13 = vector.shape_cast %12 : vector<8xf32> to vector<8x1xf32>
    %cst_17 = arith.constant 3.200000e+01 : f32
    %14 = vector.broadcast %cst_17 : f32 to vector<8x1xf32>
    %15 = arith.divf %13, %14 : vector<8x1xf32>
    %16 = vector.broadcast %15 : vector<8x1xf32> to vector<8x32xf32>
    %17 = arith.subf %1, %16 : vector<8x32xf32>
    %18 = arith.mulf %17, %17 : vector<8x32xf32>
    %cst_18 = arith.constant dense<0.000000e+00> : vector<8xf32>
    %19 = vector.multi_reduction <add>, %18, %cst_18 [1] : vector<8x32xf32> to vector<8xf32>
    %20 = vector.shape_cast %19 : vector<8xf32> to vector<8x1xf32>
    %cst_19 = arith.constant 3.200000e+01 : f32
    %21 = vector.broadcast %cst_19 : f32 to vector<8x1xf32>
    %22 = arith.divf %20, %21 : vector<8x1xf32>
    %cst_20 = arith.constant 9.99999997E-7 : f32
    %23 = vector.broadcast %cst_20 : f32 to vector<8x1xf32>
    %24 = arith.addf %22, %23 : vector<8x1xf32>
    %25 = math.rsqrt %24 : vector<8x1xf32>
    %26 = vector.broadcast %25 : vector<8x1xf32> to vector<8x32xf32>
    %27 = arith.mulf %17, %26 : vector<8x32xf32>
    %28 = vector.broadcast %9 : vector<1x32xf32> to vector<8x32xf32>
    %29 = arith.mulf %27, %28 : vector<8x32xf32>
    %30 = vector.broadcast %11 : vector<1x32xf32> to vector<8x32xf32>
    %31 = arith.addf %29, %30 : vector<8x32xf32>
    %c0_21 = arith.constant 0 : index
    %c0_22 = arith.constant 0 : index
    %c0_23 = arith.constant 0 : index
    %32 = vector.load %arg5[%c0_21, %c0_22, %c0_23] : memref<2x32x32xf32, #tpu.memory_space<vmem>>, vector<1x32x32xf32>
    %33 = vector.shape_cast %32 : vector<1x32x32xf32> to vector<32x32xf32>
    %c0_24 = arith.constant 0 : index
    %c0_25 = arith.constant 0 : index
    %c0_26 = arith.constant 0 : index
    %34 = vector.load %arg6[%c0_24, %c0_25, %c0_26] : memref<2x1x32xf32, #tpu.memory_space<vmem>>, vector<1x1x32xf32>
    %35 = vector.shape_cast %34 : vector<1x1x32xf32> to vector<1x32xf32>
    %c0_27 = arith.constant 0 : index
    %c0_28 = arith.constant 0 : index
    %c0_29 = arith.constant 0 : index
    %36 = vector.load %arg7[%c0_27, %c0_28, %c0_29] : memref<2x32x32xf32, #tpu.memory_space<vmem>>, vector<1x32x32xf32>
    %37 = vector.shape_cast %36 : vector<1x32x32xf32> to vector<32x32xf32>
    %c0_30 = arith.constant 0 : index
    %c0_31 = arith.constant 0 : index
    %c0_32 = arith.constant 0 : index
    %38 = vector.load %arg8[%c0_30, %c0_31, %c0_32] : memref<2x1x32xf32, #tpu.memory_space<vmem>>, vector<1x1x32xf32>
    %39 = vector.shape_cast %38 : vector<1x1x32xf32> to vector<1x32xf32>
    %c0_33 = arith.constant 0 : index
    %c0_34 = arith.constant 0 : index
    %c0_35 = arith.constant 0 : index
    %40 = vector.load %arg9[%c0_33, %c0_34, %c0_35] : memref<2x32x32xf32, #tpu.memory_space<vmem>>, vector<1x32x32xf32>
    %41 = vector.shape_cast %40 : vector<1x32x32xf32> to vector<32x32xf32>
    %c0_36 = arith.constant 0 : index
    %c0_37 = arith.constant 0 : index
    %c0_38 = arith.constant 0 : index
    %42 = vector.load %arg10[%c0_36, %c0_37, %c0_38] : memref<2x1x32xf32, #tpu.memory_space<vmem>>, vector<1x1x32xf32>
    %43 = vector.shape_cast %42 : vector<1x1x32xf32> to vector<1x32xf32>
    %c0_39 = arith.constant 0 : index
    %c0_40 = arith.constant 0 : index
    %c0_41 = arith.constant 0 : index
    %44 = vector.load %arg11[%c0_39, %c0_40, %c0_41] : memref<2x32x32xf32, #tpu.memory_space<vmem>>, vector<1x32x32xf32>
    %45 = vector.shape_cast %44 : vector<1x32x32xf32> to vector<32x32xf32>
    %c0_42 = arith.constant 0 : index
    %c0_43 = arith.constant 0 : index
    %c0_44 = arith.constant 0 : index
    %46 = vector.load %arg12[%c0_42, %c0_43, %c0_44] : memref<2x1x32xf32, #tpu.memory_space<vmem>>, vector<1x1x32xf32>
    %47 = vector.shape_cast %46 : vector<1x1x32xf32> to vector<1x32xf32>
    %cst_45 = arith.constant dense<0.000000e+00> : vector<8x32xf32>
    %48 = tpu.matmul %31, %33, %cst_45 {dimension_numbers = #tpu.dot_dimension_numbers<[1], [0], [0], [1], [0, 0, 1, 1], [], []>} : vector<8x32xf32>, vector<32x32xf32>, vector<8x32xf32> -> vector<8x32xf32>
    %49 = vector.broadcast %35 : vector<1x32xf32> to vector<8x32xf32>
    %50 = arith.addf %48, %49 : vector<8x32xf32>
    %cst_46 = arith.constant dense<0.000000e+00> : vector<8x32xf32>
    %51 = tpu.matmul %31, %37, %cst_46 {dimension_numbers = #tpu.dot_dimension_numbers<[1], [0], [0], [1], [0, 0, 1, 1], [], []>} : vector<8x32xf32>, vector<32x32xf32>, vector<8x32xf32> -> vector<8x32xf32>
    %52 = vector.broadcast %39 : vector<1x32xf32> to vector<8x32xf32>
    %53 = arith.addf %51, %52 : vector<8x32xf32>
    %cst_47 = arith.constant dense<0.000000e+00> : vector<8x32xf32>
    %54 = tpu.matmul %31, %41, %cst_47 {dimension_numbers = #tpu.dot_dimension_numbers<[1], [0], [0], [1], [0, 0, 1, 1], [], []>} : vector<8x32xf32>, vector<32x32xf32>, vector<8x32xf32> -> vector<8x32xf32>
    %55 = vector.broadcast %43 : vector<1x32xf32> to vector<8x32xf32>
    %56 = arith.addf %54, %55 : vector<8x32xf32>
    %57 = vector.extract_strided_slice %50 {offsets = [0, 0], sizes = [8, 8], strides = [1, 1]} : vector<8x32xf32> to vector<8x8xf32>
    %58 = vector.extract_strided_slice %53 {offsets = [0, 0], sizes = [8, 8], strides = [1, 1]} : vector<8x32xf32> to vector<8x8xf32>
    %59 = vector.extract_strided_slice %56 {offsets = [0, 0], sizes = [8, 8], strides = [1, 1]} : vector<8x32xf32> to vector<8x8xf32>
    %cst_48 = arith.constant dense<0.000000e+00> : vector<8x8xf32>
    %60 = tpu.matmul %57, %58, %cst_48 {dimension_numbers = #tpu.dot_dimension_numbers<[1], [1], [0], [0], [0, 0, 1, 0], [], []>} : vector<8x8xf32>, vector<8x8xf32>, vector<8x8xf32> -> vector<8x8xf32>
    %cst_49 = arith.constant 0.353553385 : f32
    %61 = vector.broadcast %cst_49 : f32 to vector<8x8xf32>
    %62 = arith.mulf %60, %61 : vector<8x8xf32>
    %63 = arith.addf %62, %5 : vector<8x8xf32>
    %cst_50 = arith.constant dense<0xFF800000> : vector<8xf32>
    %64 = vector.multi_reduction <maximumf>, %63, %cst_50 [1] : vector<8x8xf32> to vector<8xf32>
    %65 = vector.shape_cast %64 : vector<8xf32> to vector<8x1xf32>
    %66 = vector.broadcast %65 : vector<8x1xf32> to vector<8x8xf32>
    %67 = arith.subf %63, %66 : vector<8x8xf32>
    %68 = math.exp %67 : vector<8x8xf32>
    %cst_51 = arith.constant dense<0.000000e+00> : vector<8xf32>
    %69 = vector.multi_reduction <add>, %68, %cst_51 [1] : vector<8x8xf32> to vector<8xf32>
    %70 = vector.shape_cast %69 : vector<8xf32> to vector<8x1xf32>
    %71 = tpu.reciprocal %70 {approx = true} : vector<8x1xf32> -> vector<8x1xf32>
    %72 = vector.broadcast %71 : vector<8x1xf32> to vector<8x8xf32>
    %73 = arith.mulf %68, %72 : vector<8x8xf32>
    %cst_52 = arith.constant dense<0.000000e+00> : vector<8x8xf32>
    %74 = tpu.matmul %73, %59, %cst_52 {dimension_numbers = #tpu.dot_dimension_numbers<[1], [0], [0], [1], [0, 0, 1, 1], [], []>} : vector<8x8xf32>, vector<8x8xf32>, vector<8x8xf32> -> vector<8x8xf32>
    %75 = vector.extract_strided_slice %45 {offsets = [0, 0], sizes = [8, 32], strides = [1, 1]} : vector<32x32xf32> to vector<8x32xf32>
    %cst_53 = arith.constant dense<0.000000e+00> : vector<8x32xf32>
    %76 = tpu.matmul %74, %75, %cst_53 {dimension_numbers = #tpu.dot_dimension_numbers<[1], [0], [0], [1], [0, 0, 1, 1], [], []>} : vector<8x8xf32>, vector<8x32xf32>, vector<8x32xf32> -> vector<8x32xf32>
    %77 = vector.extract_strided_slice %50 {offsets = [0, 8], sizes = [8, 8], strides = [1, 1]} : vector<8x32xf32> to vector<8x8xf32>
    %78 = vector.extract_strided_slice %53 {offsets = [0, 8], sizes = [8, 8], strides = [1, 1]} : vector<8x32xf32> to vector<8x8xf32>
    %79 = vector.extract_strided_slice %56 {offsets = [0, 8], sizes = [8, 8], strides = [1, 1]} : vector<8x32xf32> to vector<8x8xf32>
    %cst_54 = arith.constant dense<0.000000e+00> : vector<8x8xf32>
    %80 = tpu.matmul %77, %78, %cst_54 {dimension_numbers = #tpu.dot_dimension_numbers<[1], [1], [0], [0], [0, 0, 1, 0], [], []>} : vector<8x8xf32>, vector<8x8xf32>, vector<8x8xf32> -> vector<8x8xf32>
    %cst_55 = arith.constant 0.353553385 : f32
    %81 = vector.broadcast %cst_55 : f32 to vector<8x8xf32>
    %82 = arith.mulf %80, %81 : vector<8x8xf32>
    %83 = arith.addf %82, %5 : vector<8x8xf32>
    %cst_56 = arith.constant dense<0xFF800000> : vector<8xf32>
    %84 = vector.multi_reduction <maximumf>, %83, %cst_56 [1] : vector<8x8xf32> to vector<8xf32>
    %85 = vector.shape_cast %84 : vector<8xf32> to vector<8x1xf32>
    %86 = vector.broadcast %85 : vector<8x1xf32> to vector<8x8xf32>
    %87 = arith.subf %83, %86 : vector<8x8xf32>
    %88 = math.exp %87 : vector<8x8xf32>
    %cst_57 = arith.constant dense<0.000000e+00> : vector<8xf32>
    %89 = vector.multi_reduction <add>, %88, %cst_57 [1] : vector<8x8xf32> to vector<8xf32>
    %90 = vector.shape_cast %89 : vector<8xf32> to vector<8x1xf32>
    %91 = tpu.reciprocal %90 {approx = true} : vector<8x1xf32> -> vector<8x1xf32>
    %92 = vector.broadcast %91 : vector<8x1xf32> to vector<8x8xf32>
    %93 = arith.mulf %88, %92 : vector<8x8xf32>
    %cst_58 = arith.constant dense<0.000000e+00> : vector<8x8xf32>
    %94 = tpu.matmul %93, %79, %cst_58 {dimension_numbers = #tpu.dot_dimension_numbers<[1], [0], [0], [1], [0, 0, 1, 1], [], []>} : vector<8x8xf32>, vector<8x8xf32>, vector<8x8xf32> -> vector<8x8xf32>
    %95 = vector.extract_strided_slice %45 {offsets = [8, 0], sizes = [8, 32], strides = [1, 1]} : vector<32x32xf32> to vector<8x32xf32>
    %cst_59 = arith.constant dense<0.000000e+00> : vector<8x32xf32>
    %96 = tpu.matmul %94, %95, %cst_59 {dimension_numbers = #tpu.dot_dimension_numbers<[1], [0], [0], [1], [0, 0, 1, 1], [], []>} : vector<8x8xf32>, vector<8x32xf32>, vector<8x32xf32> -> vector<8x32xf32>
    %97 = arith.addf %76, %96 : vector<8x32xf32>
    %98 = vector.extract_strided_slice %50 {offsets = [0, 16], sizes = [8, 8], strides = [1, 1]} : vector<8x32xf32> to vector<8x8xf32>
    %99 = vector.extract_strided_slice %53 {offsets = [0, 16], sizes = [8, 8], strides = [1, 1]} : vector<8x32xf32> to vector<8x8xf32>
    %100 = vector.extract_strided_slice %56 {offsets = [0, 16], sizes = [8, 8], strides = [1, 1]} : vector<8x32xf32> to vector<8x8xf32>
    %cst_60 = arith.constant dense<0.000000e+00> : vector<8x8xf32>
    %101 = tpu.matmul %98, %99, %cst_60 {dimension_numbers = #tpu.dot_dimension_numbers<[1], [1], [0], [0], [0, 0, 1, 0], [], []>} : vector<8x8xf32>, vector<8x8xf32>, vector<8x8xf32> -> vector<8x8xf32>
    %cst_61 = arith.constant 0.353553385 : f32
    %102 = vector.broadcast %cst_61 : f32 to vector<8x8xf32>
    %103 = arith.mulf %101, %102 : vector<8x8xf32>
    %104 = arith.addf %103, %5 : vector<8x8xf32>
    %cst_62 = arith.constant dense<0xFF800000> : vector<8xf32>
    %105 = vector.multi_reduction <maximumf>, %104, %cst_62 [1] : vector<8x8xf32> to vector<8xf32>
    %106 = vector.shape_cast %105 : vector<8xf32> to vector<8x1xf32>
    %107 = vector.broadcast %106 : vector<8x1xf32> to vector<8x8xf32>
    %108 = arith.subf %104, %107 : vector<8x8xf32>
    %109 = math.exp %108 : vector<8x8xf32>
    %cst_63 = arith.constant dense<0.000000e+00> : vector<8xf32>
    %110 = vector.multi_reduction <add>, %109, %cst_63 [1] : vector<8x8xf32> to vector<8xf32>
    %111 = vector.shape_cast %110 : vector<8xf32> to vector<8x1xf32>
    %112 = tpu.reciprocal %111 {approx = true} : vector<8x1xf32> -> vector<8x1xf32>
    %113 = vector.broadcast %112 : vector<8x1xf32> to vector<8x8xf32>
    %114 = arith.mulf %109, %113 : vector<8x8xf32>
    %cst_64 = arith.constant dense<0.000000e+00> : vector<8x8xf32>
    %115 = tpu.matmul %114, %100, %cst_64 {dimension_numbers = #tpu.dot_dimension_numbers<[1], [0], [0], [1], [0, 0, 1, 1], [], []>} : vector<8x8xf32>, vector<8x8xf32>, vector<8x8xf32> -> vector<8x8xf32>
    %116 = vector.extract_strided_slice %45 {offsets = [16, 0], sizes = [8, 32], strides = [1, 1]} : vector<32x32xf32> to vector<8x32xf32>
    %cst_65 = arith.constant dense<0.000000e+00> : vector<8x32xf32>
    %117 = tpu.matmul %115, %116, %cst_65 {dimension_numbers = #tpu.dot_dimension_numbers<[1], [0], [0], [1], [0, 0, 1, 1], [], []>} : vector<8x8xf32>, vector<8x32xf32>, vector<8x32xf32> -> vector<8x32xf32>
    %118 = arith.addf %97, %117 : vector<8x32xf32>
    %119 = vector.extract_strided_slice %50 {offsets = [0, 24], sizes = [8, 8], strides = [1, 1]} : vector<8x32xf32> to vector<8x8xf32>
    %120 = vector.extract_strided_slice %53 {offsets = [0, 24], sizes = [8, 8], strides = [1, 1]} : vector<8x32xf32> to vector<8x8xf32>
    %121 = vector.extract_strided_slice %56 {offsets = [0, 24], sizes = [8, 8], strides = [1, 1]} : vector<8x32xf32> to vector<8x8xf32>
    %cst_66 = arith.constant dense<0.000000e+00> : vector<8x8xf32>
    %122 = tpu.matmul %119, %120, %cst_66 {dimension_numbers = #tpu.dot_dimension_numbers<[1], [1], [0], [0], [0, 0, 1, 0], [], []>} : vector<8x8xf32>, vector<8x8xf32>, vector<8x8xf32> -> vector<8x8xf32>
    %cst_67 = arith.constant 0.353553385 : f32
    %123 = vector.broadcast %cst_67 : f32 to vector<8x8xf32>
    %124 = arith.mulf %122, %123 : vector<8x8xf32>
    %125 = arith.addf %124, %5 : vector<8x8xf32>
    %cst_68 = arith.constant dense<0xFF800000> : vector<8xf32>
    %126 = vector.multi_reduction <maximumf>, %125, %cst_68 [1] : vector<8x8xf32> to vector<8xf32>
    %127 = vector.shape_cast %126 : vector<8xf32> to vector<8x1xf32>
    %128 = vector.broadcast %127 : vector<8x1xf32> to vector<8x8xf32>
    %129 = arith.subf %125, %128 : vector<8x8xf32>
    %130 = math.exp %129 : vector<8x8xf32>
    %cst_69 = arith.constant dense<0.000000e+00> : vector<8xf32>
    %131 = vector.multi_reduction <add>, %130, %cst_69 [1] : vector<8x8xf32> to vector<8xf32>
    %132 = vector.shape_cast %131 : vector<8xf32> to vector<8x1xf32>
    %133 = tpu.reciprocal %132 {approx = true} : vector<8x1xf32> -> vector<8x1xf32>
    %134 = vector.broadcast %133 : vector<8x1xf32> to vector<8x8xf32>
    %135 = arith.mulf %130, %134 : vector<8x8xf32>
    %cst_70 = arith.constant dense<0.000000e+00> : vector<8x8xf32>
    %136 = tpu.matmul %135, %121, %cst_70 {dimension_numbers = #tpu.dot_dimension_numbers<[1], [0], [0], [1], [0, 0, 1, 1], [], []>} : vector<8x8xf32>, vector<8x8xf32>, vector<8x8xf32> -> vector<8x8xf32>
    %137 = vector.extract_strided_slice %45 {offsets = [24, 0], sizes = [8, 32], strides = [1, 1]} : vector<32x32xf32> to vector<8x32xf32>
    %cst_71 = arith.constant dense<0.000000e+00> : vector<8x32xf32>
    %138 = tpu.matmul %136, %137, %cst_71 {dimension_numbers = #tpu.dot_dimension_numbers<[1], [0], [0], [1], [0, 0, 1, 1], [], []>} : vector<8x8xf32>, vector<8x32xf32>, vector<8x32xf32> -> vector<8x32xf32>
    %139 = arith.addf %118, %138 : vector<8x32xf32>
    %140 = vector.broadcast %47 : vector<1x32xf32> to vector<8x32xf32>
    %141 = arith.addf %139, %140 : vector<8x32xf32>
    %142 = arith.addf %1, %141 : vector<8x32xf32>
    %c0_72 = arith.constant 0 : index
    %c0_73 = arith.constant 0 : index
    %c0_74 = arith.constant 0 : index
    %143 = vector.load %arg27[%c0_72, %c0_73, %c0_74] : memref<2x1x32xf32, #tpu.memory_space<vmem>>, vector<1x1x32xf32>
    %144 = vector.shape_cast %143 : vector<1x1x32xf32> to vector<1x32xf32>
    %c0_75 = arith.constant 0 : index
    %c0_76 = arith.constant 0 : index
    %c0_77 = arith.constant 0 : index
    %145 = vector.load %arg28[%c0_75, %c0_76, %c0_77] : memref<2x1x32xf32, #tpu.memory_space<vmem>>, vector<1x1x32xf32>
    %146 = vector.shape_cast %145 : vector<1x1x32xf32> to vector<1x32xf32>
    %cst_78 = arith.constant dense<0.000000e+00> : vector<8xf32>
    %147 = vector.multi_reduction <add>, %142, %cst_78 [1] : vector<8x32xf32> to vector<8xf32>
    %148 = vector.shape_cast %147 : vector<8xf32> to vector<8x1xf32>
    %cst_79 = arith.constant 3.200000e+01 : f32
    %149 = vector.broadcast %cst_79 : f32 to vector<8x1xf32>
    %150 = arith.divf %148, %149 : vector<8x1xf32>
    %151 = vector.broadcast %150 : vector<8x1xf32> to vector<8x32xf32>
    %152 = arith.subf %142, %151 : vector<8x32xf32>
    %153 = arith.mulf %152, %152 : vector<8x32xf32>
    %cst_80 = arith.constant dense<0.000000e+00> : vector<8xf32>
    %154 = vector.multi_reduction <add>, %153, %cst_80 [1] : vector<8x32xf32> to vector<8xf32>
    %155 = vector.shape_cast %154 : vector<8xf32> to vector<8x1xf32>
    %cst_81 = arith.constant 3.200000e+01 : f32
    %156 = vector.broadcast %cst_81 : f32 to vector<8x1xf32>
    %157 = arith.divf %155, %156 : vector<8x1xf32>
    %cst_82 = arith.constant 9.99999997E-7 : f32
    %158 = vector.broadcast %cst_82 : f32 to vector<8x1xf32>
    %159 = arith.addf %157, %158 : vector<8x1xf32>
    %160 = math.rsqrt %159 : vector<8x1xf32>
    %161 = vector.broadcast %160 : vector<8x1xf32> to vector<8x32xf32>
    %162 = arith.mulf %152, %161 : vector<8x32xf32>
    %163 = vector.broadcast %144 : vector<1x32xf32> to vector<8x32xf32>
    %164 = arith.mulf %162, %163 : vector<8x32xf32>
    %165 = vector.broadcast %146 : vector<1x32xf32> to vector<8x32xf32>
    %166 = arith.addf %164, %165 : vector<8x32xf32>
    %c0_83 = arith.constant 0 : index
    %c0_84 = arith.constant 0 : index
    %c0_85 = arith.constant 0 : index
    %167 = vector.load %arg13[%c0_83, %c0_84, %c0_85] : memref<2x32x32xf32, #tpu.memory_space<vmem>>, vector<1x32x32xf32>
    %168 = vector.shape_cast %167 : vector<1x32x32xf32> to vector<32x32xf32>
    %c0_86 = arith.constant 0 : index
    %c0_87 = arith.constant 0 : index
    %c0_88 = arith.constant 0 : index
    %169 = vector.load %arg14[%c0_86, %c0_87, %c0_88] : memref<2x1x32xf32, #tpu.memory_space<vmem>>, vector<1x1x32xf32>
    %170 = vector.shape_cast %169 : vector<1x1x32xf32> to vector<1x32xf32>
    %c0_89 = arith.constant 0 : index
    %c0_90 = arith.constant 0 : index
    %c0_91 = arith.constant 0 : index
    %171 = vector.load %arg15[%c0_89, %c0_90, %c0_91] : memref<2x32x32xf32, #tpu.memory_space<vmem>>, vector<1x32x32xf32>
    %172 = vector.shape_cast %171 : vector<1x32x32xf32> to vector<32x32xf32>
    %c0_92 = arith.constant 0 : index
    %c0_93 = arith.constant 0 : index
    %c0_94 = arith.constant 0 : index
    %173 = vector.load %arg16[%c0_92, %c0_93, %c0_94] : memref<2x1x32xf32, #tpu.memory_space<vmem>>, vector<1x1x32xf32>
    %174 = vector.shape_cast %173 : vector<1x1x32xf32> to vector<1x32xf32>
    %c0_95 = arith.constant 0 : index
    %c0_96 = arith.constant 0 : index
    %c0_97 = arith.constant 0 : index
    %175 = vector.load %arg17[%c0_95, %c0_96, %c0_97] : memref<2x32x32xf32, #tpu.memory_space<vmem>>, vector<1x32x32xf32>
    %176 = vector.shape_cast %175 : vector<1x32x32xf32> to vector<32x32xf32>
    %c0_98 = arith.constant 0 : index
    %c0_99 = arith.constant 0 : index
    %c0_100 = arith.constant 0 : index
    %177 = vector.load %arg18[%c0_98, %c0_99, %c0_100] : memref<2x1x32xf32, #tpu.memory_space<vmem>>, vector<1x1x32xf32>
    %178 = vector.shape_cast %177 : vector<1x1x32xf32> to vector<1x32xf32>
    %c0_101 = arith.constant 0 : index
    %c0_102 = arith.constant 0 : index
    %c0_103 = arith.constant 0 : index
    %179 = vector.load %arg19[%c0_101, %c0_102, %c0_103] : memref<2x32x32xf32, #tpu.memory_space<vmem>>, vector<1x32x32xf32>
    %180 = vector.shape_cast %179 : vector<1x32x32xf32> to vector<32x32xf32>
    %c0_104 = arith.constant 0 : index
    %c0_105 = arith.constant 0 : index
    %c0_106 = arith.constant 0 : index
    %181 = vector.load %arg20[%c0_104, %c0_105, %c0_106] : memref<2x1x32xf32, #tpu.memory_space<vmem>>, vector<1x1x32xf32>
    %182 = vector.shape_cast %181 : vector<1x1x32xf32> to vector<1x32xf32>
    %cst_107 = arith.constant dense<0.000000e+00> : vector<8x32xf32>
    %183 = tpu.matmul %166, %168, %cst_107 {dimension_numbers = #tpu.dot_dimension_numbers<[1], [0], [0], [1], [0, 0, 1, 1], [], []>} : vector<8x32xf32>, vector<32x32xf32>, vector<8x32xf32> -> vector<8x32xf32>
    %184 = vector.broadcast %170 : vector<1x32xf32> to vector<8x32xf32>
    %185 = arith.addf %183, %184 : vector<8x32xf32>
    %cst_108 = arith.constant dense<0.000000e+00> : vector<8x32xf32>
    %186 = tpu.matmul %3, %172, %cst_108 {dimension_numbers = #tpu.dot_dimension_numbers<[1], [0], [0], [1], [0, 0, 1, 1], [], []>} : vector<8x32xf32>, vector<32x32xf32>, vector<8x32xf32> -> vector<8x32xf32>
    %187 = vector.broadcast %174 : vector<1x32xf32> to vector<8x32xf32>
    %188 = arith.addf %186, %187 : vector<8x32xf32>
    %cst_109 = arith.constant dense<0.000000e+00> : vector<8x32xf32>
    %189 = tpu.matmul %3, %176, %cst_109 {dimension_numbers = #tpu.dot_dimension_numbers<[1], [0], [0], [1], [0, 0, 1, 1], [], []>} : vector<8x32xf32>, vector<32x32xf32>, vector<8x32xf32> -> vector<8x32xf32>
    %190 = vector.broadcast %178 : vector<1x32xf32> to vector<8x32xf32>
    %191 = arith.addf %189, %190 : vector<8x32xf32>
    %192 = vector.extract_strided_slice %185 {offsets = [0, 0], sizes = [8, 8], strides = [1, 1]} : vector<8x32xf32> to vector<8x8xf32>
    %193 = vector.extract_strided_slice %188 {offsets = [0, 0], sizes = [8, 8], strides = [1, 1]} : vector<8x32xf32> to vector<8x8xf32>
    %194 = vector.extract_strided_slice %191 {offsets = [0, 0], sizes = [8, 8], strides = [1, 1]} : vector<8x32xf32> to vector<8x8xf32>
    %cst_110 = arith.constant dense<0.000000e+00> : vector<8x8xf32>
    %195 = tpu.matmul %192, %193, %cst_110 {dimension_numbers = #tpu.dot_dimension_numbers<[1], [1], [0], [0], [0, 0, 1, 0], [], []>} : vector<8x8xf32>, vector<8x8xf32>, vector<8x8xf32> -> vector<8x8xf32>
    %cst_111 = arith.constant 0.353553385 : f32
    %196 = vector.broadcast %cst_111 : f32 to vector<8x8xf32>
    %197 = arith.mulf %195, %196 : vector<8x8xf32>
    %198 = arith.addf %197, %7 : vector<8x8xf32>
    %cst_112 = arith.constant dense<0xFF800000> : vector<8xf32>
    %199 = vector.multi_reduction <maximumf>, %198, %cst_112 [1] : vector<8x8xf32> to vector<8xf32>
    %200 = vector.shape_cast %199 : vector<8xf32> to vector<8x1xf32>
    %201 = vector.broadcast %200 : vector<8x1xf32> to vector<8x8xf32>
    %202 = arith.subf %198, %201 : vector<8x8xf32>
    %203 = math.exp %202 : vector<8x8xf32>
    %cst_113 = arith.constant dense<0.000000e+00> : vector<8xf32>
    %204 = vector.multi_reduction <add>, %203, %cst_113 [1] : vector<8x8xf32> to vector<8xf32>
    %205 = vector.shape_cast %204 : vector<8xf32> to vector<8x1xf32>
    %206 = tpu.reciprocal %205 {approx = true} : vector<8x1xf32> -> vector<8x1xf32>
    %207 = vector.broadcast %206 : vector<8x1xf32> to vector<8x8xf32>
    %208 = arith.mulf %203, %207 : vector<8x8xf32>
    %cst_114 = arith.constant dense<0.000000e+00> : vector<8x8xf32>
    %209 = tpu.matmul %208, %194, %cst_114 {dimension_numbers = #tpu.dot_dimension_numbers<[1], [0], [0], [1], [0, 0, 1, 1], [], []>} : vector<8x8xf32>, vector<8x8xf32>, vector<8x8xf32> -> vector<8x8xf32>
    %210 = vector.extract_strided_slice %180 {offsets = [0, 0], sizes = [8, 32], strides = [1, 1]} : vector<32x32xf32> to vector<8x32xf32>
    %cst_115 = arith.constant dense<0.000000e+00> : vector<8x32xf32>
    %211 = tpu.matmul %209, %210, %cst_115 {dimension_numbers = #tpu.dot_dimension_numbers<[1], [0], [0], [1], [0, 0, 1, 1], [], []>} : vector<8x8xf32>, vector<8x32xf32>, vector<8x32xf32> -> vector<8x32xf32>
    %212 = vector.extract_strided_slice %185 {offsets = [0, 8], sizes = [8, 8], strides = [1, 1]} : vector<8x32xf32> to vector<8x8xf32>
    %213 = vector.extract_strided_slice %188 {offsets = [0, 8], sizes = [8, 8], strides = [1, 1]} : vector<8x32xf32> to vector<8x8xf32>
    %214 = vector.extract_strided_slice %191 {offsets = [0, 8], sizes = [8, 8], strides = [1, 1]} : vector<8x32xf32> to vector<8x8xf32>
    %cst_116 = arith.constant dense<0.000000e+00> : vector<8x8xf32>
    %215 = tpu.matmul %212, %213, %cst_116 {dimension_numbers = #tpu.dot_dimension_numbers<[1], [1], [0], [0], [0, 0, 1, 0], [], []>} : vector<8x8xf32>, vector<8x8xf32>, vector<8x8xf32> -> vector<8x8xf32>
    %cst_117 = arith.constant 0.353553385 : f32
    %216 = vector.broadcast %cst_117 : f32 to vector<8x8xf32>
    %217 = arith.mulf %215, %216 : vector<8x8xf32>
    %218 = arith.addf %217, %7 : vector<8x8xf32>
    %cst_118 = arith.constant dense<0xFF800000> : vector<8xf32>
    %219 = vector.multi_reduction <maximumf>, %218, %cst_118 [1] : vector<8x8xf32> to vector<8xf32>
    %220 = vector.shape_cast %219 : vector<8xf32> to vector<8x1xf32>
    %221 = vector.broadcast %220 : vector<8x1xf32> to vector<8x8xf32>
    %222 = arith.subf %218, %221 : vector<8x8xf32>
    %223 = math.exp %222 : vector<8x8xf32>
    %cst_119 = arith.constant dense<0.000000e+00> : vector<8xf32>
    %224 = vector.multi_reduction <add>, %223, %cst_119 [1] : vector<8x8xf32> to vector<8xf32>
    %225 = vector.shape_cast %224 : vector<8xf32> to vector<8x1xf32>
    %226 = tpu.reciprocal %225 {approx = true} : vector<8x1xf32> -> vector<8x1xf32>
    %227 = vector.broadcast %226 : vector<8x1xf32> to vector<8x8xf32>
    %228 = arith.mulf %223, %227 : vector<8x8xf32>
    %cst_120 = arith.constant dense<0.000000e+00> : vector<8x8xf32>
    %229 = tpu.matmul %228, %214, %cst_120 {dimension_numbers = #tpu.dot_dimension_numbers<[1], [0], [0], [1], [0, 0, 1, 1], [], []>} : vector<8x8xf32>, vector<8x8xf32>, vector<8x8xf32> -> vector<8x8xf32>
    %230 = vector.extract_strided_slice %180 {offsets = [8, 0], sizes = [8, 32], strides = [1, 1]} : vector<32x32xf32> to vector<8x32xf32>
    %cst_121 = arith.constant dense<0.000000e+00> : vector<8x32xf32>
    %231 = tpu.matmul %229, %230, %cst_121 {dimension_numbers = #tpu.dot_dimension_numbers<[1], [0], [0], [1], [0, 0, 1, 1], [], []>} : vector<8x8xf32>, vector<8x32xf32>, vector<8x32xf32> -> vector<8x32xf32>
    %232 = arith.addf %211, %231 : vector<8x32xf32>
    %233 = vector.extract_strided_slice %185 {offsets = [0, 16], sizes = [8, 8], strides = [1, 1]} : vector<8x32xf32> to vector<8x8xf32>
    %234 = vector.extract_strided_slice %188 {offsets = [0, 16], sizes = [8, 8], strides = [1, 1]} : vector<8x32xf32> to vector<8x8xf32>
    %235 = vector.extract_strided_slice %191 {offsets = [0, 16], sizes = [8, 8], strides = [1, 1]} : vector<8x32xf32> to vector<8x8xf32>
    %cst_122 = arith.constant dense<0.000000e+00> : vector<8x8xf32>
    %236 = tpu.matmul %233, %234, %cst_122 {dimension_numbers = #tpu.dot_dimension_numbers<[1], [1], [0], [0], [0, 0, 1, 0], [], []>} : vector<8x8xf32>, vector<8x8xf32>, vector<8x8xf32> -> vector<8x8xf32>
    %cst_123 = arith.constant 0.353553385 : f32
    %237 = vector.broadcast %cst_123 : f32 to vector<8x8xf32>
    %238 = arith.mulf %236, %237 : vector<8x8xf32>
    %239 = arith.addf %238, %7 : vector<8x8xf32>
    %cst_124 = arith.constant dense<0xFF800000> : vector<8xf32>
    %240 = vector.multi_reduction <maximumf>, %239, %cst_124 [1] : vector<8x8xf32> to vector<8xf32>
    %241 = vector.shape_cast %240 : vector<8xf32> to vector<8x1xf32>
    %242 = vector.broadcast %241 : vector<8x1xf32> to vector<8x8xf32>
    %243 = arith.subf %239, %242 : vector<8x8xf32>
    %244 = math.exp %243 : vector<8x8xf32>
    %cst_125 = arith.constant dense<0.000000e+00> : vector<8xf32>
    %245 = vector.multi_reduction <add>, %244, %cst_125 [1] : vector<8x8xf32> to vector<8xf32>
    %246 = vector.shape_cast %245 : vector<8xf32> to vector<8x1xf32>
    %247 = tpu.reciprocal %246 {approx = true} : vector<8x1xf32> -> vector<8x1xf32>
    %248 = vector.broadcast %247 : vector<8x1xf32> to vector<8x8xf32>
    %249 = arith.mulf %244, %248 : vector<8x8xf32>
    %cst_126 = arith.constant dense<0.000000e+00> : vector<8x8xf32>
    %250 = tpu.matmul %249, %235, %cst_126 {dimension_numbers = #tpu.dot_dimension_numbers<[1], [0], [0], [1], [0, 0, 1, 1], [], []>} : vector<8x8xf32>, vector<8x8xf32>, vector<8x8xf32> -> vector<8x8xf32>
    %251 = vector.extract_strided_slice %180 {offsets = [16, 0], sizes = [8, 32], strides = [1, 1]} : vector<32x32xf32> to vector<8x32xf32>
    %cst_127 = arith.constant dense<0.000000e+00> : vector<8x32xf32>
    %252 = tpu.matmul %250, %251, %cst_127 {dimension_numbers = #tpu.dot_dimension_numbers<[1], [0], [0], [1], [0, 0, 1, 1], [], []>} : vector<8x8xf32>, vector<8x32xf32>, vector<8x32xf32> -> vector<8x32xf32>
    %253 = arith.addf %232, %252 : vector<8x32xf32>
    %254 = vector.extract_strided_slice %185 {offsets = [0, 24], sizes = [8, 8], strides = [1, 1]} : vector<8x32xf32> to vector<8x8xf32>
    %255 = vector.extract_strided_slice %188 {offsets = [0, 24], sizes = [8, 8], strides = [1, 1]} : vector<8x32xf32> to vector<8x8xf32>
    %256 = vector.extract_strided_slice %191 {offsets = [0, 24], sizes = [8, 8], strides = [1, 1]} : vector<8x32xf32> to vector<8x8xf32>
    %cst_128 = arith.constant dense<0.000000e+00> : vector<8x8xf32>
    %257 = tpu.matmul %254, %255, %cst_128 {dimension_numbers = #tpu.dot_dimension_numbers<[1], [1], [0], [0], [0, 0, 1, 0], [], []>} : vector<8x8xf32>, vector<8x8xf32>, vector<8x8xf32> -> vector<8x8xf32>
    %cst_129 = arith.constant 0.353553385 : f32
    %258 = vector.broadcast %cst_129 : f32 to vector<8x8xf32>
    %259 = arith.mulf %257, %258 : vector<8x8xf32>
    %260 = arith.addf %259, %7 : vector<8x8xf32>
    %cst_130 = arith.constant dense<0xFF800000> : vector<8xf32>
    %261 = vector.multi_reduction <maximumf>, %260, %cst_130 [1] : vector<8x8xf32> to vector<8xf32>
    %262 = vector.shape_cast %261 : vector<8xf32> to vector<8x1xf32>
    %263 = vector.broadcast %262 : vector<8x1xf32> to vector<8x8xf32>
    %264 = arith.subf %260, %263 : vector<8x8xf32>
    %265 = math.exp %264 : vector<8x8xf32>
    %cst_131 = arith.constant dense<0.000000e+00> : vector<8xf32>
    %266 = vector.multi_reduction <add>, %265, %cst_131 [1] : vector<8x8xf32> to vector<8xf32>
    %267 = vector.shape_cast %266 : vector<8xf32> to vector<8x1xf32>
    %268 = tpu.reciprocal %267 {approx = true} : vector<8x1xf32> -> vector<8x1xf32>
    %269 = vector.broadcast %268 : vector<8x1xf32> to vector<8x8xf32>
    %270 = arith.mulf %265, %269 : vector<8x8xf32>
    %cst_132 = arith.constant dense<0.000000e+00> : vector<8x8xf32>
    %271 = tpu.matmul %270, %256, %cst_132 {dimension_numbers = #tpu.dot_dimension_numbers<[1], [0], [0], [1], [0, 0, 1, 1], [], []>} : vector<8x8xf32>, vector<8x8xf32>, vector<8x8xf32> -> vector<8x8xf32>
    %272 = vector.extract_strided_slice %180 {offsets = [24, 0], sizes = [8, 32], strides = [1, 1]} : vector<32x32xf32> to vector<8x32xf32>
    %cst_133 = arith.constant dense<0.000000e+00> : vector<8x32xf32>
    %273 = tpu.matmul %271, %272, %cst_133 {dimension_numbers = #tpu.dot_dimension_numbers<[1], [0], [0], [1], [0, 0, 1, 1], [], []>} : vector<8x8xf32>, vector<8x32xf32>, vector<8x32xf32> -> vector<8x32xf32>
    %274 = arith.addf %253, %273 : vector<8x32xf32>
    %275 = vector.broadcast %182 : vector<1x32xf32> to vector<8x32xf32>
    %276 = arith.addf %274, %275 : vector<8x32xf32>
    %277 = arith.addf %142, %276 : vector<8x32xf32>
    %c0_134 = arith.constant 0 : index
    %c0_135 = arith.constant 0 : index
    %c0_136 = arith.constant 0 : index
    %278 = vector.load %arg29[%c0_134, %c0_135, %c0_136] : memref<2x1x32xf32, #tpu.memory_space<vmem>>, vector<1x1x32xf32>
    %279 = vector.shape_cast %278 : vector<1x1x32xf32> to vector<1x32xf32>
    %c0_137 = arith.constant 0 : index
    %c0_138 = arith.constant 0 : index
    %c0_139 = arith.constant 0 : index
    %280 = vector.load %arg30[%c0_137, %c0_138, %c0_139] : memref<2x1x32xf32, #tpu.memory_space<vmem>>, vector<1x1x32xf32>
    %281 = vector.shape_cast %280 : vector<1x1x32xf32> to vector<1x32xf32>
    %cst_140 = arith.constant dense<0.000000e+00> : vector<8xf32>
    %282 = vector.multi_reduction <add>, %277, %cst_140 [1] : vector<8x32xf32> to vector<8xf32>
    %283 = vector.shape_cast %282 : vector<8xf32> to vector<8x1xf32>
    %cst_141 = arith.constant 3.200000e+01 : f32
    %284 = vector.broadcast %cst_141 : f32 to vector<8x1xf32>
    %285 = arith.divf %283, %284 : vector<8x1xf32>
    %286 = vector.broadcast %285 : vector<8x1xf32> to vector<8x32xf32>
    %287 = arith.subf %277, %286 : vector<8x32xf32>
    %288 = arith.mulf %287, %287 : vector<8x32xf32>
    %cst_142 = arith.constant dense<0.000000e+00> : vector<8xf32>
    %289 = vector.multi_reduction <add>, %288, %cst_142 [1] : vector<8x32xf32> to vector<8xf32>
    %290 = vector.shape_cast %289 : vector<8xf32> to vector<8x1xf32>
    %cst_143 = arith.constant 3.200000e+01 : f32
    %291 = vector.broadcast %cst_143 : f32 to vector<8x1xf32>
    %292 = arith.divf %290, %291 : vector<8x1xf32>
    %cst_144 = arith.constant 9.99999997E-7 : f32
    %293 = vector.broadcast %cst_144 : f32 to vector<8x1xf32>
    %294 = arith.addf %292, %293 : vector<8x1xf32>
    %295 = math.rsqrt %294 : vector<8x1xf32>
    %296 = vector.broadcast %295 : vector<8x1xf32> to vector<8x32xf32>
    %297 = arith.mulf %287, %296 : vector<8x32xf32>
    %298 = vector.broadcast %279 : vector<1x32xf32> to vector<8x32xf32>
    %299 = arith.mulf %297, %298 : vector<8x32xf32>
    %300 = vector.broadcast %281 : vector<1x32xf32> to vector<8x32xf32>
    %301 = arith.addf %299, %300 : vector<8x32xf32>
    %c0_145 = arith.constant 0 : index
    %c0_146 = arith.constant 0 : index
    %c0_147 = arith.constant 0 : index
    %302 = vector.load %arg21[%c0_145, %c0_146, %c0_147] : memref<2x32x64xf32, #tpu.memory_space<vmem>>, vector<1x32x64xf32>
    %303 = vector.shape_cast %302 : vector<1x32x64xf32> to vector<32x64xf32>
    %c0_148 = arith.constant 0 : index
    %c0_149 = arith.constant 0 : index
    %c0_150 = arith.constant 0 : index
    %304 = vector.load %arg22[%c0_148, %c0_149, %c0_150] : memref<2x1x64xf32, #tpu.memory_space<vmem>>, vector<1x1x64xf32>
    %305 = vector.shape_cast %304 : vector<1x1x64xf32> to vector<1x64xf32>
    %c0_151 = arith.constant 0 : index
    %c0_152 = arith.constant 0 : index
    %c0_153 = arith.constant 0 : index
    %306 = vector.load %arg23[%c0_151, %c0_152, %c0_153] : memref<2x64x32xf32, #tpu.memory_space<vmem>>, vector<1x64x32xf32>
    %307 = vector.shape_cast %306 : vector<1x64x32xf32> to vector<64x32xf32>
    %c0_154 = arith.constant 0 : index
    %c0_155 = arith.constant 0 : index
    %c0_156 = arith.constant 0 : index
    %308 = vector.load %arg24[%c0_154, %c0_155, %c0_156] : memref<2x1x32xf32, #tpu.memory_space<vmem>>, vector<1x1x32xf32>
    %309 = vector.shape_cast %308 : vector<1x1x32xf32> to vector<1x32xf32>
    %cst_157 = arith.constant dense<0.000000e+00> : vector<8x64xf32>
    %310 = tpu.matmul %301, %303, %cst_157 {dimension_numbers = #tpu.dot_dimension_numbers<[1], [0], [0], [1], [0, 0, 1, 1], [], []>} : vector<8x32xf32>, vector<32x64xf32>, vector<8x64xf32> -> vector<8x64xf32>
    %311 = vector.broadcast %305 : vector<1x64xf32> to vector<8x64xf32>
    %312 = arith.addf %310, %311 : vector<8x64xf32>
    %cst_158 = arith.constant 0.000000e+00 : f32
    %313 = vector.broadcast %cst_158 : f32 to vector<8x64xf32>
    %314 = arith.maximumf %312, %313 : vector<8x64xf32>
    %cst_159 = arith.constant dense<0.000000e+00> : vector<8x32xf32>
    %315 = tpu.matmul %314, %307, %cst_159 {dimension_numbers = #tpu.dot_dimension_numbers<[1], [0], [0], [1], [0, 0, 1, 1], [], []>} : vector<8x64xf32>, vector<64x32xf32>, vector<8x32xf32> -> vector<8x32xf32>
    %316 = vector.broadcast %309 : vector<1x32xf32> to vector<8x32xf32>
    %317 = arith.addf %315, %316 : vector<8x32xf32>
    %318 = arith.addf %277, %317 : vector<8x32xf32>
    %c1 = arith.constant 1 : index
    %c0_160 = arith.constant 0 : index
    %c0_161 = arith.constant 0 : index
    %319 = vector.load %arg25[%c1, %c0_160, %c0_161] : memref<2x1x32xf32, #tpu.memory_space<vmem>>, vector<1x1x32xf32>
    %320 = vector.shape_cast %319 : vector<1x1x32xf32> to vector<1x32xf32>
    %c1_162 = arith.constant 1 : index
    %c0_163 = arith.constant 0 : index
    %c0_164 = arith.constant 0 : index
    %321 = vector.load %arg26[%c1_162, %c0_163, %c0_164] : memref<2x1x32xf32, #tpu.memory_space<vmem>>, vector<1x1x32xf32>
    %322 = vector.shape_cast %321 : vector<1x1x32xf32> to vector<1x32xf32>
    %cst_165 = arith.constant dense<0.000000e+00> : vector<8xf32>
    %323 = vector.multi_reduction <add>, %318, %cst_165 [1] : vector<8x32xf32> to vector<8xf32>
    %324 = vector.shape_cast %323 : vector<8xf32> to vector<8x1xf32>
    %cst_166 = arith.constant 3.200000e+01 : f32
    %325 = vector.broadcast %cst_166 : f32 to vector<8x1xf32>
    %326 = arith.divf %324, %325 : vector<8x1xf32>
    %327 = vector.broadcast %326 : vector<8x1xf32> to vector<8x32xf32>
    %328 = arith.subf %318, %327 : vector<8x32xf32>
    %329 = arith.mulf %328, %328 : vector<8x32xf32>
    %cst_167 = arith.constant dense<0.000000e+00> : vector<8xf32>
    %330 = vector.multi_reduction <add>, %329, %cst_167 [1] : vector<8x32xf32> to vector<8xf32>
    %331 = vector.shape_cast %330 : vector<8xf32> to vector<8x1xf32>
    %cst_168 = arith.constant 3.200000e+01 : f32
    %332 = vector.broadcast %cst_168 : f32 to vector<8x1xf32>
    %333 = arith.divf %331, %332 : vector<8x1xf32>
    %cst_169 = arith.constant 9.99999997E-7 : f32
    %334 = vector.broadcast %cst_169 : f32 to vector<8x1xf32>
    %335 = arith.addf %333, %334 : vector<8x1xf32>
    %336 = math.rsqrt %335 : vector<8x1xf32>
    %337 = vector.broadcast %336 : vector<8x1xf32> to vector<8x32xf32>
    %338 = arith.mulf %328, %337 : vector<8x32xf32>
    %339 = vector.broadcast %320 : vector<1x32xf32> to vector<8x32xf32>
    %340 = arith.mulf %338, %339 : vector<8x32xf32>
    %341 = vector.broadcast %322 : vector<1x32xf32> to vector<8x32xf32>
    %342 = arith.addf %340, %341 : vector<8x32xf32>
    %c1_170 = arith.constant 1 : index
    %c0_171 = arith.constant 0 : index
    %c0_172 = arith.constant 0 : index
    %343 = vector.load %arg5[%c1_170, %c0_171, %c0_172] : memref<2x32x32xf32, #tpu.memory_space<vmem>>, vector<1x32x32xf32>
    %344 = vector.shape_cast %343 : vector<1x32x32xf32> to vector<32x32xf32>
    %c1_173 = arith.constant 1 : index
    %c0_174 = arith.constant 0 : index
    %c0_175 = arith.constant 0 : index
    %345 = vector.load %arg6[%c1_173, %c0_174, %c0_175] : memref<2x1x32xf32, #tpu.memory_space<vmem>>, vector<1x1x32xf32>
    %346 = vector.shape_cast %345 : vector<1x1x32xf32> to vector<1x32xf32>
    %c1_176 = arith.constant 1 : index
    %c0_177 = arith.constant 0 : index
    %c0_178 = arith.constant 0 : index
    %347 = vector.load %arg7[%c1_176, %c0_177, %c0_178] : memref<2x32x32xf32, #tpu.memory_space<vmem>>, vector<1x32x32xf32>
    %348 = vector.shape_cast %347 : vector<1x32x32xf32> to vector<32x32xf32>
    %c1_179 = arith.constant 1 : index
    %c0_180 = arith.constant 0 : index
    %c0_181 = arith.constant 0 : index
    %349 = vector.load %arg8[%c1_179, %c0_180, %c0_181] : memref<2x1x32xf32, #tpu.memory_space<vmem>>, vector<1x1x32xf32>
    %350 = vector.shape_cast %349 : vector<1x1x32xf32> to vector<1x32xf32>
    %c1_182 = arith.constant 1 : index
    %c0_183 = arith.constant 0 : index
    %c0_184 = arith.constant 0 : index
    %351 = vector.load %arg9[%c1_182, %c0_183, %c0_184] : memref<2x32x32xf32, #tpu.memory_space<vmem>>, vector<1x32x32xf32>
    %352 = vector.shape_cast %351 : vector<1x32x32xf32> to vector<32x32xf32>
    %c1_185 = arith.constant 1 : index
    %c0_186 = arith.constant 0 : index
    %c0_187 = arith.constant 0 : index
    %353 = vector.load %arg10[%c1_185, %c0_186, %c0_187] : memref<2x1x32xf32, #tpu.memory_space<vmem>>, vector<1x1x32xf32>
    %354 = vector.shape_cast %353 : vector<1x1x32xf32> to vector<1x32xf32>
    %c1_188 = arith.constant 1 : index
    %c0_189 = arith.constant 0 : index
    %c0_190 = arith.constant 0 : index
    %355 = vector.load %arg11[%c1_188, %c0_189, %c0_190] : memref<2x32x32xf32, #tpu.memory_space<vmem>>, vector<1x32x32xf32>
    %356 = vector.shape_cast %355 : vector<1x32x32xf32> to vector<32x32xf32>
    %c1_191 = arith.constant 1 : index
    %c0_192 = arith.constant 0 : index
    %c0_193 = arith.constant 0 : index
    %357 = vector.load %arg12[%c1_191, %c0_192, %c0_193] : memref<2x1x32xf32, #tpu.memory_space<vmem>>, vector<1x1x32xf32>
    %358 = vector.shape_cast %357 : vector<1x1x32xf32> to vector<1x32xf32>
    %cst_194 = arith.constant dense<0.000000e+00> : vector<8x32xf32>
    %359 = tpu.matmul %342, %344, %cst_194 {dimension_numbers = #tpu.dot_dimension_numbers<[1], [0], [0], [1], [0, 0, 1, 1], [], []>} : vector<8x32xf32>, vector<32x32xf32>, vector<8x32xf32> -> vector<8x32xf32>
    %360 = vector.broadcast %346 : vector<1x32xf32> to vector<8x32xf32>
    %361 = arith.addf %359, %360 : vector<8x32xf32>
    %cst_195 = arith.constant dense<0.000000e+00> : vector<8x32xf32>
    %362 = tpu.matmul %342, %348, %cst_195 {dimension_numbers = #tpu.dot_dimension_numbers<[1], [0], [0], [1], [0, 0, 1, 1], [], []>} : vector<8x32xf32>, vector<32x32xf32>, vector<8x32xf32> -> vector<8x32xf32>
    %363 = vector.broadcast %350 : vector<1x32xf32> to vector<8x32xf32>
    %364 = arith.addf %362, %363 : vector<8x32xf32>
    %cst_196 = arith.constant dense<0.000000e+00> : vector<8x32xf32>
    %365 = tpu.matmul %342, %352, %cst_196 {dimension_numbers = #tpu.dot_dimension_numbers<[1], [0], [0], [1], [0, 0, 1, 1], [], []>} : vector<8x32xf32>, vector<32x32xf32>, vector<8x32xf32> -> vector<8x32xf32>
    %366 = vector.broadcast %354 : vector<1x32xf32> to vector<8x32xf32>
    %367 = arith.addf %365, %366 : vector<8x32xf32>
    %368 = vector.extract_strided_slice %361 {offsets = [0, 0], sizes = [8, 8], strides = [1, 1]} : vector<8x32xf32> to vector<8x8xf32>
    %369 = vector.extract_strided_slice %364 {offsets = [0, 0], sizes = [8, 8], strides = [1, 1]} : vector<8x32xf32> to vector<8x8xf32>
    %370 = vector.extract_strided_slice %367 {offsets = [0, 0], sizes = [8, 8], strides = [1, 1]} : vector<8x32xf32> to vector<8x8xf32>
    %cst_197 = arith.constant dense<0.000000e+00> : vector<8x8xf32>
    %371 = tpu.matmul %368, %369, %cst_197 {dimension_numbers = #tpu.dot_dimension_numbers<[1], [1], [0], [0], [0, 0, 1, 0], [], []>} : vector<8x8xf32>, vector<8x8xf32>, vector<8x8xf32> -> vector<8x8xf32>
    %cst_198 = arith.constant 0.353553385 : f32
    %372 = vector.broadcast %cst_198 : f32 to vector<8x8xf32>
    %373 = arith.mulf %371, %372 : vector<8x8xf32>
    %374 = arith.addf %373, %5 : vector<8x8xf32>
    %cst_199 = arith.constant dense<0xFF800000> : vector<8xf32>
    %375 = vector.multi_reduction <maximumf>, %374, %cst_199 [1] : vector<8x8xf32> to vector<8xf32>
    %376 = vector.shape_cast %375 : vector<8xf32> to vector<8x1xf32>
    %377 = vector.broadcast %376 : vector<8x1xf32> to vector<8x8xf32>
    %378 = arith.subf %374, %377 : vector<8x8xf32>
    %379 = math.exp %378 : vector<8x8xf32>
    %cst_200 = arith.constant dense<0.000000e+00> : vector<8xf32>
    %380 = vector.multi_reduction <add>, %379, %cst_200 [1] : vector<8x8xf32> to vector<8xf32>
    %381 = vector.shape_cast %380 : vector<8xf32> to vector<8x1xf32>
    %382 = tpu.reciprocal %381 {approx = true} : vector<8x1xf32> -> vector<8x1xf32>
    %383 = vector.broadcast %382 : vector<8x1xf32> to vector<8x8xf32>
    %384 = arith.mulf %379, %383 : vector<8x8xf32>
    %cst_201 = arith.constant dense<0.000000e+00> : vector<8x8xf32>
    %385 = tpu.matmul %384, %370, %cst_201 {dimension_numbers = #tpu.dot_dimension_numbers<[1], [0], [0], [1], [0, 0, 1, 1], [], []>} : vector<8x8xf32>, vector<8x8xf32>, vector<8x8xf32> -> vector<8x8xf32>
    %386 = vector.extract_strided_slice %356 {offsets = [0, 0], sizes = [8, 32], strides = [1, 1]} : vector<32x32xf32> to vector<8x32xf32>
    %cst_202 = arith.constant dense<0.000000e+00> : vector<8x32xf32>
    %387 = tpu.matmul %385, %386, %cst_202 {dimension_numbers = #tpu.dot_dimension_numbers<[1], [0], [0], [1], [0, 0, 1, 1], [], []>} : vector<8x8xf32>, vector<8x32xf32>, vector<8x32xf32> -> vector<8x32xf32>
    %388 = vector.extract_strided_slice %361 {offsets = [0, 8], sizes = [8, 8], strides = [1, 1]} : vector<8x32xf32> to vector<8x8xf32>
    %389 = vector.extract_strided_slice %364 {offsets = [0, 8], sizes = [8, 8], strides = [1, 1]} : vector<8x32xf32> to vector<8x8xf32>
    %390 = vector.extract_strided_slice %367 {offsets = [0, 8], sizes = [8, 8], strides = [1, 1]} : vector<8x32xf32> to vector<8x8xf32>
    %cst_203 = arith.constant dense<0.000000e+00> : vector<8x8xf32>
    %391 = tpu.matmul %388, %389, %cst_203 {dimension_numbers = #tpu.dot_dimension_numbers<[1], [1], [0], [0], [0, 0, 1, 0], [], []>} : vector<8x8xf32>, vector<8x8xf32>, vector<8x8xf32> -> vector<8x8xf32>
    %cst_204 = arith.constant 0.353553385 : f32
    %392 = vector.broadcast %cst_204 : f32 to vector<8x8xf32>
    %393 = arith.mulf %391, %392 : vector<8x8xf32>
    %394 = arith.addf %393, %5 : vector<8x8xf32>
    %cst_205 = arith.constant dense<0xFF800000> : vector<8xf32>
    %395 = vector.multi_reduction <maximumf>, %394, %cst_205 [1] : vector<8x8xf32> to vector<8xf32>
    %396 = vector.shape_cast %395 : vector<8xf32> to vector<8x1xf32>
    %397 = vector.broadcast %396 : vector<8x1xf32> to vector<8x8xf32>
    %398 = arith.subf %394, %397 : vector<8x8xf32>
    %399 = math.exp %398 : vector<8x8xf32>
    %cst_206 = arith.constant dense<0.000000e+00> : vector<8xf32>
    %400 = vector.multi_reduction <add>, %399, %cst_206 [1] : vector<8x8xf32> to vector<8xf32>
    %401 = vector.shape_cast %400 : vector<8xf32> to vector<8x1xf32>
    %402 = tpu.reciprocal %401 {approx = true} : vector<8x1xf32> -> vector<8x1xf32>
    %403 = vector.broadcast %402 : vector<8x1xf32> to vector<8x8xf32>
    %404 = arith.mulf %399, %403 : vector<8x8xf32>
    %cst_207 = arith.constant dense<0.000000e+00> : vector<8x8xf32>
    %405 = tpu.matmul %404, %390, %cst_207 {dimension_numbers = #tpu.dot_dimension_numbers<[1], [0], [0], [1], [0, 0, 1, 1], [], []>} : vector<8x8xf32>, vector<8x8xf32>, vector<8x8xf32> -> vector<8x8xf32>
    %406 = vector.extract_strided_slice %356 {offsets = [8, 0], sizes = [8, 32], strides = [1, 1]} : vector<32x32xf32> to vector<8x32xf32>
    %cst_208 = arith.constant dense<0.000000e+00> : vector<8x32xf32>
    %407 = tpu.matmul %405, %406, %cst_208 {dimension_numbers = #tpu.dot_dimension_numbers<[1], [0], [0], [1], [0, 0, 1, 1], [], []>} : vector<8x8xf32>, vector<8x32xf32>, vector<8x32xf32> -> vector<8x32xf32>
    %408 = arith.addf %387, %407 : vector<8x32xf32>
    %409 = vector.extract_strided_slice %361 {offsets = [0, 16], sizes = [8, 8], strides = [1, 1]} : vector<8x32xf32> to vector<8x8xf32>
    %410 = vector.extract_strided_slice %364 {offsets = [0, 16], sizes = [8, 8], strides = [1, 1]} : vector<8x32xf32> to vector<8x8xf32>
    %411 = vector.extract_strided_slice %367 {offsets = [0, 16], sizes = [8, 8], strides = [1, 1]} : vector<8x32xf32> to vector<8x8xf32>
    %cst_209 = arith.constant dense<0.000000e+00> : vector<8x8xf32>
    %412 = tpu.matmul %409, %410, %cst_209 {dimension_numbers = #tpu.dot_dimension_numbers<[1], [1], [0], [0], [0, 0, 1, 0], [], []>} : vector<8x8xf32>, vector<8x8xf32>, vector<8x8xf32> -> vector<8x8xf32>
    %cst_210 = arith.constant 0.353553385 : f32
    %413 = vector.broadcast %cst_210 : f32 to vector<8x8xf32>
    %414 = arith.mulf %412, %413 : vector<8x8xf32>
    %415 = arith.addf %414, %5 : vector<8x8xf32>
    %cst_211 = arith.constant dense<0xFF800000> : vector<8xf32>
    %416 = vector.multi_reduction <maximumf>, %415, %cst_211 [1] : vector<8x8xf32> to vector<8xf32>
    %417 = vector.shape_cast %416 : vector<8xf32> to vector<8x1xf32>
    %418 = vector.broadcast %417 : vector<8x1xf32> to vector<8x8xf32>
    %419 = arith.subf %415, %418 : vector<8x8xf32>
    %420 = math.exp %419 : vector<8x8xf32>
    %cst_212 = arith.constant dense<0.000000e+00> : vector<8xf32>
    %421 = vector.multi_reduction <add>, %420, %cst_212 [1] : vector<8x8xf32> to vector<8xf32>
    %422 = vector.shape_cast %421 : vector<8xf32> to vector<8x1xf32>
    %423 = tpu.reciprocal %422 {approx = true} : vector<8x1xf32> -> vector<8x1xf32>
    %424 = vector.broadcast %423 : vector<8x1xf32> to vector<8x8xf32>
    %425 = arith.mulf %420, %424 : vector<8x8xf32>
    %cst_213 = arith.constant dense<0.000000e+00> : vector<8x8xf32>
    %426 = tpu.matmul %425, %411, %cst_213 {dimension_numbers = #tpu.dot_dimension_numbers<[1], [0], [0], [1], [0, 0, 1, 1], [], []>} : vector<8x8xf32>, vector<8x8xf32>, vector<8x8xf32> -> vector<8x8xf32>
    %427 = vector.extract_strided_slice %356 {offsets = [16, 0], sizes = [8, 32], strides = [1, 1]} : vector<32x32xf32> to vector<8x32xf32>
    %cst_214 = arith.constant dense<0.000000e+00> : vector<8x32xf32>
    %428 = tpu.matmul %426, %427, %cst_214 {dimension_numbers = #tpu.dot_dimension_numbers<[1], [0], [0], [1], [0, 0, 1, 1], [], []>} : vector<8x8xf32>, vector<8x32xf32>, vector<8x32xf32> -> vector<8x32xf32>
    %429 = arith.addf %408, %428 : vector<8x32xf32>
    %430 = vector.extract_strided_slice %361 {offsets = [0, 24], sizes = [8, 8], strides = [1, 1]} : vector<8x32xf32> to vector<8x8xf32>
    %431 = vector.extract_strided_slice %364 {offsets = [0, 24], sizes = [8, 8], strides = [1, 1]} : vector<8x32xf32> to vector<8x8xf32>
    %432 = vector.extract_strided_slice %367 {offsets = [0, 24], sizes = [8, 8], strides = [1, 1]} : vector<8x32xf32> to vector<8x8xf32>
    %cst_215 = arith.constant dense<0.000000e+00> : vector<8x8xf32>
    %433 = tpu.matmul %430, %431, %cst_215 {dimension_numbers = #tpu.dot_dimension_numbers<[1], [1], [0], [0], [0, 0, 1, 0], [], []>} : vector<8x8xf32>, vector<8x8xf32>, vector<8x8xf32> -> vector<8x8xf32>
    %cst_216 = arith.constant 0.353553385 : f32
    %434 = vector.broadcast %cst_216 : f32 to vector<8x8xf32>
    %435 = arith.mulf %433, %434 : vector<8x8xf32>
    %436 = arith.addf %435, %5 : vector<8x8xf32>
    %cst_217 = arith.constant dense<0xFF800000> : vector<8xf32>
    %437 = vector.multi_reduction <maximumf>, %436, %cst_217 [1] : vector<8x8xf32> to vector<8xf32>
    %438 = vector.shape_cast %437 : vector<8xf32> to vector<8x1xf32>
    %439 = vector.broadcast %438 : vector<8x1xf32> to vector<8x8xf32>
    %440 = arith.subf %436, %439 : vector<8x8xf32>
    %441 = math.exp %440 : vector<8x8xf32>
    %cst_218 = arith.constant dense<0.000000e+00> : vector<8xf32>
    %442 = vector.multi_reduction <add>, %441, %cst_218 [1] : vector<8x8xf32> to vector<8xf32>
    %443 = vector.shape_cast %442 : vector<8xf32> to vector<8x1xf32>
    %444 = tpu.reciprocal %443 {approx = true} : vector<8x1xf32> -> vector<8x1xf32>
    %445 = vector.broadcast %444 : vector<8x1xf32> to vector<8x8xf32>
    %446 = arith.mulf %441, %445 : vector<8x8xf32>
    %cst_219 = arith.constant dense<0.000000e+00> : vector<8x8xf32>
    %447 = tpu.matmul %446, %432, %cst_219 {dimension_numbers = #tpu.dot_dimension_numbers<[1], [0], [0], [1], [0, 0, 1, 1], [], []>} : vector<8x8xf32>, vector<8x8xf32>, vector<8x8xf32> -> vector<8x8xf32>
    %448 = vector.extract_strided_slice %356 {offsets = [24, 0], sizes = [8, 32], strides = [1, 1]} : vector<32x32xf32> to vector<8x32xf32>
    %cst_220 = arith.constant dense<0.000000e+00> : vector<8x32xf32>
    %449 = tpu.matmul %447, %448, %cst_220 {dimension_numbers = #tpu.dot_dimension_numbers<[1], [0], [0], [1], [0, 0, 1, 1], [], []>} : vector<8x8xf32>, vector<8x32xf32>, vector<8x32xf32> -> vector<8x32xf32>
    %450 = arith.addf %429, %449 : vector<8x32xf32>
    %451 = vector.broadcast %358 : vector<1x32xf32> to vector<8x32xf32>
    %452 = arith.addf %450, %451 : vector<8x32xf32>
    %453 = arith.addf %318, %452 : vector<8x32xf32>
    %c1_221 = arith.constant 1 : index
    %c0_222 = arith.constant 0 : index
    %c0_223 = arith.constant 0 : index
    %454 = vector.load %arg27[%c1_221, %c0_222, %c0_223] : memref<2x1x32xf32, #tpu.memory_space<vmem>>, vector<1x1x32xf32>
    %455 = vector.shape_cast %454 : vector<1x1x32xf32> to vector<1x32xf32>
    %c1_224 = arith.constant 1 : index
    %c0_225 = arith.constant 0 : index
    %c0_226 = arith.constant 0 : index
    %456 = vector.load %arg28[%c1_224, %c0_225, %c0_226] : memref<2x1x32xf32, #tpu.memory_space<vmem>>, vector<1x1x32xf32>
    %457 = vector.shape_cast %456 : vector<1x1x32xf32> to vector<1x32xf32>
    %cst_227 = arith.constant dense<0.000000e+00> : vector<8xf32>
    %458 = vector.multi_reduction <add>, %453, %cst_227 [1] : vector<8x32xf32> to vector<8xf32>
    %459 = vector.shape_cast %458 : vector<8xf32> to vector<8x1xf32>
    %cst_228 = arith.constant 3.200000e+01 : f32
    %460 = vector.broadcast %cst_228 : f32 to vector<8x1xf32>
    %461 = arith.divf %459, %460 : vector<8x1xf32>
    %462 = vector.broadcast %461 : vector<8x1xf32> to vector<8x32xf32>
    %463 = arith.subf %453, %462 : vector<8x32xf32>
    %464 = arith.mulf %463, %463 : vector<8x32xf32>
    %cst_229 = arith.constant dense<0.000000e+00> : vector<8xf32>
    %465 = vector.multi_reduction <add>, %464, %cst_229 [1] : vector<8x32xf32> to vector<8xf32>
    %466 = vector.shape_cast %465 : vector<8xf32> to vector<8x1xf32>
    %cst_230 = arith.constant 3.200000e+01 : f32
    %467 = vector.broadcast %cst_230 : f32 to vector<8x1xf32>
    %468 = arith.divf %466, %467 : vector<8x1xf32>
    %cst_231 = arith.constant 9.99999997E-7 : f32
    %469 = vector.broadcast %cst_231 : f32 to vector<8x1xf32>
    %470 = arith.addf %468, %469 : vector<8x1xf32>
    %471 = math.rsqrt %470 : vector<8x1xf32>
    %472 = vector.broadcast %471 : vector<8x1xf32> to vector<8x32xf32>
    %473 = arith.mulf %463, %472 : vector<8x32xf32>
    %474 = vector.broadcast %455 : vector<1x32xf32> to vector<8x32xf32>
    %475 = arith.mulf %473, %474 : vector<8x32xf32>
    %476 = vector.broadcast %457 : vector<1x32xf32> to vector<8x32xf32>
    %477 = arith.addf %475, %476 : vector<8x32xf32>
    %c1_232 = arith.constant 1 : index
    %c0_233 = arith.constant 0 : index
    %c0_234 = arith.constant 0 : index
    %478 = vector.load %arg13[%c1_232, %c0_233, %c0_234] : memref<2x32x32xf32, #tpu.memory_space<vmem>>, vector<1x32x32xf32>
    %479 = vector.shape_cast %478 : vector<1x32x32xf32> to vector<32x32xf32>
    %c1_235 = arith.constant 1 : index
    %c0_236 = arith.constant 0 : index
    %c0_237 = arith.constant 0 : index
    %480 = vector.load %arg14[%c1_235, %c0_236, %c0_237] : memref<2x1x32xf32, #tpu.memory_space<vmem>>, vector<1x1x32xf32>
    %481 = vector.shape_cast %480 : vector<1x1x32xf32> to vector<1x32xf32>
    %c1_238 = arith.constant 1 : index
    %c0_239 = arith.constant 0 : index
    %c0_240 = arith.constant 0 : index
    %482 = vector.load %arg15[%c1_238, %c0_239, %c0_240] : memref<2x32x32xf32, #tpu.memory_space<vmem>>, vector<1x32x32xf32>
    %483 = vector.shape_cast %482 : vector<1x32x32xf32> to vector<32x32xf32>
    %c1_241 = arith.constant 1 : index
    %c0_242 = arith.constant 0 : index
    %c0_243 = arith.constant 0 : index
    %484 = vector.load %arg16[%c1_241, %c0_242, %c0_243] : memref<2x1x32xf32, #tpu.memory_space<vmem>>, vector<1x1x32xf32>
    %485 = vector.shape_cast %484 : vector<1x1x32xf32> to vector<1x32xf32>
    %c1_244 = arith.constant 1 : index
    %c0_245 = arith.constant 0 : index
    %c0_246 = arith.constant 0 : index
    %486 = vector.load %arg17[%c1_244, %c0_245, %c0_246] : memref<2x32x32xf32, #tpu.memory_space<vmem>>, vector<1x32x32xf32>
    %487 = vector.shape_cast %486 : vector<1x32x32xf32> to vector<32x32xf32>
    %c1_247 = arith.constant 1 : index
    %c0_248 = arith.constant 0 : index
    %c0_249 = arith.constant 0 : index
    %488 = vector.load %arg18[%c1_247, %c0_248, %c0_249] : memref<2x1x32xf32, #tpu.memory_space<vmem>>, vector<1x1x32xf32>
    %489 = vector.shape_cast %488 : vector<1x1x32xf32> to vector<1x32xf32>
    %c1_250 = arith.constant 1 : index
    %c0_251 = arith.constant 0 : index
    %c0_252 = arith.constant 0 : index
    %490 = vector.load %arg19[%c1_250, %c0_251, %c0_252] : memref<2x32x32xf32, #tpu.memory_space<vmem>>, vector<1x32x32xf32>
    %491 = vector.shape_cast %490 : vector<1x32x32xf32> to vector<32x32xf32>
    %c1_253 = arith.constant 1 : index
    %c0_254 = arith.constant 0 : index
    %c0_255 = arith.constant 0 : index
    %492 = vector.load %arg20[%c1_253, %c0_254, %c0_255] : memref<2x1x32xf32, #tpu.memory_space<vmem>>, vector<1x1x32xf32>
    %493 = vector.shape_cast %492 : vector<1x1x32xf32> to vector<1x32xf32>
    %cst_256 = arith.constant dense<0.000000e+00> : vector<8x32xf32>
    %494 = tpu.matmul %477, %479, %cst_256 {dimension_numbers = #tpu.dot_dimension_numbers<[1], [0], [0], [1], [0, 0, 1, 1], [], []>} : vector<8x32xf32>, vector<32x32xf32>, vector<8x32xf32> -> vector<8x32xf32>
    %495 = vector.broadcast %481 : vector<1x32xf32> to vector<8x32xf32>
    %496 = arith.addf %494, %495 : vector<8x32xf32>
    %cst_257 = arith.constant dense<0.000000e+00> : vector<8x32xf32>
    %497 = tpu.matmul %3, %483, %cst_257 {dimension_numbers = #tpu.dot_dimension_numbers<[1], [0], [0], [1], [0, 0, 1, 1], [], []>} : vector<8x32xf32>, vector<32x32xf32>, vector<8x32xf32> -> vector<8x32xf32>
    %498 = vector.broadcast %485 : vector<1x32xf32> to vector<8x32xf32>
    %499 = arith.addf %497, %498 : vector<8x32xf32>
    %cst_258 = arith.constant dense<0.000000e+00> : vector<8x32xf32>
    %500 = tpu.matmul %3, %487, %cst_258 {dimension_numbers = #tpu.dot_dimension_numbers<[1], [0], [0], [1], [0, 0, 1, 1], [], []>} : vector<8x32xf32>, vector<32x32xf32>, vector<8x32xf32> -> vector<8x32xf32>
    %501 = vector.broadcast %489 : vector<1x32xf32> to vector<8x32xf32>
    %502 = arith.addf %500, %501 : vector<8x32xf32>
    %503 = vector.extract_strided_slice %496 {offsets = [0, 0], sizes = [8, 8], strides = [1, 1]} : vector<8x32xf32> to vector<8x8xf32>
    %504 = vector.extract_strided_slice %499 {offsets = [0, 0], sizes = [8, 8], strides = [1, 1]} : vector<8x32xf32> to vector<8x8xf32>
    %505 = vector.extract_strided_slice %502 {offsets = [0, 0], sizes = [8, 8], strides = [1, 1]} : vector<8x32xf32> to vector<8x8xf32>
    %cst_259 = arith.constant dense<0.000000e+00> : vector<8x8xf32>
    %506 = tpu.matmul %503, %504, %cst_259 {dimension_numbers = #tpu.dot_dimension_numbers<[1], [1], [0], [0], [0, 0, 1, 0], [], []>} : vector<8x8xf32>, vector<8x8xf32>, vector<8x8xf32> -> vector<8x8xf32>
    %cst_260 = arith.constant 0.353553385 : f32
    %507 = vector.broadcast %cst_260 : f32 to vector<8x8xf32>
    %508 = arith.mulf %506, %507 : vector<8x8xf32>
    %509 = arith.addf %508, %7 : vector<8x8xf32>
    %cst_261 = arith.constant dense<0xFF800000> : vector<8xf32>
    %510 = vector.multi_reduction <maximumf>, %509, %cst_261 [1] : vector<8x8xf32> to vector<8xf32>
    %511 = vector.shape_cast %510 : vector<8xf32> to vector<8x1xf32>
    %512 = vector.broadcast %511 : vector<8x1xf32> to vector<8x8xf32>
    %513 = arith.subf %509, %512 : vector<8x8xf32>
    %514 = math.exp %513 : vector<8x8xf32>
    %cst_262 = arith.constant dense<0.000000e+00> : vector<8xf32>
    %515 = vector.multi_reduction <add>, %514, %cst_262 [1] : vector<8x8xf32> to vector<8xf32>
    %516 = vector.shape_cast %515 : vector<8xf32> to vector<8x1xf32>
    %517 = tpu.reciprocal %516 {approx = true} : vector<8x1xf32> -> vector<8x1xf32>
    %518 = vector.broadcast %517 : vector<8x1xf32> to vector<8x8xf32>
    %519 = arith.mulf %514, %518 : vector<8x8xf32>
    %cst_263 = arith.constant dense<0.000000e+00> : vector<8x8xf32>
    %520 = tpu.matmul %519, %505, %cst_263 {dimension_numbers = #tpu.dot_dimension_numbers<[1], [0], [0], [1], [0, 0, 1, 1], [], []>} : vector<8x8xf32>, vector<8x8xf32>, vector<8x8xf32> -> vector<8x8xf32>
    %521 = vector.extract_strided_slice %491 {offsets = [0, 0], sizes = [8, 32], strides = [1, 1]} : vector<32x32xf32> to vector<8x32xf32>
    %cst_264 = arith.constant dense<0.000000e+00> : vector<8x32xf32>
    %522 = tpu.matmul %520, %521, %cst_264 {dimension_numbers = #tpu.dot_dimension_numbers<[1], [0], [0], [1], [0, 0, 1, 1], [], []>} : vector<8x8xf32>, vector<8x32xf32>, vector<8x32xf32> -> vector<8x32xf32>
    %523 = vector.extract_strided_slice %496 {offsets = [0, 8], sizes = [8, 8], strides = [1, 1]} : vector<8x32xf32> to vector<8x8xf32>
    %524 = vector.extract_strided_slice %499 {offsets = [0, 8], sizes = [8, 8], strides = [1, 1]} : vector<8x32xf32> to vector<8x8xf32>
    %525 = vector.extract_strided_slice %502 {offsets = [0, 8], sizes = [8, 8], strides = [1, 1]} : vector<8x32xf32> to vector<8x8xf32>
    %cst_265 = arith.constant dense<0.000000e+00> : vector<8x8xf32>
    %526 = tpu.matmul %523, %524, %cst_265 {dimension_numbers = #tpu.dot_dimension_numbers<[1], [1], [0], [0], [0, 0, 1, 0], [], []>} : vector<8x8xf32>, vector<8x8xf32>, vector<8x8xf32> -> vector<8x8xf32>
    %cst_266 = arith.constant 0.353553385 : f32
    %527 = vector.broadcast %cst_266 : f32 to vector<8x8xf32>
    %528 = arith.mulf %526, %527 : vector<8x8xf32>
    %529 = arith.addf %528, %7 : vector<8x8xf32>
    %cst_267 = arith.constant dense<0xFF800000> : vector<8xf32>
    %530 = vector.multi_reduction <maximumf>, %529, %cst_267 [1] : vector<8x8xf32> to vector<8xf32>
    %531 = vector.shape_cast %530 : vector<8xf32> to vector<8x1xf32>
    %532 = vector.broadcast %531 : vector<8x1xf32> to vector<8x8xf32>
    %533 = arith.subf %529, %532 : vector<8x8xf32>
    %534 = math.exp %533 : vector<8x8xf32>
    %cst_268 = arith.constant dense<0.000000e+00> : vector<8xf32>
    %535 = vector.multi_reduction <add>, %534, %cst_268 [1] : vector<8x8xf32> to vector<8xf32>
    %536 = vector.shape_cast %535 : vector<8xf32> to vector<8x1xf32>
    %537 = tpu.reciprocal %536 {approx = true} : vector<8x1xf32> -> vector<8x1xf32>
    %538 = vector.broadcast %537 : vector<8x1xf32> to vector<8x8xf32>
    %539 = arith.mulf %534, %538 : vector<8x8xf32>
    %cst_269 = arith.constant dense<0.000000e+00> : vector<8x8xf32>
    %540 = tpu.matmul %539, %525, %cst_269 {dimension_numbers = #tpu.dot_dimension_numbers<[1], [0], [0], [1], [0, 0, 1, 1], [], []>} : vector<8x8xf32>, vector<8x8xf32>, vector<8x8xf32> -> vector<8x8xf32>
    %541 = vector.extract_strided_slice %491 {offsets = [8, 0], sizes = [8, 32], strides = [1, 1]} : vector<32x32xf32> to vector<8x32xf32>
    %cst_270 = arith.constant dense<0.000000e+00> : vector<8x32xf32>
    %542 = tpu.matmul %540, %541, %cst_270 {dimension_numbers = #tpu.dot_dimension_numbers<[1], [0], [0], [1], [0, 0, 1, 1], [], []>} : vector<8x8xf32>, vector<8x32xf32>, vector<8x32xf32> -> vector<8x32xf32>
    %543 = arith.addf %522, %542 : vector<8x32xf32>
    %544 = vector.extract_strided_slice %496 {offsets = [0, 16], sizes = [8, 8], strides = [1, 1]} : vector<8x32xf32> to vector<8x8xf32>
    %545 = vector.extract_strided_slice %499 {offsets = [0, 16], sizes = [8, 8], strides = [1, 1]} : vector<8x32xf32> to vector<8x8xf32>
    %546 = vector.extract_strided_slice %502 {offsets = [0, 16], sizes = [8, 8], strides = [1, 1]} : vector<8x32xf32> to vector<8x8xf32>
    %cst_271 = arith.constant dense<0.000000e+00> : vector<8x8xf32>
    %547 = tpu.matmul %544, %545, %cst_271 {dimension_numbers = #tpu.dot_dimension_numbers<[1], [1], [0], [0], [0, 0, 1, 0], [], []>} : vector<8x8xf32>, vector<8x8xf32>, vector<8x8xf32> -> vector<8x8xf32>
    %cst_272 = arith.constant 0.353553385 : f32
    %548 = vector.broadcast %cst_272 : f32 to vector<8x8xf32>
    %549 = arith.mulf %547, %548 : vector<8x8xf32>
    %550 = arith.addf %549, %7 : vector<8x8xf32>
    %cst_273 = arith.constant dense<0xFF800000> : vector<8xf32>
    %551 = vector.multi_reduction <maximumf>, %550, %cst_273 [1] : vector<8x8xf32> to vector<8xf32>
    %552 = vector.shape_cast %551 : vector<8xf32> to vector<8x1xf32>
    %553 = vector.broadcast %552 : vector<8x1xf32> to vector<8x8xf32>
    %554 = arith.subf %550, %553 : vector<8x8xf32>
    %555 = math.exp %554 : vector<8x8xf32>
    %cst_274 = arith.constant dense<0.000000e+00> : vector<8xf32>
    %556 = vector.multi_reduction <add>, %555, %cst_274 [1] : vector<8x8xf32> to vector<8xf32>
    %557 = vector.shape_cast %556 : vector<8xf32> to vector<8x1xf32>
    %558 = tpu.reciprocal %557 {approx = true} : vector<8x1xf32> -> vector<8x1xf32>
    %559 = vector.broadcast %558 : vector<8x1xf32> to vector<8x8xf32>
    %560 = arith.mulf %555, %559 : vector<8x8xf32>
    %cst_275 = arith.constant dense<0.000000e+00> : vector<8x8xf32>
    %561 = tpu.matmul %560, %546, %cst_275 {dimension_numbers = #tpu.dot_dimension_numbers<[1], [0], [0], [1], [0, 0, 1, 1], [], []>} : vector<8x8xf32>, vector<8x8xf32>, vector<8x8xf32> -> vector<8x8xf32>
    %562 = vector.extract_strided_slice %491 {offsets = [16, 0], sizes = [8, 32], strides = [1, 1]} : vector<32x32xf32> to vector<8x32xf32>
    %cst_276 = arith.constant dense<0.000000e+00> : vector<8x32xf32>
    %563 = tpu.matmul %561, %562, %cst_276 {dimension_numbers = #tpu.dot_dimension_numbers<[1], [0], [0], [1], [0, 0, 1, 1], [], []>} : vector<8x8xf32>, vector<8x32xf32>, vector<8x32xf32> -> vector<8x32xf32>
    %564 = arith.addf %543, %563 : vector<8x32xf32>
    %565 = vector.extract_strided_slice %496 {offsets = [0, 24], sizes = [8, 8], strides = [1, 1]} : vector<8x32xf32> to vector<8x8xf32>
    %566 = vector.extract_strided_slice %499 {offsets = [0, 24], sizes = [8, 8], strides = [1, 1]} : vector<8x32xf32> to vector<8x8xf32>
    %567 = vector.extract_strided_slice %502 {offsets = [0, 24], sizes = [8, 8], strides = [1, 1]} : vector<8x32xf32> to vector<8x8xf32>
    %cst_277 = arith.constant dense<0.000000e+00> : vector<8x8xf32>
    %568 = tpu.matmul %565, %566, %cst_277 {dimension_numbers = #tpu.dot_dimension_numbers<[1], [1], [0], [0], [0, 0, 1, 0], [], []>} : vector<8x8xf32>, vector<8x8xf32>, vector<8x8xf32> -> vector<8x8xf32>
    %cst_278 = arith.constant 0.353553385 : f32
    %569 = vector.broadcast %cst_278 : f32 to vector<8x8xf32>
    %570 = arith.mulf %568, %569 : vector<8x8xf32>
    %571 = arith.addf %570, %7 : vector<8x8xf32>
    %cst_279 = arith.constant dense<0xFF800000> : vector<8xf32>
    %572 = vector.multi_reduction <maximumf>, %571, %cst_279 [1] : vector<8x8xf32> to vector<8xf32>
    %573 = vector.shape_cast %572 : vector<8xf32> to vector<8x1xf32>
    %574 = vector.broadcast %573 : vector<8x1xf32> to vector<8x8xf32>
    %575 = arith.subf %571, %574 : vector<8x8xf32>
    %576 = math.exp %575 : vector<8x8xf32>
    %cst_280 = arith.constant dense<0.000000e+00> : vector<8xf32>
    %577 = vector.multi_reduction <add>, %576, %cst_280 [1] : vector<8x8xf32> to vector<8xf32>
    %578 = vector.shape_cast %577 : vector<8xf32> to vector<8x1xf32>
    %579 = tpu.reciprocal %578 {approx = true} : vector<8x1xf32> -> vector<8x1xf32>
    %580 = vector.broadcast %579 : vector<8x1xf32> to vector<8x8xf32>
    %581 = arith.mulf %576, %580 : vector<8x8xf32>
    %cst_281 = arith.constant dense<0.000000e+00> : vector<8x8xf32>
    %582 = tpu.matmul %581, %567, %cst_281 {dimension_numbers = #tpu.dot_dimension_numbers<[1], [0], [0], [1], [0, 0, 1, 1], [], []>} : vector<8x8xf32>, vector<8x8xf32>, vector<8x8xf32> -> vector<8x8xf32>
    %583 = vector.extract_strided_slice %491 {offsets = [24, 0], sizes = [8, 32], strides = [1, 1]} : vector<32x32xf32> to vector<8x32xf32>
    %cst_282 = arith.constant dense<0.000000e+00> : vector<8x32xf32>
    %584 = tpu.matmul %582, %583, %cst_282 {dimension_numbers = #tpu.dot_dimension_numbers<[1], [0], [0], [1], [0, 0, 1, 1], [], []>} : vector<8x8xf32>, vector<8x32xf32>, vector<8x32xf32> -> vector<8x32xf32>
    %585 = arith.addf %564, %584 : vector<8x32xf32>
    %586 = vector.broadcast %493 : vector<1x32xf32> to vector<8x32xf32>
    %587 = arith.addf %585, %586 : vector<8x32xf32>
    %588 = arith.addf %453, %587 : vector<8x32xf32>
    %c1_283 = arith.constant 1 : index
    %c0_284 = arith.constant 0 : index
    %c0_285 = arith.constant 0 : index
    %589 = vector.load %arg29[%c1_283, %c0_284, %c0_285] : memref<2x1x32xf32, #tpu.memory_space<vmem>>, vector<1x1x32xf32>
    %590 = vector.shape_cast %589 : vector<1x1x32xf32> to vector<1x32xf32>
    %c1_286 = arith.constant 1 : index
    %c0_287 = arith.constant 0 : index
    %c0_288 = arith.constant 0 : index
    %591 = vector.load %arg30[%c1_286, %c0_287, %c0_288] : memref<2x1x32xf32, #tpu.memory_space<vmem>>, vector<1x1x32xf32>
    %592 = vector.shape_cast %591 : vector<1x1x32xf32> to vector<1x32xf32>
    %cst_289 = arith.constant dense<0.000000e+00> : vector<8xf32>
    %593 = vector.multi_reduction <add>, %588, %cst_289 [1] : vector<8x32xf32> to vector<8xf32>
    %594 = vector.shape_cast %593 : vector<8xf32> to vector<8x1xf32>
    %cst_290 = arith.constant 3.200000e+01 : f32
    %595 = vector.broadcast %cst_290 : f32 to vector<8x1xf32>
    %596 = arith.divf %594, %595 : vector<8x1xf32>
    %597 = vector.broadcast %596 : vector<8x1xf32> to vector<8x32xf32>
    %598 = arith.subf %588, %597 : vector<8x32xf32>
    %599 = arith.mulf %598, %598 : vector<8x32xf32>
    %cst_291 = arith.constant dense<0.000000e+00> : vector<8xf32>
    %600 = vector.multi_reduction <add>, %599, %cst_291 [1] : vector<8x32xf32> to vector<8xf32>
    %601 = vector.shape_cast %600 : vector<8xf32> to vector<8x1xf32>
    %cst_292 = arith.constant 3.200000e+01 : f32
    %602 = vector.broadcast %cst_292 : f32 to vector<8x1xf32>
    %603 = arith.divf %601, %602 : vector<8x1xf32>
    %cst_293 = arith.constant 9.99999997E-7 : f32
    %604 = vector.broadcast %cst_293 : f32 to vector<8x1xf32>
    %605 = arith.addf %603, %604 : vector<8x1xf32>
    %606 = math.rsqrt %605 : vector<8x1xf32>
    %607 = vector.broadcast %606 : vector<8x1xf32> to vector<8x32xf32>
    %608 = arith.mulf %598, %607 : vector<8x32xf32>
    %609 = vector.broadcast %590 : vector<1x32xf32> to vector<8x32xf32>
    %610 = arith.mulf %608, %609 : vector<8x32xf32>
    %611 = vector.broadcast %592 : vector<1x32xf32> to vector<8x32xf32>
    %612 = arith.addf %610, %611 : vector<8x32xf32>
    %c1_294 = arith.constant 1 : index
    %c0_295 = arith.constant 0 : index
    %c0_296 = arith.constant 0 : index
    %613 = vector.load %arg21[%c1_294, %c0_295, %c0_296] : memref<2x32x64xf32, #tpu.memory_space<vmem>>, vector<1x32x64xf32>
    %614 = vector.shape_cast %613 : vector<1x32x64xf32> to vector<32x64xf32>
    %c1_297 = arith.constant 1 : index
    %c0_298 = arith.constant 0 : index
    %c0_299 = arith.constant 0 : index
    %615 = vector.load %arg22[%c1_297, %c0_298, %c0_299] : memref<2x1x64xf32, #tpu.memory_space<vmem>>, vector<1x1x64xf32>
    %616 = vector.shape_cast %615 : vector<1x1x64xf32> to vector<1x64xf32>
    %c1_300 = arith.constant 1 : index
    %c0_301 = arith.constant 0 : index
    %c0_302 = arith.constant 0 : index
    %617 = vector.load %arg23[%c1_300, %c0_301, %c0_302] : memref<2x64x32xf32, #tpu.memory_space<vmem>>, vector<1x64x32xf32>
    %618 = vector.shape_cast %617 : vector<1x64x32xf32> to vector<64x32xf32>
    %c1_303 = arith.constant 1 : index
    %c0_304 = arith.constant 0 : index
    %c0_305 = arith.constant 0 : index
    %619 = vector.load %arg24[%c1_303, %c0_304, %c0_305] : memref<2x1x32xf32, #tpu.memory_space<vmem>>, vector<1x1x32xf32>
    %620 = vector.shape_cast %619 : vector<1x1x32xf32> to vector<1x32xf32>
    %cst_306 = arith.constant dense<0.000000e+00> : vector<8x64xf32>
    %621 = tpu.matmul %612, %614, %cst_306 {dimension_numbers = #tpu.dot_dimension_numbers<[1], [0], [0], [1], [0, 0, 1, 1], [], []>} : vector<8x32xf32>, vector<32x64xf32>, vector<8x64xf32> -> vector<8x64xf32>
    %622 = vector.broadcast %616 : vector<1x64xf32> to vector<8x64xf32>
    %623 = arith.addf %621, %622 : vector<8x64xf32>
    %cst_307 = arith.constant 0.000000e+00 : f32
    %624 = vector.broadcast %cst_307 : f32 to vector<8x64xf32>
    %625 = arith.maximumf %623, %624 : vector<8x64xf32>
    %cst_308 = arith.constant dense<0.000000e+00> : vector<8x32xf32>
    %626 = tpu.matmul %625, %618, %cst_308 {dimension_numbers = #tpu.dot_dimension_numbers<[1], [0], [0], [1], [0, 0, 1, 1], [], []>} : vector<8x64xf32>, vector<64x32xf32>, vector<8x32xf32> -> vector<8x32xf32>
    %627 = vector.broadcast %620 : vector<1x32xf32> to vector<8x32xf32>
    %628 = arith.addf %626, %627 : vector<8x32xf32>
    %629 = arith.addf %588, %628 : vector<8x32xf32>
    %c0_309 = arith.constant 0 : index
    %c0_310 = arith.constant 0 : index
    %630 = vector.load %arg31[%c0_309, %c0_310] : memref<1x32xf32, #tpu.memory_space<vmem>>, vector<1x32xf32>
    %c0_311 = arith.constant 0 : index
    %c0_312 = arith.constant 0 : index
    %631 = vector.load %arg32[%c0_311, %c0_312] : memref<1x32xf32, #tpu.memory_space<vmem>>, vector<1x32xf32>
    %cst_313 = arith.constant dense<0.000000e+00> : vector<8xf32>
    %632 = vector.multi_reduction <add>, %629, %cst_313 [1] : vector<8x32xf32> to vector<8xf32>
    %633 = vector.shape_cast %632 : vector<8xf32> to vector<8x1xf32>
    %cst_314 = arith.constant 3.200000e+01 : f32
    %634 = vector.broadcast %cst_314 : f32 to vector<8x1xf32>
    %635 = arith.divf %633, %634 : vector<8x1xf32>
    %636 = vector.broadcast %635 : vector<8x1xf32> to vector<8x32xf32>
    %637 = arith.subf %629, %636 : vector<8x32xf32>
    %638 = arith.mulf %637, %637 : vector<8x32xf32>
    %cst_315 = arith.constant dense<0.000000e+00> : vector<8xf32>
    %639 = vector.multi_reduction <add>, %638, %cst_315 [1] : vector<8x32xf32> to vector<8xf32>
    %640 = vector.shape_cast %639 : vector<8xf32> to vector<8x1xf32>
    %cst_316 = arith.constant 3.200000e+01 : f32
    %641 = vector.broadcast %cst_316 : f32 to vector<8x1xf32>
    %642 = arith.divf %640, %641 : vector<8x1xf32>
    %cst_317 = arith.constant 9.99999997E-7 : f32
    %643 = vector.broadcast %cst_317 : f32 to vector<8x1xf32>
    %644 = arith.addf %642, %643 : vector<8x1xf32>
    %645 = math.rsqrt %644 : vector<8x1xf32>
    %646 = vector.broadcast %645 : vector<8x1xf32> to vector<8x32xf32>
    %647 = arith.mulf %637, %646 : vector<8x32xf32>
    %648 = vector.broadcast %630 : vector<1x32xf32> to vector<8x32xf32>
    %649 = arith.mulf %647, %648 : vector<8x32xf32>
    %650 = vector.broadcast %631 : vector<1x32xf32> to vector<8x32xf32>
    %651 = arith.addf %649, %650 : vector<8x32xf32>
    %c0_318 = arith.constant 0 : index
    %c0_319 = arith.constant 0 : index
    %c0_320 = arith.constant 0 : index
    %652 = vector.load %arg33[%c0_318, %c0_319, %c0_320] : memref<1x8x32xf32, #tpu.memory_space<vmem>>, vector<1x8x32xf32>
    %653 = vector.shape_cast %652 : vector<1x8x32xf32> to vector<8x32xf32>
    %654 = vector.shape_cast %651 : vector<8x32xf32> to vector<1x8x32xf32>
    tpu.vector_store %arg33[%c0_318, %c0_319, %c0_320], %654 {strides = array<i32>} : memref<1x8x32xf32, #tpu.memory_space<vmem>>, vector<1x8x32xf32>,
    return
  }
  func.func @transform_0(%arg0: i32) -> (i32, i32, i32) {
    %c0_i32 = arith.constant 0 : i32
    %c0_i32_0 = arith.constant 0 : i32
    %c0_i32_1 = arith.constant 0 : i32
    return %arg0, %c0_i32, %c0_i32_0 : i32, i32, i32
  }
  func.func @transform_1(%arg0: i32) -> (i32, i32, i32) {
    %c0_i32 = arith.constant 0 : i32
    %c0_i32_0 = arith.constant 0 : i32
    %c0_i32_1 = arith.constant 0 : i32
    return %arg0, %c0_i32, %c0_i32_0 : i32, i32, i32
  }
  func.func @transform_2(%arg0: i32) -> (i32, i32, i32) {
    %c0_i32 = arith.constant 0 : i32
    %c0_i32_0 = arith.constant 0 : i32
    %c0_i32_1 = arith.constant 0 : i32
    return %arg0, %c0_i32, %c0_i32_0 : i32, i32, i32
  }
  func.func @transform_3(%arg0: i32) -> (i32, i32, i32) {
    %c0_i32 = arith.constant 0 : i32
    %c0_i32_0 = arith.constant 0 : i32
    %c0_i32_1 = arith.constant 0 : i32
    return %arg0, %c0_i32, %c0_i32_0 : i32, i32, i32
  }
  func.func @transform_4(%arg0: i32) -> (i32, i32, i32) {
    %c0_i32 = arith.constant 0 : i32
    %c0_i32_0 = arith.constant 0 : i32
    %c0_i32_1 = arith.constant 0 : i32
    %c0_i32_2 = arith.constant 0 : i32
    return %c0_i32, %c0_i32_0, %c0_i32_1 : i32, i32, i32
  }
  func.func @transform_5(%arg0: i32) -> (i32, i32, i32) {
    %c0_i32 = arith.constant 0 : i32
    %c0_i32_0 = arith.constant 0 : i32
    %c0_i32_1 = arith.constant 0 : i32
    %c0_i32_2 = arith.constant 0 : i32
    return %c0_i32, %c0_i32_0, %c0_i32_1 : i32, i32, i32
  }
  func.func @transform_6(%arg0: i32) -> (i32, i32, i32) {
    %c0_i32 = arith.constant 0 : i32
    %c0_i32_0 = arith.constant 0 : i32
    %c0_i32_1 = arith.constant 0 : i32
    %c0_i32_2 = arith.constant 0 : i32
    return %c0_i32, %c0_i32_0, %c0_i32_1 : i32, i32, i32
  }
  func.func @transform_7(%arg0: i32) -> (i32, i32, i32) {
    %c0_i32 = arith.constant 0 : i32
    %c0_i32_0 = arith.constant 0 : i32
    %c0_i32_1 = arith.constant 0 : i32
    %c0_i32_2 = arith.constant 0 : i32
    return %c0_i32, %c0_i32_0, %c0_i32_1 : i32, i32, i32
  }
  func.func @transform_8(%arg0: i32) -> (i32, i32, i32) {
    %c0_i32 = arith.constant 0 : i32
    %c0_i32_0 = arith.constant 0 : i32
    %c0_i32_1 = arith.constant 0 : i32
    %c0_i32_2 = arith.constant 0 : i32
    return %c0_i32, %c0_i32_0, %c0_i32_1 : i32, i32, i32
  }
  func.func @transform_9(%arg0: i32) -> (i32, i32, i32) {
    %c0_i32 = arith.constant 0 : i32
    %c0_i32_0 = arith.constant 0 : i32
    %c0_i32_1 = arith.constant 0 : i32
    %c0_i32_2 = arith.constant 0 : i32
    return %c0_i32, %c0_i32_0, %c0_i32_1 : i32, i32, i32
  }
  func.func @transform_10(%arg0: i32) -> (i32, i32, i32) {
    %c0_i32 = arith.constant 0 : i32
    %c0_i32_0 = arith.constant 0 : i32
    %c0_i32_1 = arith.constant 0 : i32
    %c0_i32_2 = arith.constant 0 : i32
    return %c0_i32, %c0_i32_0, %c0_i32_1 : i32, i32, i32
  }
  func.func @transform_11(%arg0: i32) -> (i32, i32, i32) {
    %c0_i32 = arith.constant 0 : i32
    %c0_i32_0 = arith.constant 0 : i32
    %c0_i32_1 = arith.constant 0 : i32
    %c0_i32_2 = arith.constant 0 : i32
    return %c0_i32, %c0_i32_0, %c0_i32_1 : i32, i32, i32
  }
  func.func @transform_12(%arg0: i32) -> (i32, i32, i32) {
    %c0_i32 = arith.constant 0 : i32
    %c0_i32_0 = arith.constant 0 : i32
    %c0_i32_1 = arith.constant 0 : i32
    %c0_i32_2 = arith.constant 0 : i32
    return %c0_i32, %c0_i32_0, %c0_i32_1 : i32, i32, i32
  }
  func.func @transform_13(%arg0: i32) -> (i32, i32, i32) {
    %c0_i32 = arith.constant 0 : i32
    %c0_i32_0 = arith.constant 0 : i32
    %c0_i32_1 = arith.constant 0 : i32
    %c0_i32_2 = arith.constant 0 : i32
    return %c0_i32, %c0_i32_0, %c0_i32_1 : i32, i32, i32
  }
  func.func @transform_14(%arg0: i32) -> (i32, i32, i32) {
    %c0_i32 = arith.constant 0 : i32
    %c0_i32_0 = arith.constant 0 : i32
    %c0_i32_1 = arith.constant 0 : i32
    %c0_i32_2 = arith.constant 0 : i32
    return %c0_i32, %c0_i32_0, %c0_i32_1 : i32, i32, i32
  }
  func.func @transform_15(%arg0: i32) -> (i32, i32, i32) {
    %c0_i32 = arith.constant 0 : i32
    %c0_i32_0 = arith.constant 0 : i32
    %c0_i32_1 = arith.constant 0 : i32
    %c0_i32_2 = arith.constant 0 : i32
    return %c0_i32, %c0_i32_0, %c0_i32_1 : i32, i32, i32
  }
  func.func @transform_16(%arg0: i32) -> (i32, i32, i32) {
    %c0_i32 = arith.constant 0 : i32
    %c0_i32_0 = arith.constant 0 : i32
    %c0_i32_1 = arith.constant 0 : i32
    %c0_i32_2 = arith.constant 0 : i32
    return %c0_i32, %c0_i32_0, %c0_i32_1 : i32, i32, i32
  }
  func.func @transform_17(%arg0: i32) -> (i32, i32, i32) {
    %c0_i32 = arith.constant 0 : i32
    %c0_i32_0 = arith.constant 0 : i32
    %c0_i32_1 = arith.constant 0 : i32
    %c0_i32_2 = arith.constant 0 : i32
    return %c0_i32, %c0_i32_0, %c0_i32_1 : i32, i32, i32
  }
  func.func @transform_18(%arg0: i32) -> (i32, i32, i32) {
    %c0_i32 = arith.constant 0 : i32
    %c0_i32_0 = arith.constant 0 : i32
    %c0_i32_1 = arith.constant 0 : i32
    %c0_i32_2 = arith.constant 0 : i32
    return %c0_i32, %c0_i32_0, %c0_i32_1 : i32, i32, i32
  }
  func.func @transform_19(%arg0: i32) -> (i32, i32, i32) {
    %c0_i32 = arith.constant 0 : i32
    %c0_i32_0 = arith.constant 0 : i32
    %c0_i32_1 = arith.constant 0 : i32
    %c0_i32_2 = arith.constant 0 : i32
    return %c0_i32, %c0_i32_0, %c0_i32_1 : i32, i32, i32
  }
  func.func @transform_20(%arg0: i32) -> (i32, i32, i32) {
    %c0_i32 = arith.constant 0 : i32
    %c0_i32_0 = arith.constant 0 : i32
    %c0_i32_1 = arith.constant 0 : i32
    %c0_i32_2 = arith.constant 0 : i32
    return %c0_i32, %c0_i32_0, %c0_i32_1 : i32, i32, i32
  }
  func.func @transform_21(%arg0: i32) -> (i32, i32, i32) {
    %c0_i32 = arith.constant 0 : i32
    %c0_i32_0 = arith.constant 0 : i32
    %c0_i32_1 = arith.constant 0 : i32
    %c0_i32_2 = arith.constant 0 : i32
    return %c0_i32, %c0_i32_0, %c0_i32_1 : i32, i32, i32
  }
  func.func @transform_22(%arg0: i32) -> (i32, i32, i32) {
    %c0_i32 = arith.constant 0 : i32
    %c0_i32_0 = arith.constant 0 : i32
    %c0_i32_1 = arith.constant 0 : i32
    %c0_i32_2 = arith.constant 0 : i32
    return %c0_i32, %c0_i32_0, %c0_i32_1 : i32, i32, i32
  }
  func.func @transform_23(%arg0: i32) -> (i32, i32, i32) {
    %c0_i32 = arith.constant 0 : i32
    %c0_i32_0 = arith.constant 0 : i32
    %c0_i32_1 = arith.constant 0 : i32
    %c0_i32_2 = arith.constant 0 : i32
    return %c0_i32, %c0_i32_0, %c0_i32_1 : i32, i32, i32
  }
  func.func @transform_24(%arg0: i32) -> (i32, i32, i32) {
    %c0_i32 = arith.constant 0 : i32
    %c0_i32_0 = arith.constant 0 : i32
    %c0_i32_1 = arith.constant 0 : i32
    %c0_i32_2 = arith.constant 0 : i32
    return %c0_i32, %c0_i32_0, %c0_i32_1 : i32, i32, i32
  }
  func.func @transform_25(%arg0: i32) -> (i32, i32, i32) {
    %c0_i32 = arith.constant 0 : i32
    %c0_i32_0 = arith.constant 0 : i32
    %c0_i32_1 = arith.constant 0 : i32
    %c0_i32_2 = arith.constant 0 : i32
    return %c0_i32, %c0_i32_0, %c0_i32_1 : i32, i32, i32
  }
  func.func @transform_26(%arg0: i32) -> (i32, i32, i32) {
    %c0_i32 = arith.constant 0 : i32
    %c0_i32_0 = arith.constant 0 : i32
    %c0_i32_1 = arith.constant 0 : i32
    %c0_i32_2 = arith.constant 0 : i32
    return %c0_i32, %c0_i32_0, %c0_i32_1 : i32, i32, i32
  }
  func.func @transform_27(%arg0: i32) -> (i32, i32, i32) {
    %c0_i32 = arith.constant 0 : i32
    %c0_i32_0 = arith.constant 0 : i32
    %c0_i32_1 = arith.constant 0 : i32
    %c0_i32_2 = arith.constant 0 : i32
    return %c0_i32, %c0_i32_0, %c0_i32_1 : i32, i32, i32
  }
  func.func @transform_28(%arg0: i32) -> (i32, i32, i32) {
    %c0_i32 = arith.constant 0 : i32
    %c0_i32_0 = arith.constant 0 : i32
    %c0_i32_1 = arith.constant 0 : i32
    %c0_i32_2 = arith.constant 0 : i32
    return %c0_i32, %c0_i32_0, %c0_i32_1 : i32, i32, i32
  }
  func.func @transform_29(%arg0: i32) -> (i32, i32, i32) {
    %c0_i32 = arith.constant 0 : i32
    %c0_i32_0 = arith.constant 0 : i32
    %c0_i32_1 = arith.constant 0 : i32
    %c0_i32_2 = arith.constant 0 : i32
    return %c0_i32, %c0_i32_0, %c0_i32_1 : i32, i32, i32
  }
  func.func @transform_30(%arg0: i32) -> (i32, i32) {
    %c0_i32 = arith.constant 0 : i32
    %c0_i32_0 = arith.constant 0 : i32
    %c0_i32_1 = arith.constant 0 : i32
    return %c0_i32, %c0_i32_0 : i32, i32
  }
  func.func @transform_31(%arg0: i32) -> (i32, i32) {
    %c0_i32 = arith.constant 0 : i32
    %c0_i32_0 = arith.constant 0 : i32
    %c0_i32_1 = arith.constant 0 : i32
    return %c0_i32, %c0_i32_0 : i32, i32
  }
  func.func @transform_32(%arg0: i32) -> (i32, i32, i32) {
    %c0_i32 = arith.constant 0 : i32
    %c0_i32_0 = arith.constant 0 : i32
    %c0_i32_1 = arith.constant 0 : i32
    return %arg0, %c0_i32, %c0_i32_0 : i32, i32, i32
  }
}

</mosaic_0001>

<bundles_post_ra>
// kernel: encoder_decoder_forward.2
= control target key start
LH: loop header
LB: loop body
LE: loop exit
PB: predicated region body
PF: predicated region fallthrough
CT: control target
= control target key end

     0   :  { %s3460_s0 = inlined_call_operand.vmem [shape: f32[2,8,32], index: 0, kind: input, shape index: {}]   ;;  %s3461_s1 = inlined_call_operand.vmem [shape: f32[2,8,8], index: 1, kind: input, shape index: {}]   ;;  %s3462_s2 = inlined_call_operand.vmem [shape: f32[2,32,32], index: 2, kind: input, shape index: {}]   ;;  %s3463_s3 = inlined_call_operand.vmem [shape: f32[2,1,32], index: 3, kind: input, shape index: {}]   ;;  %s3464_s4 = inlined_call_operand.vmem [shape: f32[2,32,32], index: 4, kind: input, shape index: {}]   ;;  %s3465_s5 = inlined_call_operand.hbm [shape: f32[2,1,32], index: 5, kind: input, shape index: {}]   ;;  %s3466_s6 = inlined_call_operand.vmem [shape: f32[2,32,32], index: 6, kind: input, shape index: {}]   ;;  %s3467_s7 = inlined_call_operand.hbm [shape: f32[2,1,32], index: 7, kind: input, shape index: {}]   ;;  %s3468_s8 = inlined_call_operand.vmem [shape: f32[2,32,32], index: 8, kind: input, shape index: {}]   ;;  %s3469_s9 = inlined_call_operand.hbm [shape: f32[2,1,32], index: 9, kind: input, shape index: {}]   ;;  %s3470_s10 = inlined_call_operand.vmem [shape: f32[2,32,64], index: 10, kind: input, shape index: {}]   ;;  %s3471_s11 = inlined_call_operand.hbm [shape: f32[2,1,64], index: 11, kind: input, shape index: {}]   ;;  %s3472_s12 = inlined_call_operand.vmem [shape: f32[2,64,32], index: 12, kind: input, shape index: {}]   ;;  %s3473_s13 = inlined_call_operand.hbm [shape: f32[2,1,32], index: 13, kind: input, shape index: {}]   ;;  %s3474_s14 = inlined_call_operand.hbm [shape: f32[2,1,32], index: 14, kind: input, shape index: {}]   ;;  %s3475_s15 = inlined_call_operand.hbm [shape: f32[2,1,32], index: 15, kind: input, shape index: {}]   ;;  %s3476_s16 = inlined_call_operand.hbm [shape: f32[2,1,32], index: 16, kind: input, shape index: {}]   ;;  %s3477_s17 = inlined_call_operand.hbm [shape: f32[2,1,32], index: 17, kind: input, shape index: {}]   ;;  %s3478_s18 = inlined_call_operand.hbm [shape: f32[1,32], index: 18, kind: input, shape index: {}]   ;;  %s3479_s19 = inlined_call_operand.hbm [shape: f32[1,32], index: 19, kind: input, shape index: {}]   ;;  %s3480_s20 = inlined_call_operand.vmem [shape: f32[2,8,32], index: 20, kind: output, shape index: {}]  }
   0x1   :  { %3484 = sst [smem:[#allocation25_spill]] %s3460_s0 }
   0x2   :  { %3485 = sst [smem:[#allocation26_spill]] %s3461_s1 }
   0x3   :  { %3486 = sst [smem:[#allocation27_spill]] %s3462_s2 }
   0x4   :  { %3487 = sst [smem:[#allocation28_spill]] %s3463_s3 }
   0x5   :  { %3488 = sst [smem:[#allocation29_spill]] %s3464_s4 }
   0x6   :  { %3489 = sst [smem:[#allocation30_spill]] %s3467_s7 }
   0x7   :  { %3490 = sst [smem:[#allocation31_spill]] %s3471_s11 }
   0x8   :  { %3491 = sst [smem:[#allocation32_spill]] %s3474_s14 }
   0x9   :  { %3492 = sst [smem:[#allocation33_spill]] %s3476_s16 }
   0xa   :  { %25 = vsyncpa [#allocation3], 0 }
   0xb   :  { %26 = vsyncpa [#allocation5], 0 }
   0xc   :  { %27 = vsyncpa [#allocation8], 0 }
   0xd   :  { %28 = vsyncpa [#allocation11], 0 }
   0xe   :  { %29 = vsyncpa [#allocation14], 0 }
   0xf   :  { %30 = vsyncpa [#allocation17], 0  ;;  %s3005_s1 = smov 0  }
  0x10 LB: > { %s3011_s22 = sadd.s32 4294967295, %s2881_s1   ;;  %p2229_p0 = scmp.ge.s32.totalorder %s2881_s1, 1  ;;  %s2881_s1 = sphi %s3005_s1, %s36_s1  }
  0x11   : > { %p497_p1 = scmp.lt.s32.totalorder %s2881_s1, 3  ;;  %p2408_p2 = scmp.eq.s32.totalorder %s3011_s22, 0 }
  0x12   : > { %s3493_s7 = sld [smem:[#allocation30_spill]]  ;;  %s2883_s28 = smov [#allocation4]  }
  0x13   : > { %p3019_p3 = pnand %p2229_p0, %p497_p1  ;;  %s3495_s11 = sld [smem:[#allocation31_spill]] }
  0x14   : > { %s536_s4 = sshll.u32 %s2883_s28, 4  ;;  %s2884_s30 = smov [#allocation7]   ;;  %s537_s4 = int_to_ptr.vmem [resolvable:$true] %s536_s4 }
  0x15   : > { %p2374_p4 = pneg %p3019_p3  ;;  %s570_s0 = sshll.u32 %s2884_s30, 4  ;;  %s571_s0 = int_to_ptr.vmem [resolvable:$true] %s570_s0 }
  0x16   : > { %s3497_s14 = sld [smem:[#allocation32_spill]]  ;;  %s2885_s3 = smov 16  }
  0x17   : > { %p3030_p5 = pnand %p2408_p2, %p2374_p4  ;;  %s2886_s26 = smov 1  }
  0x18   : > { %s534_s2 = sshll.u32 %s3493_s7, 4  ;;  %s2887_s28 = smov [#allocation10]   ;;  %s535_s2 = int_to_ptr.hbm [resolvable:$true] %s534_s2 }
  0x19   : > { %s568_s27 = sshll.u32 %s3495_s11, 4  ;;  %s601_s30 = sshll.u32 %s2887_s28, 4  ;;  %s569_s27 = int_to_ptr.hbm [resolvable:$true] %s568_s27  ;;  %s602_s30 = int_to_ptr.vmem [resolvable:$true] %s601_s30 }
  0x1a   : > { %2380 = dma.hbm_to_vmem [thread:$0]  (!%p3030_p5), %s535_s2, 32, %s537_s4, [#allocation5], %s2885_s3, %s2885_s3, %s2886_s26  }
  0x1b   : > { %2386 = dma.hbm_to_vmem [thread:$0]  (!%p3030_p5), %s569_s27, 32, %s571_s0, [#allocation8], %s2885_s3, %s2885_s3, %s2886_s26  }
  0x1c   : > { %s599_s24 = sshll.u32 %s3497_s14, 4  ;;  %s3498_s16 = sld [smem:[#allocation33_spill]]  ;;  %s600_s24 = int_to_ptr.hbm [resolvable:$true] %s599_s24 }
  0x1d   : > { %2392 = dma.hbm_to_vmem [thread:$0]  (!%p3030_p5), %s600_s24, 32, %s602_s30, [#allocation11], %s2885_s3, %s2885_s3, %s2886_s26  }
  0x1e   : > { %s656_s11 = sshll.u32 %s3478_s18, 4  ;;  %s2888_s27 = smov [#allocation13]   ;;  %s657_s11 = int_to_ptr.hbm [resolvable:$true] %s656_s11 }
  0x1f   : > { %s629_s0 = sshll.u32 %s2888_s27, 4  ;;  %s2889_s7 = smov [#allocation16]   ;;  %s630_s0 = int_to_ptr.vmem [resolvable:$true] %s629_s0 }
  0x20   : > { %s658_s28 = sshll.u32 %s2889_s7, 4  ;;  %s517_s24 = sshll.u32 %s3465_s5, 4  ;;  %s659_s28 = int_to_ptr.vmem [resolvable:$true] %s658_s28  ;;  %s518_s24 = int_to_ptr.hbm [resolvable:$true] %s517_s24 }
  0x21   : > { %2404 = dma.hbm_to_vmem [thread:$0]  (!%p3030_p5), %s657_s11, 16, %s659_s28, [#allocation17]  }
  0x22   : > { %s627_s23 = sshll.u32 %s3498_s16, 4  ;;  %s551_s4 = sshll.u32 %s3469_s9, 4  ;;  %s628_s23 = int_to_ptr.hbm [resolvable:$true] %s627_s23  ;;  %s552_s4 = int_to_ptr.hbm [resolvable:$true] %s551_s4 }
  0x23   : > { %2398 = dma.hbm_to_vmem [thread:$0]  (!%p3030_p5), %s628_s23, 32, %s630_s0, [#allocation14], %s2885_s3, %s2885_s3, %s2886_s26  }
  0x24   : > { %s2890_s27 = smov [#allocation2]   ;;  %s2891_s14 = smov [#allocation6]  }
  0x25   : > { %s519_s16 = sshll.u32 %s2890_s27, 4  ;;  %s553_s23 = sshll.u32 %s2891_s14, 4  ;;  %s520_s16 = int_to_ptr.vmem [resolvable:$true] %s519_s16  ;;  %s554_s23 = int_to_ptr.vmem [resolvable:$true] %s553_s23 }
  0x26   : > { %2377 = dma.hbm_to_vmem [thread:$0]  (!%p3030_p5), %s518_s24, 32, %s520_s16, [#allocation3], %s2885_s3, %s2885_s3, %s2886_s26  }
  0x27   : > { %s585_s11 = sshll.u32 %s3473_s13, 4  ;;  %s613_s30 = sshll.u32 %s3475_s15, 4  ;;  %s586_s11 = int_to_ptr.hbm [resolvable:$true] %s585_s11  ;;  %s614_s30 = int_to_ptr.hbm [resolvable:$true] %s613_s30 }
  0x28   : > { %2383 = dma.hbm_to_vmem [thread:$0]  (!%p3030_p5), %s552_s4, 32, %s554_s23, [#allocation5], %s2885_s3, %s2885_s3, %s2886_s26  }
  0x29   : > { %s2892_s2 = smov [#allocation9]   ;;  %s2893_s24 = smov [#allocation12]  }
  0x2a   : > { %s587_s16 = sshll.u32 %s2892_s2, 4  ;;  %s615_s27 = sshll.u32 %s2893_s24, 4  ;;  %s588_s16 = int_to_ptr.vmem [resolvable:$true] %s587_s16  ;;  %s616_s27 = int_to_ptr.vmem [resolvable:$true] %s615_s27 }
  0x2b   : > { %2389 = dma.hbm_to_vmem [thread:$0]  (!%p3030_p5), %s586_s11, 32, %s588_s16, [#allocation8], %s2885_s3, %s2885_s3, %s2886_s26  }
  0x2c   : > { %s641_s4 = sshll.u32 %s3477_s17, 4  ;;  %s668_s28 = sshll.u32 %s3479_s19, 4  ;;  %s642_s4 = int_to_ptr.hbm [resolvable:$true] %s641_s4  ;;  %s669_s28 = int_to_ptr.hbm [resolvable:$true] %s668_s28 }
  0x2d   : > { %2395 = dma.hbm_to_vmem [thread:$0]  (!%p3030_p5), %s614_s30, 32, %s616_s27, [#allocation11], %s2885_s3, %s2885_s3, %s2886_s26  }
  0x2e   : > { %s2894_s21 = smov [#allocation15]   ;;  %s2895_s2 = smov [#allocation18]  }
  0x2f   : > { %s643_s11 = sshll.u32 %s2894_s21, 4  ;;  %s670_s16 = sshll.u32 %s2895_s2, 4  ;;  %s644_s11 = int_to_ptr.vmem [resolvable:$true] %s643_s11  ;;  %s671_s16 = int_to_ptr.vmem [resolvable:$true] %s670_s16 }
  0x30   : > { %2401 = dma.hbm_to_vmem [thread:$0]  (!%p3030_p5), %s642_s4, 32, %s644_s11, [#allocation14], %s2885_s3, %s2885_s3, %s2886_s26  }
  0x31   : > { %2407 = dma.hbm_to_vmem [thread:$0]  (!%p3030_p5), %s669_s28, 16, %s671_s16, [#allocation17]  }
  0x32   : > { %697 = sbr.rel (%p3019_p3) target bundleno = 4598 (0x11f6), region = 100 }
  0x37   : > { %2856 = dma.done.wait (%p2408_p2), [#allocation3], 32  }
  0x38   : > { %2858 = vsyncadd (%p2408_p2), [#allocation3], 4294967264 }
  0x39   : > { %2860 = dma.done.wait (%p2408_p2), [#allocation5], 64  }
  0x3a   : > { %2862 = vsyncadd (%p2408_p2), [#allocation5], 4294967232 }
  0x3b   : > { %2864 = dma.done.wait (%p2408_p2), [#allocation8], 64  }
  0x3c   : > { %2866 = vsyncadd (%p2408_p2), [#allocation8], 4294967232 }
  0x3d   : > { %2868 = dma.done.wait (%p2408_p2), [#allocation11], 64  }
  0x3e   : > { %2870 = vsyncadd (%p2408_p2), [#allocation11], 4294967232 }
  0x3f   : > { %2872 = dma.done.wait (%p2408_p2), [#allocation14], 64  }
  0x40   : > { %2874 = vsyncadd (%p2408_p2), [#allocation14], 4294967232 }
  0x41   : > { %2876 = dma.done.wait (%p2408_p2), [#allocation17], 32  }
  0x42   : > { %2878 = vsyncadd (%p2408_p2), [#allocation17], 4294967264  ;;  %p808_p6 = scmp.lt.s32.totalorder %s3011_s22, 1  ;;  %s3499_s26 = sld [smem:[#allocation25_spill]]  ;;  %vm824_vm0 = vcmask 261120   ;;  %v2896_v2 = vmov 32.0  }
  0x43   : > { %2477 = vrcp.f32 %v2896_v2  ;;  %s3500_s27 = sld [smem:[#allocation27_spill]]  ;;  %v875_v22 = vld [vmem:[%s3466_s6 + $0x18] sm:$0xff]  ;;  %v874_v23 = vld [vmem:[%s3466_s6 + $0x10] sm:$0xff]  ;;  %v873_v24 = vld [vmem:[%s3466_s6 + $0x8] sm:$0xff]  ;;  %vm954_vm5 = vcmask 64512   ;;  %s2897_s3 = smov 112  }
  0x44   : > { %s3505_s22 = smov (!%p808_p6, %s3011_s22), 1  ;;  %s3501_s4 = sld [smem:[#allocation29_spill]]  ;;  %v872_v27 = vld [vmem:[%s3466_s6] sm:$0xff]  ;;  %v2455_v35 = vld [vmem:[#allocation10] ss:$0 sm:$0xff]  ;;  %vm1394_vm9 = vcmask 523264  }
  0x45   : > { %s3138_s25 = sshll.u32 %s3505_s22, 3  ;;  %v2456_v38 = vld [vmem:[#allocation12] ss:$0 sm:$0xff]  ;;  %v2458_v41 = vld [vmem:[#allocation2] ss:$0 sm:$0xff]  ;;  %s3502_s29 = sld [smem:[#allocation28_spill]] }
  0x46   : > { %v2459_v47 = vld [vmem:[#allocation4] ss:$0 sm:$0xff]  ;;  %s3503_s14 = sld [smem:[#allocation26_spill]]  ;;  %s819_s22 = scalar_lea.vmem %s3480_s20, %s3138_s25 }
  0x48   : > { %s811_s30 = scalar_lea.vmem %s3499_s26, %s3138_s25  ;;  %s2898_s26 = smov 120  }
  0x49   : > { %v3144_v0 = vld [vmem:[%s811_s30] sm:$0xff]  ;;  %v2478_v3 = vpop.eup %2477  ;;  %v865_v14 = vld [vmem:[%s3500_s27 + $0x18] sm:$0xff]  ;;  %v864_v16 = vld [vmem:[%s3500_s27 + $0x10] sm:$0xff]  ;;  %s2899_s30 = smov 104  }
  0x4a   : > { %v825_v1 = vsel %vm824_vm0, %v3144_v0, 0.0  ;;  %v829_v4 = vmul.f32 32.0, %v2478_v3  ;;  %vm833_vm1 = vweird.f32 %v2478_v3  ;;  %v870_v15 = vld [vmem:[%s3501_s4 + $0x18] sm:$0xff]  ;;  %900 = vmatpush.msra.mxu0 %v865_v14  ;;  %v869_v17 = vld [vmem:[%s3501_s4 + $0x10] sm:$0xff]  ;;  %v863_v18 = vld [vmem:[%s3500_s27 + $0x8] sm:$0xff] }
  0x4b   : > { %826 = vadd.xlane.f32.xlu0 %v825_v1  ;;  %923 = vmatpush.msra.mxu2 %v870_v15  ;;  %v868_v19 = vld [vmem:[%s3501_s4 + $0x8] sm:$0xff]  ;;  %v862_v20 = vld [vmem:[%s3500_s27] sm:$0xff] }
  0x4c   : > { %v830_v5 = vsub.f32 1.0, %v829_v4  ;;  %901 = vmatpush.msra.mxu0 %v864_v16  ;;  %v867_v21 = vld [vmem:[%s3501_s4] sm:$0xff]  ;;  %s815_s0 = scalar_lea.vmem %s3503_s14, %s3138_s25 }
  0x4d   : > { %924 = vmatpush.msra.mxu2 %v869_v17  ;;  %v2457_v43 = vld [vmem:[%s3502_s29] ss:$0 sm:$0xff] }
  0x4e   : > { %v831_v6 = vmul.f32 %v2478_v3, %v830_v5  ;;  %902 = vmatpush.msra.mxu0 %v863_v18  ;;  %v3214_v54 = vld [vmem:[%s815_s0] sm:$0xff] }
  0x4f   : > { %925 = vmatpush.msra.mxu2 %v868_v19  ;;  %v877_v18 = vld [vmem:[%s3468_s8] sm:$0xff] }
  0x50   : > { %v832_v7 = vadd.f32 %v2478_v3, %v831_v6  ;;  %903 = vmatpush.msra.mxu0 %v862_v20 }
  0x51   : > { %926 = vmatpush.msra.mxu2 %v867_v21 }
  0x52   : > { %v3148_v8 = vsel %vm833_vm1, %v2478_v3, %v832_v7 }
  0x53   : > { %946 = vmatpush.msrb.mxu2 %v875_v22 }
  0x55   : > { %947 = vmatpush.msrb.mxu2 %v874_v23 }
  0x57   : > { %948 = vmatpush.msrb.mxu2 %v873_v24 }
  0x59   : > { %949 = vmatpush.msrb.mxu2 %v872_v27 }
  0xbe   : > { %v827_v9 = vpop.xlane.xlu0 %826 }
  0xbf   : > { %v835_v10 = vmul.f32 %v3148_v8, %v827_v9 }
  0xc1   : > { %v836_v11 = vsub.f32 %v3144_v0, %v835_v10 }
  0xc3   : > { %v837_v12 = vmul.f32 %v836_v11, %v836_v11 }
  0xc5   : > { %v838_v13 = vsel %vm824_vm0, %v837_v12, 0.0 }
  0xc6   : > { %839 = vadd.xlane.f32.xlu0 %v838_v13 }
 0x139   : > { %v840_v25 = vpop.xlane.xlu0 %839 }
 0x13a   : > { %v841_v26 = vmul.f32 %v840_v25, %v3148_v8 }
 0x13c   : > { %v842_v28 = vadd.f32 1e-06, %v841_v26 }
 0x13e   : > { %2479 = vrsqrt.f32 %v842_v28  ;;  %vm849_vm3 = vweird.f32 %v842_v28 }
 0x144   : > { %v2480_v29 = vpop.eup %2479 }
 0x145   : > { %v844_v30 = vmul.f32 %v2480_v29, %v842_v28  ;;  %vm850_vm2 = vweird.f32 %v2480_v29 }
 0x146   : > { %vm851_vm4 = vmor %vm849_vm3, %vm850_vm2 }
 0x147   : > { %v845_v31 = vmul.f32 %v2480_v29, %v844_v30 }
 0x149   : > { %v846_v32 = vmul.f32 0.5, %v845_v31 }
 0x14b   : > { %v847_v33 = vsub.f32 1.5, %v846_v32 }
 0x14d   : > { %v848_v34 = vmul.f32 %v2480_v29, %v847_v33 }
 0x14f   : > { %v852_v36 = vsel %vm851_vm4, %v2480_v29, %v848_v34 }
 0x150   : > { %v853_v37 = vmul.f32 %v852_v36, %v836_v11  ;;  %v879_v36 = vld [vmem:[%s3468_s8 + $0x10] sm:$0xff] }
 0x152   : > { %v857_v39 = vmul.f32 %v2455_v35, %v853_v37  ;;  %v878_v35 = vld [vmem:[%s3468_s8 + $0x8] sm:$0xff] }
 0x154   : > { %v861_v40 = vadd.f32 %v2456_v38, %v857_v39 }
 0x156   : > { %2257 = vmatmul.msk.f32.vlgmr.msra.gmra.mxu0 %vm824_vm0, %v861_v40  ;;  %2258 = vmatmul.msk.f32.vlgmr.msra.gmra.mxu2 %vm824_vm0, %v861_v40 }
 0x157   : > { %1103 = vmatpush.msra.mxu2 %v878_v35  ;;  %v2463_v35 = vld [vmem:[#allocation7] ss:$0 sm:$0xff] }
 0x15e   : > { %2259 = vmatmul.msk.f32.vlgmr.msrb.gmra.mxu2 %vm824_vm0, %v861_v40 }
 0x15f   : > { %1216 = vmatpush.msrb.mxu2 %v879_v36 }
 0x1d3   : > { %v905_v45 = vpop.f32.mrf.mxu0 }
 0x1d4   : > { %v906_v46 = vadd.f32 %v2457_v43, %v905_v45 }
 0x1d9   : > { %v928_v42 = vpop.f32.mrf.mxu2 }
 0x1da   : > { %v929_v44 = vadd.f32 %v2458_v41, %v928_v42 }
 0x1dc   : > { %1133 = vrot.lane.b32.xlu0 %v929_v44, %s2897_s3  ;;  %1019 = vrot.lane.b32.xlu2 %v929_v44, %s2898_s26 }
 0x1dd   : > { %2260 = vmatpush.xpose.msk.msra.mxu3 %vm954_vm5, %v929_v44 }
 0x1e0   : > { %2261 = vmatmul.msk.f32.vlgmr.msra.gmra.mxu3 %vm954_vm5, %v906_v46 }
 0x1e1   : > { %v951_v48 = vpop.f32.mrf.mxu2 }
 0x1e2   : > { %v3200_v49 = vadd.f32 %v2459_v47, %v951_v48 }
 0x1e4   : > { %1012 = vmatpush.msrb.mxu3 %v3200_v49  ;;  %1017 = vrot.lane.b32.xlu2 %v906_v46, %s2898_s26 }
 0x1e6   : > { %1126 = vmatpush.msra.mxu3 %v877_v18 }
 0x1ec   : > { %1131 = vrot.lane.b32.xlu2 %v906_v46, %s2897_s3 }
 0x1f4   : > { %1222 = vrot.lane.b32.xlu2 %v906_v46, %s2899_s30 }
 0x236   : > { %v1020_v50 = vpop.permute.xlu2 %1019 }
 0x237   : > { %2263 = vmatpush.xpose.msk.msrb.mxu0 %vm954_vm5, %v1020_v50 }
 0x23e   : > { %v1018_v51 = vpop.permute.xlu2 %1017 }
 0x23f   : > { %2264 = vmatmul.msk.f32.vlgmr.msrb.gmra.mxu0 %vm954_vm5, %v1018_v51 }
 0x246   : > { %v1132_v53 = vpop.permute.xlu2 %1131 }
 0x24e   : > { %v1134_v52 = vpop.permute.xlu0 %1133  ;;  %v1223_v10 = vpop.permute.xlu2 %1222 }
 0x24f   : > { %2268 = vmatpush.xpose.msk.msra.mxu0 %vm954_vm5, %v1134_v52 }
 0x252   : > { %2269 = vmatmul.msk.f32.vlgmr.msra.gmra.mxu0 %vm954_vm5, %v1132_v53 }
 0x263   : > { %v978_v55 = vpop.f32.mrf.mxu3 }
 0x264   : > { %v981_v56 = vmul.f32 0.35355338, %v978_v55  ;;  %v880_v55 = vld [vmem:[%s3468_s8 + $0x18] sm:$0xff] }
 0x266   : > { %v982_v57 = vadd.f32 %v981_v56, %v3214_v54 }
 0x268   : > { %v983_v58 = vsel %vm954_vm5, %v982_v57, -inf }
 0x269   : > { %984 = vmax.xlane.f32.xlu1 %v983_v58 }
 0x2bc   : > { %v1042_v59 = vpop.f32.mrf.mxu0 }
 0x2bd   : > { %v1045_v60 = vmul.f32 0.35355338, %v1042_v59 }
 0x2bf   : > { %v1046_v61 = vadd.f32 %v1045_v60, %v3214_v54  ;;  %v2460_v60 = vld [vmem:[#allocation6] ss:$0 sm:$0xff] }
 0x2c1   : > { %v1047_v62 = vsel %vm954_vm5, %v1046_v61, -inf }
 0x2c2   : > { %1048 = vmax.xlane.f32.xlu2 %v1047_v62 }
 0x2cf   : > { %v1156_v63 = vpop.f32.mrf.mxu0 }
 0x2d0   : > { %v1159_v1 = vmul.f32 0.35355338, %v1156_v63 }
 0x2d2   : > { %v1160_v2 = vadd.f32 %v1159_v1, %v3214_v54 }
 0x2d4   : > { %v1161_v3 = vsel %vm954_vm5, %v1160_v2, -inf }
 0x2d5   : > { %1162 = vmax.xlane.f32.xlu0 %v1161_v3 }
 0x2dc   : > { %v985_v4 = vpop.xlane.xlu1 %984 }
 0x2dd   : > { %v986_v5 = vsub.f32 %v982_v57, %v985_v4 }
 0x2df   : > { %v987_v6 = vmul.f32 1.442695, %v986_v5 }
 0x2e1   : > { %2481 = vpow2.f32 %v987_v6 }
 0x2e7   : > { %v2482_v7 = vpop.eup %2481 }
 0x2e8   : > { %v989_v9 = vsel %vm954_vm5, %v2482_v7, 0.0 }
 0x2e9   : > { %990 = vadd.xlane.f32.xlu1 %v989_v9  ;;  %v1353_v9 = vld [vmem:[%s3470_s10 + $0x18] sm:$0xff] }
 0x302   : > { %1224 = vrot.lane.b32.xlu1 %v929_v44, %s2899_s30 }
 0x335   : > { %v1049_v11 = vpop.xlane.xlu2 %1048 }
 0x336   : > { %v1050_v12 = vsub.f32 %v1046_v61, %v1049_v11  ;;  %v1350_v11 = vld [vmem:[%s3470_s10] sm:$0xff] }
 0x338   : > { %v1051_v13 = vmul.f32 1.442695, %v1050_v12  ;;  %v1362_v12 = vld [vmem:[%s3472_s12 + $0x38] sm:$0xff] }
 0x33a   : > { %2483 = vpow2.f32 %v1051_v13  ;;  %v1361_v13 = vld [vmem:[%s3472_s12 + $0x30] sm:$0xff] }
 0x340   : > { %v2484_v14 = vpop.eup %2483 }
 0x341   : > { %v1053_v15 = vsel %vm954_vm5, %v2484_v14, 0.0 }
 0x342   : > { %1054 = vadd.xlane.f32.xlu2 %v1053_v15 }
 0x348   : > { %v1163_v16 = vpop.xlane.xlu0 %1162 }
 0x349   : > { %v1164_v17 = vsub.f32 %v1160_v2, %v1163_v16 }
 0x34b   : > { %v1165_v19 = vmul.f32 1.442695, %v1164_v17  ;;  %v1359_v17 = vld [vmem:[%s3472_s12 + $0x20] sm:$0xff] }
 0x34d   : > { %2485 = vpow2.f32 %v1165_v19  ;;  %v1358_v19 = vld [vmem:[%s3472_s12 + $0x18] sm:$0xff] }
 0x353   : > { %v2486_v20 = vpop.eup %2485 }
 0x354   : > { %v1167_v21 = vsel %vm954_vm5, %v2486_v20, 0.0 }
 0x355   : > { %1168 = vadd.xlane.f32.xlu0 %v1167_v21 }
 0x35a   : > { %1059 = vrot.lane.b32.xlu2 %v3200_v49, %s2898_s26 }
 0x35c   : > { %v991_v22 = vpop.xlane.xlu1 %990 }
 0x35d   : > { %2487 = vrcp.f32 %v991_v22 }
 0x363   : > { %v2488_v23 = vpop.eup %2487 }
 0x364   : > { %v993_v24 = vmul.f32 %v2488_v23, %v2482_v7 }
 0x366   : > { %2262 = vmatmul.msk.f32.vlgmr.msrb.gmra.mxu3 %vm954_vm5, %v993_v24 }
 0x369   : > { %1172 = vrot.lane.b32.xlu0 %v3200_v49, %s2897_s3 }
 0x374   : > { %v1225_v25 = vpop.permute.xlu1 %1224 }
 0x375   : > { %2272 = vmatpush.xpose.msk.msrb.mxu3 %vm954_vm5, %v1225_v25 }
 0x3b5   : > { %v1055_v26 = vpop.xlane.xlu2 %1054 }
 0x3b6   : > { %2489 = vrcp.f32 %v1055_v26  ;;  %v2461_v26 = vld [vmem:[#allocation13] ss:$0 sm:$0xff] }
 0x3bc   : > { %v2490_v27 = vpop.eup %2489 }
 0x3bd   : > { %v1060_v28 = vpop.permute.xlu2 %1059  ;;  %v1057_v29 = vmul.f32 %v2490_v27, %v2484_v14  ;;  %v1360_v14 = vld [vmem:[%s3472_s12 + $0x28] sm:$0xff] }
 0x3be   : > { %1080 = vmatpush.msra.mxu1 %v1060_v28 }
 0x3bf   : > { %2265 = vmatmul.msk.f32.vlgmr.msra.gmra.mxu1 %vm954_vm5, %v1057_v29  ;;  %v2462_v29 = vld [vmem:[#allocation15] ss:$0 sm:$0xff] }
 0x3c8   : > { %v1169_v30 = vpop.xlane.xlu0 %1168 }
 0x3c9   : > { %2491 = vrcp.f32 %v1169_v30 }
 0x3cf   : > { %v2492_v31 = vpop.eup %2491 }
 0x3d0   : > { %v1171_v33 = vmul.f32 %v2492_v31, %v2486_v20 }
 0x3db   : > { %v1173_v32 = vpop.permute.xlu0 %1172 }
 0x3dc   : > { %1193 = vmatpush.msrb.mxu1 %v1173_v32  ;;  %v1357_v32 = vld [vmem:[%s3472_s12 + $0x10] sm:$0xff] }
 0x3dd   : > { %2270 = vmatmul.msk.f32.vlgmr.msrb.gmra.mxu1 %vm954_vm5, %v1171_v33  ;;  %v1356_v33 = vld [vmem:[%s3472_s12 + $0x8] sm:$0xff] }
 0x3de   : > { %1307 = vmatpush.msra.mxu1 %v880_v55  ;;  %v2285_v55 = vld [vmem:[%s3501_s4 + $0x30] sm:$0xff] }
 0x3e9   : > { %v1014_v34 = vpop.f32.mrf.mxu3 }
 0x3ea   : > { %2267 = vmatmul.msk.f32.vlgmr.msra.gmra.mxu3 %vm954_vm5, %v1014_v34  ;;  %v1355_v34 = vld [vmem:[%s3472_s12] sm:$0xff] }
 0x3eb   : > { %1406 = vmatpush.msra.mxu3 %v1362_v12 }
 0x3ed   : > { %1407 = vmatpush.msra.mxu3 %v1361_v13 }
 0x3ef   : > { %1408 = vmatpush.msra.mxu3 %v1360_v14  ;;  %v2467_v14 = vld [vmem:[%s3502_s29 + $0x1] ss:$0 sm:$0xff] }
 0x3f1   : > { %1409 = vmatpush.msra.mxu3 %v1359_v17 }
 0x3f2   : > { %2273 = vmatmul.msk.f32.vlgmr.msrb.gmra.mxu3 %vm954_vm5, %v1223_v10  ;;  %v1351_v10 = vld [vmem:[%s3470_s10 + $0x8] sm:$0xff] }
 0x3f3   : > { %1410 = vmatpush.msra.mxu3 %v1358_v19 }
 0x3f5   : > { %1411 = vmatpush.msra.mxu3 %v1357_v32 }
 0x3f7   : > { %1412 = vmatpush.msra.mxu3 %v1356_v33 }
 0x3f9   : > { %1413 = vmatpush.msra.mxu3 %v1355_v34  ;;  %v2291_v34 = vld [vmem:[%s3468_s8 + $0x20] sm:$0xff] }
 0x43c   : > { %v1082_v37 = vpop.f32.mrf.mxu1 }
 0x43d   : > { %2266 = vmatmul.msk.f32.vlgmr.msra.gmra.mxu2 %vm954_vm5, %v1082_v37 }
 0x43e   : > { %1382 = vmatpush.msra.mxu2 %v1353_v9  ;;  %v2465_v9 = vld [vmem:[#allocation10 + $0x1] ss:$0 sm:$0xff] }
 0x45a   : > { %v1195_v38 = vpop.f32.mrf.mxu1 }
 0x45b   : > { %2271 = vmatmul.msk.f32.vlgmr.msrb.gmra.mxu2 %vm954_vm5, %v1195_v38 }
 0x46d   : > { %v1128_v39 = vpop.f32.mrf.mxu3 }
 0x475   : > { %v1247_v40 = vpop.f32.mrf.mxu3 }
 0x476   : > { %v1250_v41 = vmul.f32 0.35355338, %v1247_v40 }
 0x478   : > { %v1251_v42 = vadd.f32 %v1250_v41, %v3214_v54 }
 0x47a   : > { %v1252_v43 = vsel %vm954_vm5, %v1251_v42, -inf }
 0x47b   : > { %1253 = vmax.xlane.f32.xlu1 %v1252_v43 }
 0x4c0   : > { %v1105_v57 = vpop.f32.mrf.mxu2 }
 0x4c1   : > { %v1129_v59 = vadd.f32 %v1128_v39, %v1105_v57  ;;  %v2464_v39 = vld [vmem:[#allocation9] ss:$0 sm:$0xff] }
 0x4c2   : > { %v2279_v57 = vld [vmem:[%s3500_s27 + $0x28] sm:$0xff] }
 0x4de   : > { %v1218_v58 = vpop.f32.mrf.mxu2 }
 0x4ee   : > { %v1254_v44 = vpop.xlane.xlu1 %1253 }
 0x4ef   : > { %v1255_v45 = vsub.f32 %v1251_v42, %v1254_v44 }
 0x4f1   : > { %v1256_v46 = vmul.f32 1.442695, %v1255_v45 }
 0x4f3   : > { %2493 = vpow2.f32 %v1256_v46 }
 0x4f9   : > { %v2494_v47 = vpop.eup %2493 }
 0x4fa   : > { %v1258_v48 = vsel %vm954_vm5, %v2494_v47, 0.0 }
 0x4fb   : > { %1259 = vadd.xlane.f32.xlu1 %v1258_v48 }
 0x514   : > { %1263 = vrot.lane.b32.xlu1 %v3200_v49, %s2899_s30  ;;  %v1221_v49 = vadd.f32 %v1218_v58, %v1129_v59  ;;  %v2284_v58 = vld [vmem:[%s3501_s4 + $0x28] sm:$0xff] }
 0x515   : > { %v2288_v59 = vld [vmem:[%s3466_s6 + $0x28] sm:$0xff] }
 0x56e   : > { %v1260_v50 = vpop.xlane.xlu1 %1259 }
 0x56f   : > { %2495 = vrcp.f32 %v1260_v50  ;;  %v2281_v50 = vld [vmem:[%s3500_s27 + $0x38] sm:$0xff] }
 0x575   : > { %v2496_v51 = vpop.eup %2495 }
 0x576   : > { %v1262_v52 = vmul.f32 %v2496_v51, %v2494_v47  ;;  %v2286_v51 = vld [vmem:[%s3501_s4 + $0x38] sm:$0xff] }
 0x577   : > { %1522 = vmatpush.msrb.mxu1 %v2286_v51 }
 0x579   : > { %1523 = vmatpush.msrb.mxu1 %v2285_v55 }
 0x57b   : > { %1524 = vmatpush.msrb.mxu1 %v2284_v58 }
 0x586   : > { %v1264_v53 = vpop.permute.xlu1 %1263 }
 0x587   : > { %1284 = vmatpush.msrb.mxu0 %v1264_v53  ;;  %v2280_v53 = vld [vmem:[%s3500_s27 + $0x30] sm:$0xff] }
 0x588   : > { %2274 = vmatmul.msk.f32.vlgmr.msrb.gmra.mxu0 %vm954_vm5, %v1262_v52  ;;  %v2290_v52 = vld [vmem:[%s3466_s6 + $0x38] sm:$0xff] }
 0x589   : > { %1499 = vmatpush.msra.mxu0 %v2281_v50 }
 0x58b   : > { %1500 = vmatpush.msra.mxu0 %v2280_v53 }
 0x58d   : > { %1501 = vmatpush.msra.mxu0 %v2279_v57 }
 0x605   : > { %v1286_v56 = vpop.f32.mrf.mxu0 }
 0x606   : > { %2275 = vmatmul.msk.f32.vlgmr.msra.gmra.mxu1 %vm954_vm5, %v1286_v56  ;;  %v2289_v56 = vld [vmem:[%s3466_s6 + $0x30] sm:$0xff] }
 0x683   : > { %v1309_v61 = vpop.f32.mrf.mxu1 }
 0x684   : > { %v1312_v62 = vadd.f32 %v1309_v61, %v1221_v49  ;;  %v2278_v49 = vld [vmem:[%s3500_s27 + $0x20] sm:$0xff] }
 0x685   : > { %v2287_v61 = vld [vmem:[%s3466_s6 + $0x20] sm:$0xff]  ;;  %1502 = vmatpush.msra.mxu0 %v2278_v49 }
 0x686   : > { %v1316_v63 = vadd.f32 %v2460_v60, %v1312_v62  ;;  %v2283_v60 = vld [vmem:[%s3501_s4 + $0x20] sm:$0xff] }
 0x687   : > { %1525 = vmatpush.msrb.mxu1 %v2283_v60 }
 0x688   : > { %v1317_v1 = vadd.f32 %v1316_v63, %v3144_v0  ;;  %v1352_v0 = vld [vmem:[%s3470_s10 + $0x10] sm:$0xff] }
 0x689   : > { %1383 = vmatpush.msra.mxu2 %v1352_v0 }
 0x68a   : > { %v1320_v2 = vsel %vm824_vm0, %v1317_v1, 0.0 }
 0x68b   : > { %1321 = vadd.xlane.f32.xlu2 %v1320_v2  ;;  %1384 = vmatpush.msra.mxu2 %v1351_v10 }
 0x68d   : > { %1385 = vmatpush.msra.mxu2 %v1350_v11  ;;  %v2466_v11 = vld [vmem:[#allocation12 + $0x1] ss:$0 sm:$0xff] }
 0x68f   : > { %1545 = vmatpush.msrb.mxu2 %v2290_v52 }
 0x691   : > { %1546 = vmatpush.msrb.mxu2 %v2289_v56 }
 0x693   : > { %1547 = vmatpush.msrb.mxu2 %v2288_v59 }
 0x695   : > { %1548 = vmatpush.msrb.mxu2 %v2287_v61 }
 0x6fe   : > { %v1322_v3 = vpop.xlane.xlu2 %1321 }
 0x6ff   : > { %v1323_v4 = vmul.f32 %v1322_v3, %v3148_v8 }
 0x701   : > { %v1324_v5 = vsub.f32 %v1317_v1, %v1323_v4 }
 0x703   : > { %v1325_v6 = vmul.f32 %v1324_v5, %v1324_v5 }
 0x705   : > { %v1326_v7 = vsel %vm824_vm0, %v1325_v6, 0.0 }
 0x706   : > { %1327 = vadd.xlane.f32.xlu0 %v1326_v7 }
 0x779   : > { %v1328_v15 = vpop.xlane.xlu0 %1327 }
 0x77a   : > { %v1329_v16 = vmul.f32 %v1328_v15, %v3148_v8  ;;  %v2468_v15 = vld [vmem:[#allocation2 + $0x1] ss:$0 sm:$0xff] }
 0x77c   : > { %v1330_v18 = vadd.f32 1e-06, %v1329_v16 }
 0x77e   : > { %2497 = vrsqrt.f32 %v1330_v18  ;;  %vm1337_vm7 = vweird.f32 %v1330_v18 }
 0x784   : > { %v2498_v20 = vpop.eup %2497 }
 0x785   : > { %v1332_v21 = vmul.f32 %v2498_v20, %v1330_v18  ;;  %vm1338_vm6 = vweird.f32 %v2498_v20 }
 0x786   : > { %vm1339_vm8 = vmor %vm1337_vm7, %vm1338_vm6 }
 0x787   : > { %v1333_v22 = vmul.f32 %v2498_v20, %v1332_v21 }
 0x789   : > { %v1334_v23 = vmul.f32 0.5, %v1333_v22 }
 0x78b   : > { %v1335_v24 = vsub.f32 1.5, %v1334_v23 }
 0x78d   : > { %v1336_v25 = vmul.f32 %v2498_v20, %v1335_v24 }
 0x78f   : > { %v1340_v27 = vsel %vm1339_vm8, %v2498_v20, %v1336_v25  ;;  %v2469_v20 = vld [vmem:[#allocation4 + $0x1] ss:$0 sm:$0xff] }
 0x790   : > { %v1341_v28 = vmul.f32 %v1340_v27, %v1324_v5 }
 0x792   : > { %v1345_v30 = vmul.f32 %v2461_v26, %v1341_v28 }
 0x794   : > { %v1349_v31 = vadd.f32 %v2462_v29, %v1345_v30 }
 0x796   : > { %2276 = vmatmul.msk.f32.vlgmr.msra.gmra.mxu2 %vm824_vm0, %v1349_v31 }
 0x819   : > { %v1387_v36 = vpop.f32.mrf.mxu2 }
 0x81a   : > { %v1388_v37 = vadd.f32 %v2463_v35, %v1387_v36 }
 0x81c   : > { %v1390_v38 = vmax.f32 %v1388_v37, 0.0 }
 0x81e   : > { %2277 = vmatmul.msk.f32.vlgmr.msra.gmra.mxu3 %vm1394_vm9, %v1390_v38 }
 0x8a1   : > { %v1415_v40 = vpop.f32.mrf.mxu3 }
 0x8a2   : > { %v1416_v41 = vadd.f32 %v2464_v39, %v1415_v40 }
 0x8a4   : > { %v3300_v42 = vadd.f32 %v1416_v41, %v1317_v1 }
 0x8a6   : > { %v1423_v43 = vsel %vm824_vm0, %v3300_v42, 0.0 }
 0x8a7   : > { %1424 = vadd.xlane.f32.xlu1 %v1423_v43 }
 0x91a   : > { %v1425_v44 = vpop.xlane.xlu1 %1424 }
 0x91b   : > { %v1426_v45 = vmul.f32 %v1425_v44, %v3148_v8 }
 0x91d   : > { %v1427_v46 = vsub.f32 %v3300_v42, %v1426_v45 }
 0x91f   : > { %v1428_v47 = vmul.f32 %v1427_v46, %v1427_v46 }
 0x921   : > { %v1429_v48 = vsel %vm824_vm0, %v1428_v47, 0.0 }
 0x922   : > { %1430 = vadd.xlane.f32.xlu2 %v1429_v48 }
 0x995   : > { %v1431_v62 = vpop.xlane.xlu2 %1430 }
 0x996   : > { %v1432_v63 = vmul.f32 %v1431_v62, %v3148_v8 }
 0x998   : > { %v1433_v1 = vadd.f32 1e-06, %v1432_v63 }
 0x99a   : > { %2499 = vrsqrt.f32 %v1433_v1  ;;  %vm1440_vm11 = vweird.f32 %v1433_v1 }
 0x9a0   : > { %v2500_v2 = vpop.eup %2499 }
 0x9a1   : > { %v1435_v3 = vmul.f32 %v2500_v2, %v1433_v1  ;;  %vm1441_vm10 = vweird.f32 %v2500_v2 }
 0x9a2   : > { %vm1442_vm12 = vmor %vm1440_vm11, %vm1441_vm10 }
 0x9a3   : > { %v1436_v4 = vmul.f32 %v2500_v2, %v1435_v3 }
 0x9a5   : > { %v1437_v5 = vmul.f32 0.5, %v1436_v4 }
 0x9a7   : > { %v1438_v6 = vsub.f32 1.5, %v1437_v5 }
 0x9a9   : > { %v1439_v7 = vmul.f32 %v2500_v2, %v1438_v6 }
 0x9ab   : > { %v1443_v0 = vsel %vm1442_vm12, %v2500_v2, %v1439_v7 }
 0x9ac   : > { %v1444_v10 = vmul.f32 %v1443_v0, %v1427_v46 }
 0x9ae   : > { %v1448_v12 = vmul.f32 %v2465_v9, %v1444_v10 }
 0x9b0   : > { %v1452_v13 = vadd.f32 %v2466_v11, %v1448_v12 }
 0x9b2   : > { %2295 = vmatmul.msk.f32.vlgmr.msra.gmra.mxu0 %vm824_vm0, %v1452_v13  ;;  %2296 = vmatmul.msk.f32.vlgmr.msrb.gmra.mxu1 %vm824_vm0, %v1452_v13 }
 0x9b3   : > { %2297 = vmatmul.msk.f32.vlgmr.msrb.gmra.mxu2 %vm824_vm0, %v1452_v13 }
 0xa2f   : > { %v1504_v16 = vpop.f32.mrf.mxu0  ;;  %v1527_v17 = vpop.f32.mrf.mxu1 }
 0xa30   : > { %v1505_v18 = vadd.f32 %v2467_v14, %v1504_v16  ;;  %v1528_v19 = vadd.f32 %v2468_v15, %v1527_v17 }
 0xa32   : > { %2298 = vmatpush.xpose.msk.msrb.mxu0 %vm954_vm5, %v1528_v19  ;;  %1615 = vrot.lane.b32.xlu1 %v1505_v18, %s2898_s26 }
 0xa35   : > { %2299 = vmatmul.msk.f32.vlgmr.msrb.gmra.mxu0 %vm954_vm5, %v1505_v18 }
 0xa36   : > { %v1550_v21 = vpop.f32.mrf.mxu2 }
 0xa37   : > { %v3353_v22 = vadd.f32 %v2469_v20, %v1550_v21 }
 0xa39   : > { %1610 = vmatpush.msra.mxu1 %v3353_v22 }
 0xa3a   : > { %1729 = vrot.lane.b32.xlu1 %v1505_v18, %s2897_s3 }
 0xa3b   : > { %1724 = vmatpush.msrb.mxu1 %v2291_v34 }
 0xaa4   : > { %v1616_v33 = vpop.permute.xlu1 %1615 }
 0xaac   : > { %v1730_v40 = vpop.permute.xlu1 %1729 }
 0xab2   : > { %v1576_v23 = vpop.f32.mrf.mxu0 }
 0xab3   : > { %v1579_v24 = vmul.f32 0.35355338, %v1576_v23 }
 0xab5   : > { %v1580_v25 = vadd.f32 %v1579_v24, %v3214_v54 }
 0xab7   : > { %v1581_v26 = vsel %vm954_vm5, %v1580_v25, -inf }
 0xab8   : > { %1582 = vmax.xlane.f32.xlu0 %v1581_v26 }
 0xacc   : > { %1617 = vrot.lane.b32.xlu0 %v1528_v19, %s2898_s26 }
 0xad4   : > { %1822 = vrot.lane.b32.xlu0 %v1528_v19, %s2899_s30 }
 0xadc   : > { %1820 = vrot.lane.b32.xlu0 %v1505_v18, %s2899_s30 }
 0xb2b   : > { %v1583_v27 = vpop.xlane.xlu0 %1582 }
 0xb2c   : > { %v1584_v28 = vsub.f32 %v1580_v25, %v1583_v27 }
 0xb2e   : > { %v1585_v29 = vmul.f32 1.442695, %v1584_v28 }
 0xb30   : > { %2501 = vpow2.f32 %v1585_v29 }
 0xb36   : > { %v2502_v30 = vpop.eup %2501 }
 0xb37   : > { %v1587_v31 = vsel %vm954_vm5, %v2502_v30, 0.0 }
 0xb38   : > { %1588 = vadd.xlane.f32.xlu2 %v1587_v31  ;;  %v2470_v31 = vld [vmem:[#allocation6 + $0x1] ss:$0 sm:$0xff] }
 0xb3e   : > { %v1618_v32 = vpop.permute.xlu0 %1617 }
 0xb3f   : > { %2301 = vmatpush.xpose.msk.msra.mxu2 %vm954_vm5, %v1618_v32 }
 0xb42   : > { %2302 = vmatmul.msk.f32.vlgmr.msra.gmra.mxu2 %vm954_vm5, %v1616_v33 }
 0xb46   : > { %v1823_v39 = vpop.permute.xlu0 %1822 }
 0xb4e   : > { %v1821_v47 = vpop.permute.xlu0 %1820 }
 0xb50   : > { %1731 = vrot.lane.b32.xlu2 %v1528_v19, %s2897_s3  ;;  %v2293_v19 = vld [vmem:[%s3468_s8 + $0x30] sm:$0xff] }
 0xbab   : > { %v1589_v35 = vpop.xlane.xlu2 %1588 }
 0xbac   : > { %2503 = vrcp.f32 %v1589_v35 }
 0xbb2   : > { %v2504_v36 = vpop.eup %2503 }
 0xbb3   : > { %v1591_v37 = vmul.f32 %v2504_v36, %v2502_v30  ;;  %v1732_v38 = vpop.permute.xlu2 %1731 }
 0xbb4   : > { %2306 = vmatpush.xpose.msk.msrb.mxu2 %vm954_vm5, %v1732_v38 }
 0xbb5   : > { %2300 = vmatmul.msk.f32.vlgmr.msra.gmra.mxu1 %vm954_vm5, %v1591_v37 }
 0xbb6   : > { %2310 = vmatpush.xpose.msk.msra.mxu1 %vm954_vm5, %v1823_v39 }
 0xbb7   : > { %2307 = vmatmul.msk.f32.vlgmr.msrb.gmra.mxu2 %vm954_vm5, %v1730_v40 }
 0xbc5   : > { %v1640_v41 = vpop.f32.mrf.mxu2 }
 0xbc6   : > { %v1643_v43 = vmul.f32 0.35355338, %v1640_v41 }
 0xbc8   : > { %v1644_v44 = vadd.f32 %v1643_v43, %v3214_v54  ;;  %v2317_v43 = vld [vmem:[%s3470_s10 + $0x38] sm:$0xff] }
 0xbca   : > { %v1645_v45 = vsel %vm954_vm5, %v1644_v44, -inf }
 0xbcb   : > { %1646 = vmax.xlane.f32.xlu2 %v1645_v45  ;;  %v2314_v45 = vld [vmem:[%s3470_s10 + $0x20] sm:$0xff] }
 0xc32   : > { %v1612_v46 = vpop.f32.mrf.mxu1 }
 0xc33   : > { %2305 = vmatmul.msk.f32.vlgmr.msrb.gmra.mxu1 %vm954_vm5, %v1612_v46  ;;  %v2325_v46 = vld [vmem:[%s3472_s12 + $0x78] sm:$0xff] }
 0xc34   : > { %2009 = vmatpush.msrb.mxu1 %v2325_v46 }
 0xc3a   : > { %v1754_v48 = vpop.f32.mrf.mxu2 }
 0xc3b   : > { %v1757_v50 = vmul.f32 0.35355338, %v1754_v48  ;;  %2311 = vmatmul.msk.f32.vlgmr.msra.gmra.mxu1 %vm954_vm5, %v1821_v47  ;;  %v2324_v47 = vld [vmem:[%s3472_s12 + $0x70] sm:$0xff]  ;;  %v2323_v48 = vld [vmem:[%s3472_s12 + $0x68] sm:$0xff] }
 0xc3c   : > { %2010 = vmatpush.msrb.mxu1 %v2324_v47 }
 0xc3d   : > { %v1758_v51 = vadd.f32 %v1757_v50, %v3214_v54 }
 0xc3e   : > { %v1647_v52 = vpop.xlane.xlu2 %1646  ;;  %2011 = vmatpush.msrb.mxu1 %v2323_v48 }
 0xc3f   : > { %v1648_v53 = vsub.f32 %v1644_v44, %v1647_v52  ;;  %v1759_v55 = vsel %vm954_vm5, %v1758_v51, -inf  ;;  %v2315_v44 = vld [vmem:[%s3470_s10 + $0x28] sm:$0xff]  ;;  %v2322_v52 = vld [vmem:[%s3472_s12 + $0x60] sm:$0xff] }
 0xc40   : > { %1760 = vmax.xlane.f32.xlu0 %v1759_v55  ;;  %v2321_v55 = vld [vmem:[%s3472_s12 + $0x58] sm:$0xff]  ;;  %2012 = vmatpush.msrb.mxu1 %v2322_v52 }
 0xc41   : > { %v1649_v56 = vmul.f32 1.442695, %v1648_v53 }
 0xc42   : > { %2013 = vmatpush.msrb.mxu1 %v2321_v55 }
 0xc43   : > { %2505 = vpow2.f32 %v1649_v56 }
 0xc49   : > { %v2506_v57 = vpop.eup %2505 }
 0xc4a   : > { %v1651_v58 = vsel %vm954_vm5, %v2506_v57, 0.0 }
 0xc4b   : > { %1652 = vadd.xlane.f32.xlu2 %v1651_v58 }
 0xc63   : > { %1657 = vrot.lane.b32.xlu2 %v3353_v22, %s2898_s26 }
 0xcb0   : > { %v1726_v59 = vpop.f32.mrf.mxu1 }
 0xcb3   : > { %v1761_v49 = vpop.xlane.xlu0 %1760 }
 0xcb4   : > { %v1762_v60 = vsub.f32 %v1758_v51, %v1761_v49 }
 0xcb6   : > { %v1763_v61 = vmul.f32 1.442695, %v1762_v60 }
 0xcb8   : > { %2507 = vpow2.f32 %v1763_v61  ;;  %v1845_v62 = vpop.f32.mrf.mxu1  ;;  %v2471_v61 = vld [vmem:[#allocation13 + $0x1] ss:$0 sm:$0xff] }
 0xcb9   : > { %v1848_v63 = vmul.f32 0.35355338, %v1845_v62 }
 0xcbb   : > { %v1849_v1 = vadd.f32 %v1848_v63, %v3214_v54  ;;  %v2292_v54 = vld [vmem:[%s3468_s8 + $0x28] sm:$0xff] }
 0xcbc   : > { %1701 = vmatpush.msra.mxu0 %v2292_v54 }
 0xcbd   : > { %v1850_v2 = vsel %vm954_vm5, %v1849_v1, -inf }
 0xcbe   : > { %v2508_v3 = vpop.eup %2507  ;;  %v1653_v4 = vpop.xlane.xlu2 %1652  ;;  %1851 = vmax.xlane.f32.xlu1 %v1850_v2  ;;  %1814 = vmatpush.msrb.mxu0 %v2293_v19 }
 0xcbf   : > { %2509 = vrcp.f32 %v1653_v4  ;;  %v1765_v5 = vsel %vm954_vm5, %v2508_v3, 0.0  ;;  %v2320_v4 = vld [vmem:[%s3472_s12 + $0x50] sm:$0xff] }
 0xcc0   : > { %1766 = vadd.xlane.f32.xlu0 %v1765_v5  ;;  %2014 = vmatpush.msrb.mxu1 %v2320_v4  ;;  %v2319_v5 = vld [vmem:[%s3472_s12 + $0x48] sm:$0xff] }
 0xcc2   : > { %2015 = vmatpush.msrb.mxu1 %v2319_v5 }
 0xcc5   : > { %v2510_v6 = vpop.eup %2509 }
 0xcc6   : > { %v1655_v7 = vmul.f32 %v2510_v6, %v2506_v57  ;;  %v1658_v9 = vpop.permute.xlu2 %1657  ;;  %v2318_v6 = vld [vmem:[%s3472_s12 + $0x40] sm:$0xff] }
 0xcc7   : > { %1678 = vmatpush.msrb.mxu3 %v1658_v9  ;;  %2016 = vmatpush.msrb.mxu1 %v2318_v6 }
 0xcc8   : > { %2303 = vmatmul.msk.f32.vlgmr.msrb.gmra.mxu3 %vm954_vm5, %v1655_v7  ;;  %v2473_v7 = vld [vmem:[#allocation7 + $0x1] ss:$0 sm:$0xff] }
 0xcd4   : > { %1770 = vrot.lane.b32.xlu0 %v3353_v22, %s2897_s3 }
 0xd31   : > { %v1852_v0 = vpop.xlane.xlu1 %1851 }
 0xd32   : > { %v1853_v10 = vsub.f32 %v1849_v1, %v1852_v0  ;;  %v2472_v1 = vld [vmem:[#allocation15 + $0x1] ss:$0 sm:$0xff] }
 0xd33   : > { %v1767_v12 = vpop.xlane.xlu0 %1766 }
 0xd34   : > { %v1854_v11 = vmul.f32 1.442695, %v1853_v10  ;;  %v2474_v10 = vld [vmem:[#allocation9 + $0x1] ss:$0 sm:$0xff] }
 0xd36   : > { %2511 = vpow2.f32 %v1854_v11 }
 0xd37   : > { %2513 = vrcp.f32 %v1767_v12 }
 0xd3c   : > { %v2512_v13 = vpop.eup %2511 }
 0xd3d   : > { %v1856_v14 = vsel %vm954_vm5, %v2512_v13, 0.0  ;;  %v2514_v15 = vpop.eup %2513 }
 0xd3e   : > { %1857 = vadd.xlane.f32.xlu1 %v1856_v14  ;;  %v1769_v16 = vmul.f32 %v2514_v15, %v2508_v3 }
 0xd46   : > { %v1771_v17 = vpop.permute.xlu0 %1770 }
 0xd47   : > { %1791 = vmatpush.msra.mxu3 %v1771_v17 }
 0xd48   : > { %2308 = vmatmul.msk.f32.vlgmr.msra.gmra.mxu3 %vm954_vm5, %v1769_v16 }
 0xd4b   : > { %v1680_v18 = vpop.f32.mrf.mxu3 }
 0xd4c   : > { %2304 = vmatmul.msk.f32.vlgmr.msra.gmra.mxu0 %vm954_vm5, %v1680_v18 }
 0xd4d   : > { %1986 = vmatpush.msra.mxu0 %v2317_v43 }
 0xd57   : > { %1861 = vrot.lane.b32.xlu1 %v3353_v22, %s2899_s30  ;;  %v2294_v22 = vld [vmem:[%s3468_s8 + $0x38] sm:$0xff] }
 0xd58   : > { %1905 = vmatpush.msrb.mxu3 %v2294_v22 }
 0xdb1   : > { %v1858_v20 = vpop.xlane.xlu1 %1857 }
 0xdb2   : > { %2515 = vrcp.f32 %v1858_v20 }
 0xdb8   : > { %v2516_v21 = vpop.eup %2515 }
 0xdb9   : > { %v1860_v23 = vmul.f32 %v2516_v21, %v2512_v13 }
 0xdc9   : > { %v1862_v24 = vpop.permute.xlu1 %1861  ;;  %v1703_v27 = vpop.f32.mrf.mxu0 }
 0xdca   : > { %1882 = vmatpush.msra.mxu2 %v1862_v24  ;;  %v1727_v29 = vadd.f32 %v1726_v59, %v1703_v27 }
 0xdcb   : > { %v1793_v25 = vpop.f32.mrf.mxu3  ;;  %2312 = vmatmul.msk.f32.vlgmr.msra.gmra.mxu2 %vm954_vm5, %v1860_v23 }
 0xdcc   : > { %2309 = vmatmul.msk.f32.vlgmr.msrb.gmra.mxu0 %vm954_vm5, %v1793_v25 }
 0xe49   : > { %v1816_v28 = vpop.f32.mrf.mxu0 }
 0xe4a   : > { %v1819_v30 = vadd.f32 %v1816_v28, %v1727_v29  ;;  %v2475_v29 = vld [vmem:[#allocation16] ss:$0 sm:$0xff] }
 0xe4e   : > { %v1884_v26 = vpop.f32.mrf.mxu2 }
 0xe4f   : > { %2313 = vmatmul.msk.f32.vlgmr.msrb.gmra.mxu3 %vm954_vm5, %v1884_v26 }
 0xed2   : > { %v1907_v32 = vpop.f32.mrf.mxu3 }
 0xed3   : > { %v1910_v33 = vadd.f32 %v1907_v32, %v1819_v30 }
 0xed5   : > { %v1914_v34 = vadd.f32 %v2470_v31, %v1910_v33  ;;  %v2476_v31 = vld [vmem:[#allocation18] ss:$0 sm:$0xff] }
 0xed7   : > { %v1915_v35 = vadd.f32 %v1914_v34, %v3300_v42  ;;  %v2316_v42 = vld [vmem:[%s3470_s10 + $0x30] sm:$0xff] }
 0xed8   : > { %1987 = vmatpush.msra.mxu0 %v2316_v42 }
 0xed9   : > { %v1920_v36 = vsel %vm824_vm0, %v1915_v35, 0.0 }
 0xeda   : > { %1921 = vadd.xlane.f32.xlu2 %v1920_v36  ;;  %1988 = vmatpush.msra.mxu0 %v2315_v44 }
 0xedc   : > { %1989 = vmatpush.msra.mxu0 %v2314_v45 }
 0xf4d   : > { %v1922_v37 = vpop.xlane.xlu2 %1921 }
 0xf4e   : > { %v1923_v38 = vmul.f32 %v1922_v37, %v3148_v8 }
 0xf50   : > { %v1924_v39 = vsub.f32 %v1915_v35, %v1923_v38 }
 0xf52   : > { %v1925_v40 = vmul.f32 %v1924_v39, %v1924_v39 }
 0xf54   : > { %v1926_v41 = vsel %vm824_vm0, %v1925_v40, 0.0 }
 0xf55   : > { %1927 = vadd.xlane.f32.xlu0 %v1926_v41 }
 0xfc8   : > { %v1928_v50 = vpop.xlane.xlu0 %1927 }
 0xfc9   : > { %v1929_v51 = vmul.f32 %v1928_v50, %v3148_v8 }
 0xfcb   : > { %v1930_v53 = vadd.f32 1e-06, %v1929_v51 }
 0xfcd   : > { %2517 = vrsqrt.f32 %v1930_v53  ;;  %vm1937_vm14 = vweird.f32 %v1930_v53 }
 0xfd3   : > { %v2518_v56 = vpop.eup %2517 }
 0xfd4   : > { %v1932_v57 = vmul.f32 %v2518_v56, %v1930_v53  ;;  %vm1938_vm13 = vweird.f32 %v2518_v56 }
 0xfd5   : > { %vm1939_vm15 = vmor %vm1937_vm14, %vm1938_vm13 }
 0xfd6   : > { %v1933_v58 = vmul.f32 %v2518_v56, %v1932_v57 }
 0xfd8   : > { %v1934_v59 = vmul.f32 0.5, %v1933_v58 }
 0xfda   : > { %v1935_v49 = vsub.f32 1.5, %v1934_v59 }
 0xfdc   : > { %v1936_v60 = vmul.f32 %v2518_v56, %v1935_v49 }
 0xfde   : > { %v1940_v62 = vsel %vm1939_vm15, %v2518_v56, %v1936_v60 }
 0xfdf   : > { %v1941_v63 = vmul.f32 %v1940_v62, %v1924_v39 }
 0xfe1   : > { %v1945_v2 = vmul.f32 %v2471_v61, %v1941_v63 }
 0xfe3   : > { %v1949_v3 = vadd.f32 %v2472_v1, %v1945_v2 }
 0xfe5   : > { %2326 = vmatmul.msk.f32.vlgmr.msra.gmra.mxu0 %vm824_vm0, %v1949_v3 }
0x1062   : > { %v1991_v9 = vpop.f32.mrf.mxu0 }
0x1063   : > { %v1992_v54 = vadd.f32 %v2473_v7, %v1991_v9 }
0x1065   : > { %v1994_v0 = vmax.f32 %v1992_v54, 0.0 }
0x1067   : > { %2327 = vmatmul.msk.f32.vlgmr.msrb.gmra.mxu1 %vm1394_vm9, %v1994_v0 }
0x10e4   : > { %v2018_v11 = vpop.f32.mrf.mxu1 }
0x10e5   : > { %v2019_v12 = vadd.f32 %v2474_v10, %v2018_v11 }
0x10e7   : > { %v2021_v13 = vadd.f32 %v2019_v12, %v1915_v35 }
0x10e9   : > { %v2024_v14 = vsel %vm824_vm0, %v2021_v13, 0.0 }
0x10ea   : > { %2025 = vadd.xlane.f32.xlu1 %v2024_v14 }
0x115d   : > { %v2026_v15 = vpop.xlane.xlu1 %2025 }
0x115e   : > { %v2027_v16 = vmul.f32 %v2026_v15, %v3148_v8 }
0x1160   : > { %v2028_v17 = vsub.f32 %v2021_v13, %v2027_v16 }
0x1162   : > { %v2029_v18 = vmul.f32 %v2028_v17, %v2028_v17 }
0x1164   : > { %v2030_v19 = vsel %vm824_vm0, %v2029_v18, 0.0 }
0x1165   : > { %2031 = vadd.xlane.f32.xlu2 %v2030_v19 }
0x11d8   : > { %v2032_v20 = vpop.xlane.xlu2 %2031 }
0x11d9   : > { %v2033_v21 = vmul.f32 %v2032_v20, %v3148_v8 }
0x11db   : > { %v2034_v23 = vadd.f32 1e-06, %v2033_v21 }
0x11dd   : > { %2519 = vrsqrt.f32 %v2034_v23  ;;  %vm2041_vm2 = vweird.f32 %v2034_v23 }
0x11e3   : > { %v2520_v24 = vpop.eup %2519 }
0x11e4   : > { %v2036_v25 = vmul.f32 %v2520_v24, %v2034_v23  ;;  %vm2042_vm1 = vweird.f32 %v2520_v24 }
0x11e5   : > { %vm2043_vm3 = vmor %vm2041_vm2, %vm2042_vm1 }
0x11e6   : > { %v2037_v22 = vmul.f32 %v2520_v24, %v2036_v25 }
0x11e8   : > { %v2038_v26 = vmul.f32 0.5, %v2037_v22 }
0x11ea   : > { %v2039_v27 = vsub.f32 1.5, %v2038_v26 }
0x11ec   : > { %v2040_v28 = vmul.f32 %v2520_v24, %v2039_v27 }
0x11ee   : > { %v2044_v30 = vsel %vm2043_vm3, %v2520_v24, %v2040_v28 }
0x11ef   : > { %v2045_v32 = vmul.f32 %v2044_v30, %v2028_v17 }
0x11f1   : > { %v2049_v33 = vmul.f32 %v2475_v29, %v2045_v32 }
0x11f3   : > { %v2053_v8 = vadd.f32 %v2476_v31, %v2049_v33 }
0x11f5   : > { %2054 = vst.msk [vmem:[%s819_s22] sm:$0xff] %vm824_vm0, %v2053_v8 }
0x11f6 PF: > { %s36_s1 = sadd.s32 1, %s2881_s1  }
0x11f7   : > { %p33_p7 = scmp.ge.s32.totalorder %s36_s1, 4  }
0x11f9   :  { %35 = sbr.rel (!%p33_p7) target bundleno = 16 (0x10), region = 194 }
0x11fe   :  { %2074 = vsyncpa [#allocation3], 1 }
0x11ff   :  { %2076 = vsyncpa [#allocation3 + $0x1], 1 }
0x1200   :  { %2077 = vsyncpa [#allocation5], 1 }
0x1201   :  { %2078 = vsyncpa [#allocation8], 1 }
0x1202   :  { %2079 = vsyncpa [#allocation11], 1 }
0x1203   :  { %2080 = vsyncpa [#allocation14], 1 }
0x1204   :  { %2081 = vsyncpa [#allocation17], 1 }

// kernel: encoder_decoder_forward.3
= control target key start
LH: loop header
LB: loop body
LE: loop exit
PB: predicated region body
PF: predicated region fallthrough
CT: control target
= control target key end

     0   :  { %s4019_s6 = smov 1   ;;  %s4020_s10 = smov 2   ;;  %s4731_s0 = inlined_call_operand.smem [shape: u32[33], index: -1, kind: input, shape index: {}] }
   0x1   :  { %s4070_s5 = sld [smem:[%s4731_s0]]   ;;  %s4021_s14 = smov 3  }
   0x2   :  { %s4075_s9 = sld [smem:[%s4731_s0 + %s4019_s6]]   ;;  %s4022_s18 = smov 4  }
   0x3   :  { %s4080_s13 = sld [smem:[%s4731_s0 + %s4020_s10]]   ;;  %s4023_s22 = smov 5  }
   0x4   :  { %s4085_s17 = sld [smem:[%s4731_s0 + %s4021_s14]]   ;;  %s4024_s26 = smov 6  }
   0x5   :  { %s4090_s21 = sld [smem:[%s4731_s0 + %s4022_s18]]   ;;  %s4025_s30 = smov 7  }
   0x6   :  { %s4095_s25 = sld [smem:[%s4731_s0 + %s4023_s22]]   ;;  %s4026_s4 = smov 8  }
   0x7   :  { %4771 = sst [smem:[#allocation12_spill]] %s4070_s5  ;;  %s4027_s10 = smov 9  }
   0x8   :  { %4772 = sst [smem:[#allocation13_spill]] %s4075_s9  ;;  %s4028_s15 = smov 10  }
   0x9   :  { %s4100_s29 = sld [smem:[%s4731_s0 + %s4024_s26]]   ;;  %s4029_s20 = smov 11  }
   0xa   :  { %4773 = sst [smem:[#allocation14_spill]] %s4085_s17  ;;  %s4030_s26 = smov 12  }
   0xb   :  { %s4105_s3 = sld [smem:[%s4731_s0 + %s4025_s30]]   ;;  %s4031_s1 = smov 13  }
   0xc   :  { %s4110_s8 = sld [smem:[%s4731_s0 + %s4026_s4]]   ;;  %s4032_s7 = smov 14  }
   0xd   :  { %s4115_s14 = sld [smem:[%s4731_s0 + %s4027_s10]]   ;;  %s4034_s22 = smov 16  }
   0xe   :  { %s4120_s19 = sld [smem:[%s4731_s0 + %s4028_s15]]   ;;  %s4033_s15 = smov 15  }
   0xf   :  { %s4125_s24 = sld [smem:[%s4731_s0 + %s4029_s20]]   ;;  %s4035_s28 = smov 17  }
  0x10   :  { %s4130_s30 = sld [smem:[%s4731_s0 + %s4030_s26]]  }
  0x11   :  { %4774 = sst [smem:[#allocation15_spill]] %s4105_s3 }
  0x12   :  { %4775 = sst [smem:[#allocation16_spill]] %s4110_s8 }
  0x13   :  { %s4135_s6 = sld [smem:[%s4731_s0 + %s4031_s1]]  }
  0x14   :  { %s4140_s12 = sld [smem:[%s4731_s0 + %s4032_s7]]   ;;  %s4036_s7 = smov 18  }
  0x15   :  { %s4145_s20 = sld [smem:[%s4731_s0 + %s4033_s15]]   ;;  %s4037_s15 = smov 19  }
  0x16   :  { %4776 = sst [smem:[#allocation17_spill]] %s4130_s30 }
  0x17   :  { %s4150_s27 = sld [smem:[%s4731_s0 + %s4034_s22]]   ;;  %s4038_s22 = smov 20  }
  0x18   :  { %s4155_s4 = sld [smem:[%s4731_s0 + %s4035_s28]]   ;;  %s4039_s28 = smov 21  }
  0x19   :  { %4777 = sst [smem:[#allocation18_spill]] %s4135_s6 }
  0x1a   :  { %s4160_s17 = sld [smem:[%s4731_s0 + %s4036_s7]]   ;;  %s4040_s7 = smov 22  }
  0x1b   :  { %4778 = sst [smem:[#allocation19_spill]] %s4145_s20 }
  0x1c   :  { %s4165_s6 = sld [smem:[%s4731_s0 + %s4037_s15]]   ;;  %s4041_s15 = smov 23  }
  0x1d   :  { %4779 = sst [smem:[#allocation20_spill]] %s4150_s27 }
  0x1e   :  { %4780 = sst [smem:[#allocation21_spill]] %s4155_s4 }
  0x1f   :  { %s4170_s27 = sld [smem:[%s4731_s0 + %s4038_s22]]   ;;  %s4042_s22 = smov 24  }
  0x20   :  { %4781 = sst [smem:[#allocation22_spill]] %s4160_s17 }
  0x21   :  { %s4175_s4 = sld [smem:[%s4731_s0 + %s4039_s28]]   ;;  %s4043_s28 = smov 25  }
  0x22   :  { %4782 = sst [smem:[#allocation23_spill]] %s4165_s6 }
  0x23   :  { %s4180_s17 = sld [smem:[%s4731_s0 + %s4040_s7]]   ;;  %s4044_s7 = smov 26  }
  0x24   :  { %s4185_s6 = sld [smem:[%s4731_s0 + %s4041_s15]]   ;;  %s4045_s15 = smov 27  }
  0x25   :  { %s4190_s20 = sld [smem:[%s4731_s0 + %s4042_s22]]   ;;  %s4046_s22 = smov 28  }
  0x26   :  { %s4210_s30 = sld [smem:[%s4731_s0 + %s4046_s22]]   ;;  %s4050_s22 = smov 32  }
  0x27   :  { %4783 = sst [smem:[#allocation24_spill]] %s4175_s4 }
  0x28   :  { %s4195_s4 = sld [smem:[%s4731_s0 + %s4043_s28]]   ;;  %s4047_s28 = smov 29  }
  0x29   :  { %4784 = sst [smem:[#allocation25_spill]] %s4180_s17 }
  0x2a   :  { %4785 = sst [smem:[#allocation26_spill]] %s4185_s6 }
  0x2b   :  { %s4200_s17 = sld [smem:[%s4731_s0 + %s4044_s7]]   ;;  %s4048_s7 = smov 30  }
  0x2c   :  { %s4205_s6 = sld [smem:[%s4731_s0 + %s4045_s15]]   ;;  %s4049_s15 = smov 31  }
  0x2d   :  { %4789 = sst [smem:[#allocation30_spill]] %s4210_s30 }
  0x2e   :  { %4786 = sst [smem:[#allocation27_spill]] %s4195_s4 }
  0x2f   :  { %s4215_s9 = sld [smem:[%s4731_s0 + %s4047_s28]]  }
  0x30   :  { %s4230_s30 = sld [smem:[%s4731_s0 + %s4050_s22]]  }
  0x31   :  { %4787 = sst [smem:[#allocation28_spill]] %s4200_s17 }
  0x32   :  { %4788 = sst [smem:[#allocation29_spill]] %s4205_s6 }
  0x33   :  { %s4220_s17 = sld [smem:[%s4731_s0 + %s4048_s7]]  }
  0x34   :  { %s4225_s6 = sld [smem:[%s4731_s0 + %s4049_s15]]  }
  0x35   :  { %4790 = sst [smem:[#allocation31_spill]] %s4215_s9 }
  0x36   :  { %4793 = sst [smem:[#allocation34_spill]] %s4230_s30 }
  0x39   :  { %4791 = sst [smem:[#allocation32_spill]] %s4220_s17 }
  0x3a   :  { %4792 = sst [smem:[#allocation33_spill]] %s4225_s6 }
  0x3b   :  { %70 = vsyncpa [#allocation3], 0 }
  0x3c   :  { %71 = vsyncpa [#allocation6], 0 }
  0x3d   :  { %72 = vsyncpa [#allocation4], 0 }
  0x3e   :  { %74 = vsyncpa [#allocation4 + $0x1], 0  ;;  %s4232_s28 = smov 0   ;;  %s4234_s1 = smov 0  }
  0x3f   :  { %s4236_s2 = smov 0   ;;  %s4238_s7 = smov 0  }
  0x40 LB: > { %s4794_s8 = sld [smem:[#allocation16_spill]]  ;;  %s4253_s0 = sadd.s32 4294967295, %s4017_s7   ;;  %s4005_s28 = sphi %s4232_s28, %s4849_s28   ;;  %s4017_s7 = sphi %s4238_s7, %s4848_s7   ;;  %s4013_s2 = sphi %s4236_s2, %s4851_s2   ;;  %s4009_s1 = sphi %s4234_s1, %s4850_s1  }
  0x41   : > { %s4795_s4 = sld [smem:[#allocation27_spill]]  ;;  %s3479_s10 = sadd.s32 4294967294, %s4017_s7  }
  0x42   : > { %s4796_s3 = sld [smem:[#allocation15_spill]]  ;;  %s4257_s11 = sadd.s32 1, %s4017_s7  }
  0x43   : > { %s4797_s9 = sld [smem:[#allocation31_spill]]  ;;  %s779_s15 = sadd.s32 1, %s4013_s2 }
  0x44   : > { %s4798_s6 = sld [smem:[#allocation33_spill]]  ;;  %s776_s16 = ssub.s32 %s4017_s7, %s4257_s11 }
  0x45   : > { %4799 = sst [smem:[#allocation35_spill]] %s4005_s28  ;;  %p789_p0 = scmp.ne.s32.totalorder %s4013_s2, %s4009_s1 }
  0x46   : > { %4800 = sst [smem:[#allocation36_spill]] %s4009_s1  ;;  %p777_p1 = scmp.eq.s32.totalorder %s776_s16, 0 }
  0x47   : > { %4801 = sst [smem:[#allocation37_spill]] %s4013_s2  ;;  %p790_p2 = scmp.eq.s32.totalorder %s4253_s0, 1 }
  0x48   : > { %4802 = sst [smem:[#allocation38_spill]] %s4017_s7  ;;  %p795_p3 = scmp.ne.s32.totalorder %s4009_s1, %s4005_s28 }
  0x49   : > { %4803 = sst [smem:[#allocation39_spill]] %s4257_s11  ;;  %p796_p4 = scmp.eq.s32.totalorder %s3479_s10, 1 }
  0x4a   : > { %s4268_s18 = scalar_select %p777_p1, %s4013_s2, %s779_s15  }
  0x4b   : > { %p4270_p5 = por %p790_p2, %p789_p0  ;;  %p4274_p6 = por %p796_p4, %p795_p3 }
  0x4c   : > { %4804 = sst [smem:[#allocation40_spill]] %s4268_s18  ;;  %p3480_p7 = scmp.ge.s32.totalorder %s4017_s7, 1 }
  0x4d   : > { %s4805_s22 = scalar_select %p4270_p5, 1, 0 }
  0x4e   : > { %s4807_s23 = scalar_select %p4274_p6, 1, 0 }
  0x4f   : > { %4806 = sst [smem:[#allocation41_spill]] %s4805_s22  ;;  %p803_p8 = scmp.lt.s32.totalorder %s4017_s7, 3 }
  0x50   : > { %4808 = sst [smem:[#allocation42_spill]] %s4807_s23  ;;  %p3661_p9 = scmp.eq.s32.totalorder %s4253_s0, 0 }
  0x51   : > { %p4281_p10 = pnand %p3480_p7, %p803_p8  ;;  %s900_s16 = sshll.u32 %s4797_s9, 4  ;;  %s901_s16 = int_to_ptr.hbm [resolvable:$true] %s900_s16 }
  0x52   : > { %s4051_s10 = smov [#allocation5]   ;;  %s862_s2 = sshll.u32 %s4170_s27, 4  ;;  %s4295_s2 = int_to_ptr.hbm [resolvable:$true] %s862_s2 }
  0x53   : > { %p3647_p11 = pneg %p4281_p10  ;;  %s902_s15 = sshll.u32 %s4051_s10, 4  ;;  %s903_s15 = int_to_ptr.vmem [resolvable:$true] %s902_s15 }
  0x54   : > { %s3857_s11 = sshra.s32 %s901_s16, 4  ;;  %s3864_s10 = scalar_lea.hbm %s4797_s9, 2  ;;  %s3858_s11 = int_to_ptr.hbm [resolvable:$true] %s3857_s11 }
  0x55   : > { %p4290_p12 = pnand %p3661_p9, %p3647_p11  ;;  %s3859_s23 = scalar_lea.hbm %s3858_s11, 2 }
  0x56   : > { %p3860_p13 = scmp.ne.s32.totalorder %s3858_s11, %s3859_s23  ;;  %p3865_p3 = scmp.lt.s32.totalorder %s3858_s11, %s4797_s9 }
  0x57   : > { %p3861_p0 = pneg %p4290_p12  ;;  %p3866_p4 = scmp.lt.s32.totalorder %s3864_s10, %s3859_s23 }
  0x59   : > { %p3862_p1 = pnand %p3861_p0, %p3860_p13  ;;  %p3867_p7 = por %p3866_p4, %p3865_p3 }
  0x5b   : > { %p3863_p2 = pneg %p3862_p1 }
  0x5d   : > { %p3868_p8 = pnand %p3867_p7, %p3863_p2 }
  0x5f   : > { %3871 = shalt.err (!%p3868_p8)
}
  0x60   : > { %s4052_s28 = smov 16   ;;  %s4053_s7 = smov 1  }
  0x61   : > { %3653 = dma.hbm_to_vmem [thread:$0]  (!%p4290_p12), %s901_s16, 32, %s903_s15, [#allocation6], %s4052_s28, %s4052_s28, %s4053_s7  }
  0x62   : > { %s4054_s22 = smov [#allocation2]   ;;  %s3887_s17 = sshra.s32 %s4295_s2, 4  ;;  %s3888_s17 = int_to_ptr.hbm [resolvable:$true] %s3887_s17 }
  0x63   : > { %s864_s30 = sshll.u32 %s4054_s22, 4  ;;  %s3889_s1 = scalar_lea.hbm %s3888_s17, 64  ;;  %s865_s30 = int_to_ptr.vmem [resolvable:$true] %s864_s30 }
  0x64   : > { %p3890_p11 = scmp.ne.s32.totalorder %s3888_s17, %s3889_s1  ;;  %s3894_s11 = scalar_lea.hbm %s4170_s27, 64 }
  0x65   : > { %p3895_p2 = scmp.lt.s32.totalorder %s3888_s17, %s4170_s27  ;;  %p3896_p3 = scmp.lt.s32.totalorder %s3894_s11, %s3889_s1 }
  0x66   : > { %p3892_p13 = pnand %p3890_p11, %p3861_p0 }
  0x67   : > { %p3897_p4 = por %p3896_p3, %p3895_p2 }
  0x68   : > { %p3893_p1 = pneg %p3892_p13 }
  0x6a   : > { %p3898_p7 = pnand %p3897_p4, %p3893_p1 }
  0x6c   : > { %3901 = shalt.err (!%p3898_p7)
}
  0x6d   : > { %s4055_s23 = smov 128   ;;  %s4056_s28 = smov 8  }
  0x6e   : > { %3650 = dma.hbm_to_vmem [thread:$0]  (!%p4290_p12), %s4295_s2, 1024, %s865_s30, [#allocation3], %s4055_s23, %s4055_s23, %s4056_s28  }
  0x6f   : > { %s918_s7 = sshll.u32 %s4798_s6, 4  ;;  %s4057_s22 = smov [#allocation7]   ;;  %s919_s7 = int_to_ptr.hbm [resolvable:$true] %s918_s7 }
  0x70   : > { %s920_s16 = sshll.u32 %s4057_s22, 4  ;;  %s3917_s17 = sshra.s32 %s919_s7, 4  ;;  %s921_s16 = int_to_ptr.vmem [resolvable:$true] %s920_s16  ;;  %s3918_s17 = int_to_ptr.hbm [resolvable:$true] %s3917_s17 }
  0x71   : > { %s3919_s1 = scalar_lea.hbm %s3918_s17, 1  ;;  %s3924_s15 = scalar_lea.hbm %s4798_s6, 1 }
  0x72   : > { %p3920_p8 = scmp.ne.s32.totalorder %s3918_s17, %s3919_s1  ;;  %p3925_p1 = scmp.lt.s32.totalorder %s3918_s17, %s4798_s6 }
  0x73   : > { %p3926_p2 = scmp.lt.s32.totalorder %s3924_s15, %s3919_s1 }
  0x74   : > { %p3922_p11 = pnand %p3920_p8, %p3861_p0 }
  0x75   : > { %p3927_p3 = por %p3926_p2, %p3925_p1 }
  0x76   : > { %p3923_p13 = pneg %p3922_p11 }
  0x78   : > { %p3928_p4 = pnand %p3927_p3, %p3923_p13 }
  0x7a   : > { %3931 = shalt.err (!%p3928_p4)
}
  0x7b   : > { %3656 = dma.hbm_to_vmem [thread:$0]  (!%p4290_p12), %s919_s7, 16, %s921_s16, [#allocation6]  }
  0x7c   : > { %961 = sbr.rel (%p4281_p10) target bundleno = 7850 (0x1eaa), region = 148 }
  0x81   : > { %3992 = dma.done.wait (%p3661_p9), [#allocation3], 1024  }
  0x82   : > { %3994 = vsyncadd (%p3661_p9), [#allocation3], 4294966272 }
  0x83   : > { %3996 = dma.done.wait (%p3661_p9), [#allocation6], 48  }
  0x84   : > { %3998 = vsyncadd (%p3661_p9), [#allocation6], 4294967248  ;;  %s4811_s5 = sld [smem:[#allocation12_spill]]  ;;  %p1065_p0 = scmp.lt.s32.totalorder %s4253_s0, 1  ;;  %vm1087_vm0 = vcmask 261120   ;;  %v4058_v2 = vmov 32.0  }
  0x85   : > { %3777 = vrcp.f32 %v4058_v2  ;;  %v1128_v14 = vld [vmem:[%s4090_s21 + $0x18] sm:$0xff]  ;;  %v1127_v17 = vld [vmem:[%s4090_s21 + $0x10] sm:$0xff]  ;;  %v1126_v20 = vld [vmem:[%s4090_s21 + $0x8] sm:$0xff]  ;;  %vm1217_vm5 = vcmask 64512   ;;  %s4755_s26 = smov 112   ;;  %s4757_s10 = smov 120  }
  0x86   : > { %s1066_s30 = scalar_select %p1065_p0, %s4253_s0, 1  ;;  %v1133_v15 = vld [vmem:[%s4100_s29 + $0x18] sm:$0xff]  ;;  %1163 = vmatpush.msra.mxu0 %v1128_v14  ;;  %v1132_v18 = vld [vmem:[%s4100_s29 + $0x10] sm:$0xff]  ;;  %v1131_v21 = vld [vmem:[%s4100_s29 + $0x8] sm:$0xff]  ;;  %vm2147_vm12 = vcmask 523264  }
  0x87   : > { %v1138_v16 = vld [vmem:[%s4794_s8 + $0x18] sm:$0xff]  ;;  %1186 = vmatpush.msra.mxu1 %v1133_v15  ;;  %v1137_v19 = vld [vmem:[%s4794_s8 + $0x10] sm:$0xff]  ;;  %v1136_v22 = vld [vmem:[%s4794_s8 + $0x8] sm:$0xff]  ;;  %s4759_s11 = smov 104   ;;  %s4812_s28 = sld [smem:[#allocation13_spill]] }
  0x88   : > { %s4335_s2 = sshll.u32 %s1066_s30, 3  ;;  %1209 = vmatpush.msra.mxu2 %v1138_v16  ;;  %1164 = vmatpush.msra.mxu0 %v1127_v17  ;;  %v1125_v23 = vld [vmem:[%s4090_s21] sm:$0xff]  ;;  %s4813_s7 = sld [smem:[#allocation17_spill]] }
  0x89   : > { %1187 = vmatpush.msra.mxu1 %v1132_v18  ;;  %v1130_v24 = vld [vmem:[%s4100_s29] sm:$0xff]  ;;  %s1076_s23 = scalar_lea.vmem %s4080_s13, %s4335_s2  ;;  %s4815_s17 = sld [smem:[#allocation28_spill]] }
  0x8a   : > { %s1068_s18 = scalar_lea.vmem %s4811_s5, %s4335_s2  ;;  %1210 = vmatpush.msra.mxu2 %v1137_v19  ;;  %1165 = vmatpush.msra.mxu0 %v1126_v20  ;;  %v1135_v25 = vld [vmem:[%s4794_s8] sm:$0xff]  ;;  %s4816_s1 = sld [smem:[#allocation29_spill]] }
  0x8b   : > { %v4339_v0 = vld [vmem:[%s1068_s18] sm:$0xff]  ;;  %v3778_v3 = vpop.eup %3777  ;;  %1188 = vmatpush.msra.mxu1 %v1131_v21  ;;  %s4818_s30 = sld [smem:[#allocation19_spill]] }
  0x8c   : > { %v1088_v1 = vsel %vm1087_vm0, %v4339_v0, 0.0  ;;  %v1092_v4 = vmul.f32 32.0, %v3778_v3  ;;  %vm1096_vm1 = vweird.f32 %v3778_v3  ;;  %1211 = vmatpush.msra.mxu2 %v1136_v22  ;;  %1166 = vmatpush.msra.mxu0 %v1125_v23  ;;  %v3743_v35 = vld [vmem:[%s4190_s20] ss:$0 sm:$0xff]  ;;  %s4819_s18 = sld [smem:[#allocation18_spill]] }
  0x8d   : > { %1089 = vadd.xlane.f32.xlu0 %v1088_v1  ;;  %1189 = vmatpush.msra.mxu1 %v1130_v24  ;;  %v3744_v38 = vld [vmem:[%s4795_s4] ss:$0 sm:$0xff]  ;;  %s1072_s16 = scalar_lea.vmem %s4812_s28, %s4335_s2  ;;  %s4821_s28 = sld [smem:[#allocation20_spill]] }
  0x8e   : > { %v1093_v5 = vsub.f32 1.0, %v1092_v4  ;;  %1212 = vmatpush.msra.mxu2 %v1135_v25  ;;  %v3746_v41 = vld [vmem:[%s4796_s3] ss:$0 sm:$0xff]  ;;  %s4814_s22 = smov %s4813_s7 }
  0x8f   : > { %v3745_v43 = vld [vmem:[%s4095_s25] ss:$0 sm:$0xff] }
  0x90   : > { %v1094_v6 = vmul.f32 %v3778_v3, %v1093_v5  ;;  %v3747_v46 = vld [vmem:[%s4115_s14] ss:$0 sm:$0xff]  ;;  %s4817_s15 = smov %s4816_s1 }
  0x91   : > { %v4385_v54 = vld [vmem:[%s1076_s23] sm:$0xff]  ;;  %s4820_s23 = sld [smem:[#allocation14_spill]] }
  0x92   : > { %v1095_v7 = vadd.f32 %v3778_v3, %v1094_v6  ;;  %v1140_v18 = vld [vmem:[%s4120_s19] sm:$0xff] }
  0x94   : > { %v4343_v8 = vsel %vm1096_vm1, %v3778_v3, %v1095_v7 }
 0x100   : > { %v1090_v9 = vpop.xlane.xlu0 %1089 }
 0x101   : > { %v1098_v10 = vmul.f32 %v4343_v8, %v1090_v9 }
 0x103   : > { %v1099_v11 = vsub.f32 %v4339_v0, %v1098_v10 }
 0x105   : > { %v1100_v12 = vmul.f32 %v1099_v11, %v1099_v11 }
 0x107   : > { %v1101_v13 = vsel %vm1087_vm0, %v1100_v12, 0.0 }
 0x108   : > { %1102 = vadd.xlane.f32.xlu0 %v1101_v13 }
 0x17b   : > { %v1103_v26 = vpop.xlane.xlu0 %1102 }
 0x17c   : > { %v1104_v27 = vmul.f32 %v1103_v26, %v4343_v8 }
 0x17e   : > { %v1105_v28 = vadd.f32 1e-06, %v1104_v27 }
 0x180   : > { %3779 = vrsqrt.f32 %v1105_v28  ;;  %vm1112_vm3 = vweird.f32 %v1105_v28 }
 0x186   : > { %v3780_v29 = vpop.eup %3779 }
 0x187   : > { %v1107_v30 = vmul.f32 %v3780_v29, %v1105_v28  ;;  %vm1113_vm2 = vweird.f32 %v3780_v29 }
 0x188   : > { %vm1114_vm4 = vmor %vm1112_vm3, %vm1113_vm2 }
 0x189   : > { %v1108_v31 = vmul.f32 %v3780_v29, %v1107_v30 }
 0x18b   : > { %v1109_v32 = vmul.f32 0.5, %v1108_v31 }
 0x18d   : > { %v1110_v33 = vsub.f32 1.5, %v1109_v32 }
 0x18f   : > { %v1111_v34 = vmul.f32 %v3780_v29, %v1110_v33 }
 0x191   : > { %v1115_v36 = vsel %vm1114_vm4, %v3780_v29, %v1111_v34 }
 0x192   : > { %v1116_v37 = vmul.f32 %v1115_v36, %v1099_v11  ;;  %v1142_v36 = vld [vmem:[%s4120_s19 + $0x10] sm:$0xff] }
 0x194   : > { %v1120_v39 = vmul.f32 %v3743_v35, %v1116_v37  ;;  %v1141_v35 = vld [vmem:[%s4120_s19 + $0x8] sm:$0xff] }
 0x195   : > { %1366 = vmatpush.msrb.mxu2 %v1141_v35  ;;  %v3752_v35 = vld [vmem:[%s4819_s18] ss:$0 sm:$0xff] }
 0x196   : > { %v1124_v40 = vadd.f32 %v3744_v38, %v1120_v39 }
 0x198   : > { %3494 = vmatmul.msk.f32.vlgmr.msra.gmra.mxu0 %vm1087_vm0, %v1124_v40  ;;  %3495 = vmatmul.msk.f32.vlgmr.msra.gmra.mxu1 %vm1087_vm0, %v1124_v40 }
 0x199   : > { %3496 = vmatmul.msk.f32.vlgmr.msra.gmra.mxu2 %vm1087_vm0, %v1124_v40 }
 0x19a   : > { %1479 = vmatpush.msra.mxu2 %v1142_v36 }
 0x215   : > { %v1191_v42 = vpop.f32.mrf.mxu1  ;;  %v1168_v45 = vpop.f32.mrf.mxu0 }
 0x216   : > { %v1192_v44 = vadd.f32 %v3746_v41, %v1191_v42  ;;  %v1169_v47 = vadd.f32 %v3745_v43, %v1168_v45 }
 0x218   : > { %1396 = vrot.lane.b32.xlu0 %v1192_v44, %s4755_s26  ;;  %1282 = vrot.lane.b32.xlu2 %v1192_v44, %s4757_s10 }
 0x219   : > { %3497 = vmatpush.xpose.msk.msrb.mxu0 %vm1217_vm5, %v1192_v44 }
 0x21c   : > { %v1214_v48 = vpop.f32.mrf.mxu2  ;;  %3498 = vmatmul.msk.f32.vlgmr.msrb.gmra.mxu0 %vm1217_vm5, %v1169_v47 }
 0x21d   : > { %v4373_v49 = vadd.f32 %v3747_v46, %v1214_v48 }
 0x21f   : > { %1275 = vmatpush.msra.mxu3 %v4373_v49 }
 0x220   : > { %1280 = vrot.lane.b32.xlu2 %v1169_v47, %s4757_s10 }
 0x221   : > { %1389 = vmatpush.msrb.mxu3 %v1140_v18 }
 0x228   : > { %1394 = vrot.lane.b32.xlu2 %v1169_v47, %s4755_s26 }
 0x230   : > { %1485 = vrot.lane.b32.xlu2 %v1169_v47, %s4759_s11 }
 0x272   : > { %v1283_v50 = vpop.permute.xlu2 %1282 }
 0x273   : > { %3500 = vmatpush.xpose.msk.msra.mxu0 %vm1217_vm5, %v1283_v50 }
 0x27a   : > { %v1281_v51 = vpop.permute.xlu2 %1280 }
 0x27b   : > { %3501 = vmatmul.msk.f32.vlgmr.msra.gmra.mxu0 %vm1217_vm5, %v1281_v51 }
 0x282   : > { %v1395_v53 = vpop.permute.xlu2 %1394 }
 0x28a   : > { %v1397_v52 = vpop.permute.xlu0 %1396  ;;  %v1486_v10 = vpop.permute.xlu2 %1485 }
 0x28b   : > { %3505 = vmatpush.xpose.msk.msrb.mxu0 %vm1217_vm5, %v1397_v52 }
 0x28e   : > { %3506 = vmatmul.msk.f32.vlgmr.msrb.gmra.mxu0 %vm1217_vm5, %v1395_v53 }
 0x299   : > { %v1241_v55 = vpop.f32.mrf.mxu0 }
 0x29a   : > { %v1244_v56 = vmul.f32 0.35355338, %v1241_v55  ;;  %v1143_v55 = vld [vmem:[%s4120_s19 + $0x18] sm:$0xff] }
 0x29c   : > { %v1245_v57 = vadd.f32 %v1244_v56, %v4385_v54 }
 0x29e   : > { %v1246_v58 = vsel %vm1217_vm5, %v1245_v57, -inf }
 0x29f   : > { %1247 = vmax.xlane.f32.xlu1 %v1246_v58 }
 0x2f8   : > { %v1305_v59 = vpop.f32.mrf.mxu0 }
 0x2f9   : > { %v1308_v60 = vmul.f32 0.35355338, %v1305_v59 }
 0x2fb   : > { %v1309_v61 = vadd.f32 %v1308_v60, %v4385_v54 }
 0x2fd   : > { %v1310_v62 = vsel %vm1217_vm5, %v1309_v61, -inf }
 0x2fe   : > { %1311 = vmax.xlane.f32.xlu2 %v1310_v62 }
 0x30b   : > { %v1419_v63 = vpop.f32.mrf.mxu0 }
 0x30c   : > { %v1422_v1 = vmul.f32 0.35355338, %v1419_v63 }
 0x30e   : > { %v1423_v2 = vadd.f32 %v1422_v1, %v4385_v54 }
 0x310   : > { %v1424_v3 = vsel %vm1217_vm5, %v1423_v2, -inf }
 0x311   : > { %1425 = vmax.xlane.f32.xlu0 %v1424_v3 }
 0x312   : > { %v1248_v4 = vpop.xlane.xlu1 %1247 }
 0x313   : > { %v1249_v5 = vsub.f32 %v1245_v57, %v1248_v4 }
 0x315   : > { %v1250_v6 = vmul.f32 1.442695, %v1249_v5 }
 0x317   : > { %3781 = vpow2.f32 %v1250_v6 }
 0x31d   : > { %v3782_v7 = vpop.eup %3781 }
 0x31e   : > { %v1252_v9 = vsel %vm1217_vm5, %v3782_v7, 0.0 }
 0x31f   : > { %1253 = vadd.xlane.f32.xlu1 %v1252_v9  ;;  %v1621_v9 = vld [vmem:[%s4140_s12 + $0x18] sm:$0xff] }
 0x338   : > { %1487 = vrot.lane.b32.xlu1 %v1192_v44, %s4759_s11 }
 0x371   : > { %v1312_v11 = vpop.xlane.xlu2 %1311 }
 0x372   : > { %v1313_v12 = vsub.f32 %v1309_v61, %v1312_v11  ;;  %v1618_v11 = vld [vmem:[%s4140_s12] sm:$0xff] }
 0x374   : > { %v1314_v13 = vmul.f32 1.442695, %v1313_v12  ;;  %v4435_v12 = vld [vmem:[%s1072_s16] sm:$0xff]  ;;  %s4822_s16 = smov %s4821_s28 }
 0x376   : > { %3783 = vpow2.f32 %v1314_v13  ;;  %v1616_v13 = vld [vmem:[%s4813_s7 + $0x18] sm:$0xff]  ;;  %s1080_s7 = scalar_lea.vmem %s4820_s23, %s4335_s2  ;;  %s4825_s2 = sld [smem:[#allocation22_spill]] }
 0x37c   : > { %v3784_v14 = vpop.eup %3783  ;;  %s4826_s23 = smov %s4825_s2 }
 0x37d   : > { %v1316_v15 = vsel %vm1217_vm5, %v3784_v14, 0.0 }
 0x37e   : > { %1317 = vadd.xlane.f32.xlu2 %v1316_v15  ;;  %v1614_v15 = vld [vmem:[%s4814_s22 + $0x8] sm:$0xff] }
 0x384   : > { %v1426_v16 = vpop.xlane.xlu0 %1425 }
 0x385   : > { %v1427_v17 = vsub.f32 %v1423_v2, %v1426_v16  ;;  %v1613_v16 = vld [vmem:[%s4814_s22] sm:$0xff] }
 0x387   : > { %v1428_v19 = vmul.f32 1.442695, %v1427_v17 }
 0x389   : > { %3785 = vpow2.f32 %v1428_v19 }
 0x38f   : > { %v3786_v20 = vpop.eup %3785 }
 0x390   : > { %v1430_v21 = vsel %vm1217_vm5, %v3786_v20, 0.0 }
 0x391   : > { %1431 = vadd.xlane.f32.xlu0 %v1430_v21 }
 0x392   : > { %v1254_v22 = vpop.xlane.xlu1 %1253 }
 0x393   : > { %3787 = vrcp.f32 %v1254_v22 }
 0x396   : > { %1322 = vrot.lane.b32.xlu2 %v4373_v49, %s4757_s10 }
 0x399   : > { %v3788_v23 = vpop.eup %3787 }
 0x39a   : > { %v1256_v24 = vmul.f32 %v3788_v23, %v3782_v7 }
 0x39c   : > { %3499 = vmatmul.msk.f32.vlgmr.msra.gmra.mxu3 %vm1217_vm5, %v1256_v24 }
 0x3a5   : > { %1435 = vrot.lane.b32.xlu0 %v4373_v49, %s4755_s26 }
 0x3aa   : > { %v1488_v25 = vpop.permute.xlu1 %1487 }
 0x3ab   : > { %3509 = vmatpush.xpose.msk.msra.mxu3 %vm1217_vm5, %v1488_v25 }
 0x3f1   : > { %v1318_v26 = vpop.xlane.xlu2 %1317 }
 0x3f2   : > { %3789 = vrcp.f32 %v1318_v26  ;;  %v3749_v26 = vld [vmem:[%s4815_s17] ss:$0 sm:$0xff] }
 0x3f8   : > { %v3790_v27 = vpop.eup %3789 }
 0x3f9   : > { %v1323_v28 = vpop.permute.xlu2 %1322  ;;  %v1320_v29 = vmul.f32 %v3790_v27, %v3784_v14  ;;  %v1615_v14 = vld [vmem:[%s4814_s22 + $0x10] sm:$0xff] }
 0x3fa   : > { %1343 = vmatpush.msrb.mxu1 %v1323_v28 }
 0x3fb   : > { %3502 = vmatmul.msk.f32.vlgmr.msrb.gmra.mxu1 %vm1217_vm5, %v1320_v29  ;;  %v3750_v29 = vld [vmem:[%s4816_s1] ss:$0 sm:$0xff]  ;;  %s4823_s1 = sld [smem:[#allocation21_spill]] }
 0x404   : > { %v1432_v30 = vpop.xlane.xlu0 %1431 }
 0x405   : > { %3791 = vrcp.f32 %v1432_v30 }
 0x40b   : > { %v3792_v31 = vpop.eup %3791 }
 0x40c   : > { %v1434_v32 = vmul.f32 %v3792_v31, %v3786_v20 }
 0x417   : > { %v1436_v33 = vpop.permute.xlu0 %1435 }
 0x418   : > { %1456 = vmatpush.msra.mxu1 %v1436_v33 }
 0x419   : > { %3507 = vmatmul.msk.f32.vlgmr.msra.gmra.mxu1 %vm1217_vm5, %v1434_v32  ;;  %v3751_v32 = vld [vmem:[%s4818_s30] ss:$0 sm:$0xff] }
 0x41a   : > { %1570 = vmatpush.msrb.mxu1 %v1143_v55 }
 0x41f   : > { %v1277_v34 = vpop.f32.mrf.mxu3 }
 0x420   : > { %3504 = vmatmul.msk.f32.vlgmr.msrb.gmra.mxu3 %vm1217_vm5, %v1277_v34 }
 0x421   : > { %1677 = vmatpush.msrb.mxu3 %v1621_v9 }
 0x428   : > { %3510 = vmatmul.msk.f32.vlgmr.msra.gmra.mxu3 %vm1217_vm5, %v1486_v10  ;;  %v1619_v10 = vld [vmem:[%s4140_s12 + $0x8] sm:$0xff] }
 0x478   : > { %v1345_v37 = vpop.f32.mrf.mxu1 }
 0x479   : > { %3503 = vmatmul.msk.f32.vlgmr.msrb.gmra.mxu2 %vm1217_vm5, %v1345_v37 }
 0x47a   : > { %1651 = vmatpush.msrb.mxu2 %v1616_v13 }
 0x47c   : > { %1652 = vmatpush.msrb.mxu2 %v1615_v14 }
 0x47e   : > { %1653 = vmatpush.msrb.mxu2 %v1614_v15 }
 0x480   : > { %1654 = vmatpush.msrb.mxu2 %v1613_v16 }
 0x496   : > { %v1458_v38 = vpop.f32.mrf.mxu1 }
 0x497   : > { %3508 = vmatmul.msk.f32.vlgmr.msra.gmra.mxu2 %vm1217_vm5, %v1458_v38 }
 0x4a3   : > { %v1391_v39 = vpop.f32.mrf.mxu3 }
 0x4ab   : > { %v1510_v40 = vpop.f32.mrf.mxu3 }
 0x4ac   : > { %v1513_v41 = vmul.f32 0.35355338, %v1510_v40 }
 0x4ae   : > { %v1514_v42 = vadd.f32 %v1513_v41, %v4385_v54  ;;  %v4458_v41 = vld [vmem:[%s1080_s7] sm:$0xff]  ;;  %s4828_s7 = sld [smem:[#allocation23_spill]] }
 0x4b0   : > { %v1515_v43 = vsel %vm1217_vm5, %v1514_v42, -inf }
 0x4b1   : > { %1516 = vmax.xlane.f32.xlu1 %v1515_v43 }
 0x4fc   : > { %v1368_v57 = vpop.f32.mrf.mxu2 }
 0x4fd   : > { %v1392_v59 = vadd.f32 %v1391_v39, %v1368_v57  ;;  %v3753_v57 = vld [vmem:[%s4823_s1] ss:$0 sm:$0xff] }
 0x51a   : > { %v1481_v58 = vpop.f32.mrf.mxu2 }
 0x51b   : > { %v1484_v60 = vadd.f32 %v1481_v58, %v1392_v59 }
 0x524   : > { %v1517_v44 = vpop.xlane.xlu1 %1516 }
 0x525   : > { %v1518_v45 = vsub.f32 %v1514_v42, %v1517_v44 }
 0x527   : > { %v1519_v46 = vmul.f32 1.442695, %v1518_v45 }
 0x529   : > { %3793 = vpow2.f32 %v1519_v46  ;;  %v1626_v46 = vld [vmem:[%s4821_s28 + $0x18] sm:$0xff]  ;;  %s4827_s28 = smov 112  }
 0x52f   : > { %v3794_v47 = vpop.eup %3793 }
 0x530   : > { %v1521_v48 = vsel %vm1217_vm5, %v3794_v47, 0.0 }
 0x531   : > { %1522 = vadd.xlane.f32.xlu1 %v1521_v48  ;;  %v1624_v48 = vld [vmem:[%s4822_s16 + $0x8] sm:$0xff] }
 0x54a   : > { %1526 = vrot.lane.b32.xlu1 %v4373_v49, %s4759_s11  ;;  %v3748_v49 = vld [vmem:[%s4125_s24] ss:$0 sm:$0xff] }
 0x5a4   : > { %v1523_v50 = vpop.xlane.xlu1 %1522 }
 0x5a5   : > { %3795 = vrcp.f32 %v1523_v50  ;;  %v1623_v50 = vld [vmem:[%s4822_s16] sm:$0xff] }
 0x5ab   : > { %v3796_v51 = vpop.eup %3795 }
 0x5ac   : > { %v1525_v52 = vmul.f32 %v3796_v51, %v3794_v47  ;;  %v1625_v47 = vld [vmem:[%s4822_s16 + $0x10] sm:$0xff] }
 0x5bc   : > { %v1527_v53 = vpop.permute.xlu1 %1526 }
 0x5bd   : > { %1547 = vmatpush.msra.mxu0 %v1527_v53 }
 0x5be   : > { %3511 = vmatmul.msk.f32.vlgmr.msra.gmra.mxu0 %vm1217_vm5, %v1525_v52 }
 0x5bf   : > { %1700 = vmatpush.msrb.mxu0 %v1626_v46 }
 0x5c1   : > { %1701 = vmatpush.msrb.mxu0 %v1625_v47 }
 0x5c3   : > { %1702 = vmatpush.msrb.mxu0 %v1624_v48 }
 0x5c5   : > { %1703 = vmatpush.msrb.mxu0 %v1623_v50 }
 0x5c6   : > { %3515 = vmatmul.msk.f32.vlgmr.msrb.gmra.mxu0 %vm1087_vm0, %v4435_v12 }
 0x63b   : > { %v1549_v56 = vpop.f32.mrf.mxu0 }
 0x63c   : > { %3512 = vmatmul.msk.f32.vlgmr.msrb.gmra.mxu1 %vm1217_vm5, %v1549_v56 }
 0x643   : > { %v1705_v58 = vpop.f32.mrf.mxu0 }
 0x644   : > { %v4473_v59 = vadd.f32 %v3753_v57, %v1705_v58 }
 0x646   : > { %1765 = vmatpush.msra.mxu2 %v4473_v59 }
 0x6b9   : > { %v1572_v61 = vpop.f32.mrf.mxu1 }
 0x6ba   : > { %v1575_v62 = vadd.f32 %v1572_v61, %v1484_v60  ;;  %v1628_v60 = vld [vmem:[%s4825_s2] sm:$0xff]  ;;  %s4832_s2 = sld [smem:[#allocation30_spill]] }
 0x6bc   : > { %v1579_v63 = vadd.f32 %v3748_v49, %v1575_v62 }
 0x6be   : > { %v4422_v1 = vadd.f32 %v1579_v63, %v4339_v0  ;;  %v1620_v0 = vld [vmem:[%s4140_s12 + $0x10] sm:$0xff] }
 0x6bf   : > { %1678 = vmatpush.msrb.mxu3 %v1620_v0 }
 0x6c0   : > { %v1583_v2 = vsel %vm1087_vm0, %v4422_v1, 0.0  ;;  %s4833_s5 = smov %s4832_s2 }
 0x6c1   : > { %1584 = vadd.xlane.f32.xlu2 %v1583_v2  ;;  %1679 = vmatpush.msrb.mxu3 %v1619_v10 }
 0x6c3   : > { %1680 = vmatpush.msrb.mxu3 %v1618_v11 }
 0x6c4   : > { %3514 = vmatmul.msk.f32.vlgmr.msrb.gmra.mxu3 %vm1087_vm0, %v4435_v12 }
 0x734   : > { %v1585_v3 = vpop.xlane.xlu2 %1584 }
 0x735   : > { %v1586_v4 = vmul.f32 %v1585_v3, %v4343_v8 }
 0x737   : > { %v1587_v5 = vsub.f32 %v4422_v1, %v1586_v4 }
 0x739   : > { %v1588_v6 = vmul.f32 %v1587_v5, %v1587_v5 }
 0x73b   : > { %v1589_v7 = vsel %vm1087_vm0, %v1588_v6, 0.0 }
 0x73c   : > { %1590 = vadd.xlane.f32.xlu0 %v1589_v7 }
 0x747   : > { %v1682_v33 = vpop.f32.mrf.mxu3 }
 0x748   : > { %v1683_v34 = vadd.f32 %v3751_v32, %v1682_v33 }
 0x74a   : > { %3516 = vmatpush.xpose.msk.msra.mxu1 %vm1217_vm5, %v1683_v34 }
 0x750   : > { %1772 = vrot.lane.b32.xlu0 %v1683_v34, %s4757_s10 }
 0x7af   : > { %v1591_v17 = vpop.xlane.xlu0 %1590 }
 0x7b0   : > { %v1592_v18 = vmul.f32 %v1591_v17, %v4343_v8 }
 0x7b2   : > { %v1593_v19 = vadd.f32 1e-06, %v1592_v18 }
 0x7b4   : > { %3797 = vrsqrt.f32 %v1593_v19  ;;  %vm1600_vm7 = vweird.f32 %v1593_v19 }
 0x7ba   : > { %v3798_v20 = vpop.eup %3797 }
 0x7bb   : > { %v1595_v21 = vmul.f32 %v3798_v20, %v1593_v19  ;;  %vm1601_vm6 = vweird.f32 %v3798_v20 }
 0x7bc   : > { %vm1602_vm8 = vmor %vm1600_vm7, %vm1601_vm6 }
 0x7bd   : > { %v1596_v22 = vmul.f32 %v3798_v20, %v1595_v21 }
 0x7bf   : > { %v1597_v23 = vmul.f32 0.5, %v1596_v22 }
 0x7c1   : > { %v1598_v24 = vsub.f32 1.5, %v1597_v23 }
 0x7c2   : > { %v1773_v38 = vpop.permute.xlu0 %1772 }
 0x7c3   : > { %v1599_v25 = vmul.f32 %v3798_v20, %v1598_v24  ;;  %3519 = vmatpush.xpose.msk.msra.mxu3 %vm1217_vm5, %v1773_v38 }
 0x7c5   : > { %v1603_v27 = vsel %vm1602_vm8, %v3798_v20, %v1599_v25 }
 0x7c6   : > { %v1604_v28 = vmul.f32 %v1603_v27, %v1587_v5 }
 0x7c8   : > { %v1608_v30 = vmul.f32 %v3749_v26, %v1604_v28 }
 0x7ca   : > { %v1612_v31 = vadd.f32 %v3750_v29, %v1608_v30 }
 0x7cc   : > { %3513 = vmatmul.msk.f32.vlgmr.msrb.gmra.mxu2 %vm1087_vm0, %v1612_v31 }
 0x7cd   : > { %1879 = vmatpush.msrb.mxu2 %v1628_v60 }
 0x84f   : > { %v1656_v36 = vpop.f32.mrf.mxu2 }
 0x850   : > { %v1657_v37 = vadd.f32 %v3752_v35, %v1656_v36 }
 0x852   : > { %1975 = vrot.lane.b32.xlu0 %v1657_v37, %s4759_s11  ;;  %3517 = vmatmul.msk.f32.vlgmr.msra.gmra.mxu1 %vm1217_vm5, %v1657_v37 }
 0x85a   : > { %1886 = vrot.lane.b32.xlu0 %v1683_v34, %s4755_s26  ;;  %s4824_s26 = smov %s4823_s1  ;;  %s4830_s1 = sld [smem:[#allocation25_spill]] }
 0x8c4   : > { %v1976_v39 = vpop.permute.xlu0 %1975 }
 0x8cc   : > { %v1887_v40 = vpop.permute.xlu0 %1886 }
 0x8cd   : > { %3524 = vmatpush.xpose.msk.msrb.mxu3 %vm1217_vm5, %v1887_v40 }
 0x8cf   : > { %v1731_v42 = vpop.f32.mrf.mxu1 }
 0x8d0   : > { %v1734_v43 = vmul.f32 0.35355338, %v1731_v42 }
 0x8d2   : > { %v1735_v44 = vadd.f32 %v1734_v43, %v4458_v41  ;;  %v1629_v43 = vld [vmem:[%s4826_s23 + $0x8] sm:$0xff] }
 0x8d3   : > { %1856 = vmatpush.msrb.mxu1 %v1629_v43 }
 0x8d4   : > { %v1736_v45 = vsel %vm1217_vm5, %v1735_v44, -inf }
 0x8d5   : > { %1737 = vmax.xlane.f32.xlu1 %v1736_v45 }
 0x8ee   : > { %1977 = vrot.lane.b32.xlu1 %v1683_v34, %s4759_s11 }
 0x948   : > { %v1738_v51 = vpop.xlane.xlu1 %1737 }
 0x949   : > { %v1739_v52 = vsub.f32 %v1735_v44, %v1738_v51  ;;  %v1630_v44 = vld [vmem:[%s4826_s23 + $0x10] sm:$0xff] }
 0x94a   : > { %1969 = vmatpush.msra.mxu1 %v1630_v44 }
 0x94b   : > { %v1740_v53 = vmul.f32 1.442695, %v1739_v52  ;;  %v1631_v52 = vld [vmem:[%s4826_s23 + $0x18] sm:$0xff] }
 0x94d   : > { %3799 = vpow2.f32 %v1740_v53 }
 0x953   : > { %v3800_v55 = vpop.eup %3799 }
 0x954   : > { %v1742_v56 = vsel %vm1217_vm5, %v3800_v55, 0.0 }
 0x955   : > { %1743 = vadd.xlane.f32.xlu2 %v1742_v56 }
 0x960   : > { %v1978_v2 = vpop.permute.xlu1 %1977 }
 0x96d   : > { %1770 = vrot.lane.b32.xlu2 %v1657_v37, %s4757_s10 }
 0x975   : > { %1884 = vrot.lane.b32.xlu2 %v1657_v37, %s4827_s28 }
 0x9c8   : > { %v1744_v49 = vpop.xlane.xlu2 %1743 }
 0x9c9   : > { %3801 = vrcp.f32 %v1744_v49 }
 0x9cf   : > { %v3802_v61 = vpop.eup %3801 }
 0x9d0   : > { %v1746_v62 = vmul.f32 %v3802_v61, %v3800_v55  ;;  %v1771_v63 = vpop.permute.xlu2 %1770 }
 0x9d1   : > { %3520 = vmatmul.msk.f32.vlgmr.msra.gmra.mxu3 %vm1217_vm5, %v1771_v63 }
 0x9d2   : > { %3518 = vmatmul.msk.f32.vlgmr.msra.gmra.mxu2 %vm1217_vm5, %v1746_v62 }
 0x9d3   : > { %3528 = vmatpush.xpose.msk.msra.mxu2 %vm1217_vm5, %v1978_v2 }
 0x9d8   : > { %v1885_v3 = vpop.permute.xlu2 %1884 }
 0x9d9   : > { %3525 = vmatmul.msk.f32.vlgmr.msrb.gmra.mxu3 %vm1217_vm5, %v1885_v3 }
 0xa54   : > { %v1795_v4 = vpop.f32.mrf.mxu3 }
 0xa55   : > { %v1798_v5 = vmul.f32 0.35355338, %v1795_v4  ;;  %v1767_v6 = vpop.f32.mrf.mxu2 }
 0xa56   : > { %3523 = vmatmul.msk.f32.vlgmr.msrb.gmra.mxu2 %vm1217_vm5, %v1767_v6 }
 0xa57   : > { %v1799_v7 = vadd.f32 %v1798_v5, %v4458_v41 }
 0xa59   : > { %v1800_v9 = vsel %vm1217_vm5, %v1799_v7, -inf }
 0xa5a   : > { %1801 = vmax.xlane.f32.xlu1 %v1800_v9  ;;  %v2105_v9 = vld [vmem:[#allocation2 + $0x10] sm:$0xff] }
 0xa5c   : > { %v1909_v0 = vpop.f32.mrf.mxu3 }
 0xa5d   : > { %v1912_v10 = vmul.f32 0.35355338, %v1909_v0  ;;  %v2103_v0 = vld [vmem:[#allocation2] sm:$0xff] }
 0xa5e   : > { %3529 = vmatmul.msk.f32.vlgmr.msra.gmra.mxu2 %vm1217_vm5, %v1976_v39 }
 0xa5f   : > { %v1913_v11 = vadd.f32 %v1912_v10, %v4458_v41  ;;  %v2115_v10 = vld [vmem:[%s4830_s1 + $0x38] sm:$0xff] }
 0xa60   : > { %2159 = vmatpush.msrb.mxu2 %v2115_v10 }
 0xa61   : > { %v1914_v13 = vsel %vm1217_vm5, %v1913_v11, -inf }
 0xa62   : > { %1915 = vmax.xlane.f32.xlu2 %v1914_v13 }
 0xacd   : > { %v1802_v14 = vpop.xlane.xlu1 %1801 }
 0xace   : > { %v1803_v15 = vsub.f32 %v1799_v7, %v1802_v14  ;;  %v2106_v7 = vld [vmem:[#allocation2 + $0x18] sm:$0xff] }
 0xad0   : > { %v1804_v16 = vmul.f32 1.442695, %v1803_v15 }
 0xad2   : > { %3803 = vpow2.f32 %v1804_v16 }
 0xad5   : > { %v1916_v17 = vpop.xlane.xlu2 %1915 }
 0xad6   : > { %v1917_v18 = vsub.f32 %v1913_v11, %v1916_v17 }
 0xad8   : > { %v3804_v19 = vpop.eup %3803  ;;  %v1918_v20 = vmul.f32 1.442695, %v1917_v18 }
 0xad9   : > { %v1881_v21 = vpop.f32.mrf.mxu2  ;;  %v1806_v22 = vsel %vm1217_vm5, %v3804_v19, 0.0 }
 0xada   : > { %3805 = vpow2.f32 %v1918_v20  ;;  %1807 = vadd.xlane.f32.xlu1 %v1806_v22 }
 0xae0   : > { %v3806_v23 = vpop.eup %3805 }
 0xae1   : > { %v2000_v24 = vpop.f32.mrf.mxu2  ;;  %v1920_v25 = vsel %vm1217_vm5, %v3806_v23, 0.0 }
 0xae2   : > { %v2003_v26 = vmul.f32 0.35355338, %v2000_v24  ;;  %1921 = vadd.xlane.f32.xlu2 %v1920_v25  ;;  %v3755_v25 = vld [vmem:[%s4832_s2] ss:$0 sm:$0xff]  ;;  %s4838_s2 = smov 120  }
 0xae4   : > { %v2004_v27 = vadd.f32 %v2003_v26, %v4458_v41 }
 0xae6   : > { %v2005_v28 = vsel %vm1217_vm5, %v2004_v27, -inf }
 0xae7   : > { %2006 = vmax.xlane.f32.xlu0 %v2005_v28  ;;  %v3756_v28 = vld [vmem:[#allocation5] ss:$0 sm:$0xff] }
 0xaf3   : > { %1812 = vrot.lane.b32.xlu1 %v4473_v59, %s4757_s10  ;;  %s4829_s10 = smov %s4828_s7 }
 0xafa   : > { %1925 = vrot.lane.b32.xlu2 %v4473_v59, %s4827_s28 }
 0xb4d   : > { %v1808_v29 = vpop.xlane.xlu1 %1807 }
 0xb4e   : > { %3807 = vrcp.f32 %v1808_v29 }
 0xb54   : > { %v3808_v34 = vpop.eup %3807 }
 0xb55   : > { %v1922_v32 = vpop.xlane.xlu2 %1921  ;;  %v1810_v36 = vmul.f32 %v3808_v34, %v3804_v19 }
 0xb5a   : > { %v2007_v30 = vpop.xlane.xlu0 %2006 }
 0xb5b   : > { %v2008_v31 = vsub.f32 %v2004_v27, %v2007_v30 }
 0xb5d   : > { %v2009_v33 = vmul.f32 1.442695, %v2008_v31  ;;  %v1926_v39 = vpop.permute.xlu2 %1925 }
 0xb5f   : > { %3809 = vpow2.f32 %v2009_v33 }
 0xb60   : > { %3811 = vrcp.f32 %v1922_v32 }
 0xb65   : > { %v3810_v35 = vpop.eup %3809  ;;  %v1813_v37 = vpop.permute.xlu1 %1812 }
 0xb66   : > { %1833 = vmatpush.msra.mxu0 %v1813_v37  ;;  %v2011_v38 = vsel %vm1217_vm5, %v3810_v35, 0.0  ;;  %v3812_v40 = vpop.eup %3811 }
 0xb67   : > { %3521 = vmatmul.msk.f32.vlgmr.msra.gmra.mxu0 %vm1217_vm5, %v1810_v36  ;;  %2012 = vadd.xlane.f32.xlu0 %v2011_v38  ;;  %v1924_v42 = vmul.f32 %v3812_v40, %v3806_v23 }
 0xb68   : > { %1946 = vmatpush.msrb.mxu0 %v1926_v39 }
 0xb6a   : > { %2060 = vmatpush.msra.mxu0 %v1631_v52  ;;  %v3549_v52 = vld [vmem:[%s4794_s8 + $0x38] sm:$0xff] }
 0xb6f   : > { %3526 = vmatmul.msk.f32.vlgmr.msrb.gmra.mxu0 %vm1217_vm5, %v1924_v42 }
 0xb7b   : > { %2016 = vrot.lane.b32.xlu0 %v4473_v59, %s4759_s11  ;;  %v3754_v59 = vld [vmem:[%s4828_s7] ss:$0 sm:$0xff]  ;;  %s4831_s11 = smov %s4830_s1  ;;  %s4834_s7 = sld [smem:[#allocation24_spill]] }
 0xb7c   : > { %v2114_v11 = vld [vmem:[%s4831_s11 + $0x30] sm:$0xff]  ;;  %v2113_v13 = vld [vmem:[%s4831_s11 + $0x28] sm:$0xff]  ;;  %v2112_v16 = vld [vmem:[%s4831_s11 + $0x20] sm:$0xff]  ;;  %s4836_s1 = sld [smem:[#allocation26_spill]] }
 0xb7d   : > { %2160 = vmatpush.msrb.mxu2 %v2114_v11  ;;  %v2111_v18 = vld [vmem:[%s4831_s11 + $0x18] sm:$0xff]  ;;  %v2110_v31 = vld [vmem:[%s4831_s11 + $0x10] sm:$0xff]  ;;  %v2109_v32 = vld [vmem:[%s4831_s11 + $0x8] sm:$0xff] }
 0xb7e   : > { %v2108_v33 = vld [vmem:[%s4831_s11] sm:$0xff] }
 0xb7f   : > { %2161 = vmatpush.msrb.mxu2 %v2113_v13  ;;  %v3760_v11 = vld [vmem:[%s4795_s4 + $0x1] ss:$0 sm:$0xff] }
 0xb81   : > { %2162 = vmatpush.msrb.mxu2 %v2112_v16  ;;  %s4835_s6 = smov %s4834_s7  ;;  %v3757_v34 = vld [vmem:[%s4834_s7] ss:$0 sm:$0xff]  ;;  %v3762_v16 = vld [vmem:[%s4115_s14 + $0x1] ss:$0 sm:$0xff]  ;;  %s4839_s7 = smov 104  }
 0xb82   : > { %s4837_s9 = smov %s4836_s1  ;;  %v3758_v38 = vld [vmem:[%s4836_s1] ss:$0 sm:$0xff]  ;;  %s4841_s1 = sld [smem:[#allocation32_spill]] }
 0xb83   : > { %2163 = vmatpush.msrb.mxu2 %v2111_v18 }
 0xb85   : > { %2164 = vmatpush.msrb.mxu2 %v2110_v31 }
 0xb87   : > { %2165 = vmatpush.msrb.mxu2 %v2109_v32 }
 0xb89   : > { %2166 = vmatpush.msrb.mxu2 %v2108_v33 }
 0xbda   : > { %v2013_v45 = vpop.xlane.xlu0 %2012 }
 0xbdb   : > { %3813 = vrcp.f32 %v2013_v45 }
 0xbe1   : > { %v3814_v47 = vpop.eup %3813 }
 0xbe2   : > { %v2015_v50 = vmul.f32 %v3814_v47, %v3810_v35 }
 0xbe4   : > { %v1835_v46 = vpop.f32.mrf.mxu0 }
 0xbe5   : > { %3522 = vmatmul.msk.f32.vlgmr.msrb.gmra.mxu1 %vm1217_vm5, %v1835_v46 }
 0xbe6   : > { %2135 = vmatpush.msrb.mxu1 %v2106_v7 }
 0xbe8   : > { %2136 = vmatpush.msrb.mxu1 %v2105_v9 }
 0xbec   : > { %v1948_v48 = vpop.f32.mrf.mxu0 }
 0xbed   : > { %3527 = vmatmul.msk.f32.vlgmr.msra.gmra.mxu1 %vm1217_vm5, %v1948_v48  ;;  %v2017_v51 = vpop.permute.xlu0 %2016 }
 0xbee   : > { %2037 = vmatpush.msra.mxu3 %v2017_v51  ;;  %v3544_v51 = vld [vmem:[%s4100_s29 + $0x38] sm:$0xff] }
 0xbef   : > { %3530 = vmatmul.msk.f32.vlgmr.msra.gmra.mxu3 %vm1217_vm5, %v2015_v50  ;;  %v3539_v50 = vld [vmem:[%s4090_s21 + $0x38] sm:$0xff]  ;;  %2275 = vmatpush.msrb.mxu0 %v3544_v51 }
 0xbf0   : > { %2252 = vmatpush.msrb.mxu3 %v3539_v50 }
 0xc62   : > { %v1858_v55 = vpop.f32.mrf.mxu1 }
 0xc63   : > { %v1882_v57 = vadd.f32 %v1881_v21, %v1858_v55  ;;  %v3543_v55 = vld [vmem:[%s4100_s29 + $0x30] sm:$0xff] }
 0xc64   : > { %2276 = vmatpush.msrb.mxu0 %v3543_v55 }
 0xc6a   : > { %v1971_v56 = vpop.f32.mrf.mxu1 }
 0xc6b   : > { %v1974_v58 = vadd.f32 %v1971_v56, %v1882_v57  ;;  %v3548_v56 = vld [vmem:[%s4794_s8 + $0x30] sm:$0xff]  ;;  %v3537_v57 = vld [vmem:[%s4090_s21 + $0x28] sm:$0xff] }
 0xc72   : > { %v2039_v53 = vpop.f32.mrf.mxu3 }
 0xc73   : > { %3531 = vmatmul.msk.f32.vlgmr.msra.gmra.mxu0 %vm1217_vm5, %v2039_v53  ;;  %v3538_v53 = vld [vmem:[%s4090_s21 + $0x30] sm:$0xff] }
 0xc74   : > { %2253 = vmatpush.msrb.mxu3 %v3538_v53 }
 0xc76   : > { %2254 = vmatpush.msrb.mxu3 %v3537_v57 }
 0xcf0   : > { %v2062_v60 = vpop.f32.mrf.mxu0 }
 0xcf1   : > { %v2065_v49 = vadd.f32 %v2062_v60, %v1974_v58  ;;  %v3542_v58 = vld [vmem:[%s4100_s29 + $0x28] sm:$0xff]  ;;  %v3536_v60 = vld [vmem:[%s4090_s21 + $0x20] sm:$0xff] }
 0xcf2   : > { %2277 = vmatpush.msrb.mxu0 %v3542_v58  ;;  %2255 = vmatpush.msrb.mxu3 %v3536_v60 }
 0xcf3   : > { %v2069_v61 = vadd.f32 %v3754_v59, %v2065_v49  ;;  %v3547_v59 = vld [vmem:[%s4794_s8 + $0x28] sm:$0xff]  ;;  %v3541_v49 = vld [vmem:[%s4100_s29 + $0x20] sm:$0xff] }
 0xcf4   : > { %2278 = vmatpush.msrb.mxu0 %v3541_v49 }
 0xcf5   : > { %v2070_v62 = vadd.f32 %v2069_v61, %v4422_v1  ;;  %v2104_v1 = vld [vmem:[#allocation2 + $0x8] sm:$0xff]  ;;  %v3546_v61 = vld [vmem:[%s4794_s8 + $0x20] sm:$0xff] }
 0xcf6   : > { %2137 = vmatpush.msrb.mxu1 %v2104_v1  ;;  %v3759_v1 = vld [vmem:[%s4190_s20 + $0x1] ss:$0 sm:$0xff] }
 0xcf7   : > { %v2073_v63 = vsel %vm1087_vm0, %v2070_v62, 0.0 }
 0xcf8   : > { %2074 = vadd.xlane.f32.xlu0 %v2073_v63  ;;  %2138 = vmatpush.msrb.mxu1 %v2103_v0 }
 0xcfa   : > { %2298 = vmatpush.msra.mxu1 %v3549_v52 }
 0xcfc   : > { %2299 = vmatpush.msra.mxu1 %v3548_v56 }
 0xcfe   : > { %2300 = vmatpush.msra.mxu1 %v3547_v59 }
 0xd00   : > { %2301 = vmatpush.msra.mxu1 %v3546_v61 }
 0xd6b   : > { %v2075_v2 = vpop.xlane.xlu0 %2074 }
 0xd6c   : > { %v2076_v3 = vmul.f32 %v2075_v2, %v4343_v8 }
 0xd6e   : > { %v2077_v4 = vsub.f32 %v2070_v62, %v2076_v3 }
 0xd70   : > { %v2078_v5 = vmul.f32 %v2077_v4, %v2077_v4 }
 0xd72   : > { %v2079_v6 = vsel %vm1087_vm0, %v2078_v5, 0.0 }
 0xd73   : > { %2080 = vadd.xlane.f32.xlu1 %v2079_v6 }
 0xde6   : > { %v2081_v14 = vpop.xlane.xlu1 %2080 }
 0xde7   : > { %v2082_v15 = vmul.f32 %v2081_v14, %v4343_v8 }
 0xde9   : > { %v2083_v17 = vadd.f32 1e-06, %v2082_v15  ;;  %v3761_v15 = vld [vmem:[%s4796_s3 + $0x1] ss:$0 sm:$0xff] }
 0xdeb   : > { %3815 = vrsqrt.f32 %v2083_v17  ;;  %vm2090_vm10 = vweird.f32 %v2083_v17 }
 0xdf1   : > { %v3816_v19 = vpop.eup %3815 }
 0xdf2   : > { %v2085_v20 = vmul.f32 %v3816_v19, %v2083_v17  ;;  %vm2091_vm9 = vweird.f32 %v3816_v19 }
 0xdf3   : > { %vm2092_vm11 = vmor %vm2090_vm10, %vm2091_vm9 }
 0xdf4   : > { %v2086_v21 = vmul.f32 %v3816_v19, %v2085_v20 }
 0xdf6   : > { %v2087_v22 = vmul.f32 0.5, %v2086_v21  ;;  %v3763_v21 = vld [vmem:[%s4095_s25 + $0x1] ss:$0 sm:$0xff] }
 0xdf8   : > { %v2088_v23 = vsub.f32 1.5, %v2087_v22 }
 0xdfa   : > { %v2089_v24 = vmul.f32 %v3816_v19, %v2088_v23 }
 0xdfc   : > { %v2093_v26 = vsel %vm2092_vm11, %v3816_v19, %v2089_v24 }
 0xdfd   : > { %v2094_v27 = vmul.f32 %v2093_v26, %v2077_v4 }
 0xdff   : > { %v2098_v29 = vmul.f32 %v3755_v25, %v2094_v27 }
 0xe01   : > { %v2102_v30 = vadd.f32 %v3756_v28, %v2098_v29 }
 0xe03   : > { %3532 = vmatmul.msk.f32.vlgmr.msrb.gmra.mxu1 %vm1087_vm0, %v2102_v30 }
 0xe80   : > { %v2140_v35 = vpop.f32.mrf.mxu1 }
 0xe81   : > { %v2141_v36 = vadd.f32 %v3757_v34, %v2140_v35  ;;  %v3551_v35 = vld [vmem:[%s4120_s19 + $0x20] sm:$0xff] }
 0xe83   : > { %v2143_v37 = vmax.f32 %v2141_v36, 0.0 }
 0xe85   : > { %3533 = vmatmul.msk.f32.vlgmr.msrb.gmra.mxu2 %vm2147_vm12, %v2143_v37 }
 0xf08   : > { %v2168_v39 = vpop.f32.mrf.mxu2 }
 0xf09   : > { %v2169_v40 = vadd.f32 %v3758_v38, %v2168_v39 }
 0xf0b   : > { %v4526_v42 = vadd.f32 %v2169_v40, %v2070_v62 }
 0xf0d   : > { %v2176_v43 = vsel %vm1087_vm0, %v4526_v42, 0.0 }
 0xf0e   : > { %2177 = vadd.xlane.f32.xlu2 %v2176_v43 }
 0xf81   : > { %v2178_v44 = vpop.xlane.xlu2 %2177 }
 0xf82   : > { %v2179_v45 = vmul.f32 %v2178_v44, %v4343_v8 }
 0xf84   : > { %v2180_v46 = vsub.f32 %v4526_v42, %v2179_v45 }
 0xf86   : > { %v2181_v47 = vmul.f32 %v2180_v46, %v2180_v46 }
 0xf88   : > { %v2182_v48 = vsel %vm1087_vm0, %v2181_v47, 0.0 }
 0xf89   : > { %2183 = vadd.xlane.f32.xlu0 %v2182_v48 }
 0xffc   : > { %v2184_v62 = vpop.xlane.xlu0 %2183 }
 0xffd   : > { %v2185_v63 = vmul.f32 %v2184_v62, %v4343_v8 }
 0xfff   : > { %v2186_v2 = vadd.f32 1e-06, %v2185_v63 }
0x1001   : > { %3817 = vrsqrt.f32 %v2186_v2  ;;  %vm2193_vm14 = vweird.f32 %v2186_v2 }
0x1007   : > { %v3818_v3 = vpop.eup %3817 }
0x1008   : > { %v2188_v4 = vmul.f32 %v3818_v3, %v2186_v2  ;;  %vm2194_vm13 = vweird.f32 %v3818_v3 }
0x1009   : > { %vm2195_vm15 = vmor %vm2193_vm14, %vm2194_vm13 }
0x100a   : > { %v2189_v5 = vmul.f32 %v3818_v3, %v2188_v4 }
0x100c   : > { %v2190_v6 = vmul.f32 0.5, %v2189_v5 }
0x100e   : > { %v2191_v7 = vsub.f32 1.5, %v2190_v6 }
0x1010   : > { %v2192_v9 = vmul.f32 %v3818_v3, %v2191_v7 }
0x1012   : > { %v2196_v0 = vsel %vm2195_vm15, %v3818_v3, %v2192_v9 }
0x1013   : > { %v2197_v10 = vmul.f32 %v2196_v0, %v2180_v46 }
0x1015   : > { %v2201_v13 = vmul.f32 %v3759_v1, %v2197_v10 }
0x1017   : > { %v2205_v14 = vadd.f32 %v3760_v11, %v2201_v13  ;;  %v3552_v11 = vld [vmem:[%s4120_s19 + $0x28] sm:$0xff] }
0x1019   : > { %3556 = vmatmul.msk.f32.vlgmr.msrb.gmra.mxu3 %vm1087_vm0, %v2205_v14  ;;  %3557 = vmatmul.msk.f32.vlgmr.msrb.gmra.mxu0 %vm1087_vm0, %v2205_v14 }
0x101a   : > { %3558 = vmatmul.msk.f32.vlgmr.msra.gmra.mxu1 %vm1087_vm0, %v2205_v14 }
0x1096   : > { %v2280_v17 = vpop.f32.mrf.mxu0 }
0x1097   : > { %v2281_v18 = vadd.f32 %v3761_v15, %v2280_v17  ;;  %v2303_v19 = vpop.f32.mrf.mxu1 }
0x1098   : > { %v4553_v20 = vadd.f32 %v3762_v16, %v2303_v19 }
0x1099   : > { %2370 = vrot.lane.b32.xlu0 %v2281_v18, %s4838_s2  ;;  %3559 = vmatpush.xpose.msk.msra.mxu3 %vm1217_vm5, %v2281_v18 }
0x109a   : > { %2363 = vmatpush.msra.mxu0 %v4553_v20 }
0x109c   : > { %v2257_v22 = vpop.f32.mrf.mxu3  ;;  %2477 = vmatpush.msrb.mxu0 %v3551_v35 }
0x109d   : > { %v2258_v23 = vadd.f32 %v3763_v21, %v2257_v22  ;;  %2454 = vmatpush.msrb.mxu3 %v3552_v11 }
0x109f   : > { %3560 = vmatmul.msk.f32.vlgmr.msra.gmra.mxu3 %vm1217_vm5, %v2258_v23 }
0x10a1   : > { %2482 = vrot.lane.b32.xlu0 %v2258_v23, %s4827_s28 }
0x10a9   : > { %2575 = vrot.lane.b32.xlu0 %v2281_v18, %s4839_s7 }
0x110b   : > { %v2371_v24 = vpop.permute.xlu0 %2370 }
0x110c   : > { %3562 = vmatpush.xpose.msk.msrb.mxu1 %vm1217_vm5, %v2371_v24 }
0x1113   : > { %v2483_v36 = vpop.permute.xlu0 %2482 }
0x111b   : > { %v2576_v43 = vpop.permute.xlu0 %2575 }
0x1122   : > { %v2329_v25 = vpop.f32.mrf.mxu3 }
0x1123   : > { %v2332_v26 = vmul.f32 0.35355338, %v2329_v25 }
0x1125   : > { %v2333_v27 = vadd.f32 %v2332_v26, %v4385_v54 }
0x1127   : > { %v2334_v28 = vsel %vm1217_vm5, %v2333_v27, -inf }
0x1128   : > { %2335 = vmax.xlane.f32.xlu1 %v2334_v28 }
0x1141   : > { %2368 = vrot.lane.b32.xlu1 %v2258_v23, %s4838_s2 }
0x119b   : > { %v2336_v29 = vpop.xlane.xlu1 %2335 }
0x119c   : > { %v2337_v30 = vsub.f32 %v2333_v27, %v2336_v29  ;;  %v3554_v29 = vld [vmem:[%s4120_s19 + $0x38] sm:$0xff] }
0x119e   : > { %v2338_v31 = vmul.f32 1.442695, %v2337_v30 }
0x11a0   : > { %3819 = vpow2.f32 %v2338_v31 }
0x11a6   : > { %v3820_v32 = vpop.eup %3819 }
0x11a7   : > { %v2340_v33 = vsel %vm1217_vm5, %v3820_v32, 0.0 }
0x11a8   : > { %2341 = vadd.xlane.f32.xlu2 %v2340_v33 }
0x11b3   : > { %v2369_v34 = vpop.permute.xlu1 %2368 }
0x11b4   : > { %3563 = vmatmul.msk.f32.vlgmr.msrb.gmra.mxu1 %vm1217_vm5, %v2369_v34  ;;  %v3764_v34 = vld [vmem:[%s4125_s24 + $0x1] ss:$0 sm:$0xff] }
0x11c0   : > { %2484 = vrot.lane.b32.xlu2 %v2281_v18, %s4827_s28 }
0x11c8   : > { %2573 = vrot.lane.b32.xlu2 %v2258_v23, %s4839_s7  ;;  %v3553_v23 = vld [vmem:[%s4120_s19 + $0x30] sm:$0xff] }
0x11c9   : > { %2567 = vmatpush.msra.mxu3 %v3553_v23 }
0x121b   : > { %v2342_v37 = vpop.xlane.xlu2 %2341 }
0x121c   : > { %3821 = vrcp.f32 %v2342_v37 }
0x1222   : > { %v3822_v38 = vpop.eup %3821 }
0x1223   : > { %v2344_v39 = vmul.f32 %v3822_v38, %v3820_v32  ;;  %v2485_v40 = vpop.permute.xlu2 %2484 }
0x1224   : > { %3567 = vmatpush.xpose.msk.msra.mxu1 %vm1217_vm5, %v2485_v40 }
0x1225   : > { %3561 = vmatmul.msk.f32.vlgmr.msra.gmra.mxu0 %vm1217_vm5, %v2344_v39 }
0x1226   : > { %3571 = vmatpush.xpose.msk.msra.mxu0 %vm1217_vm5, %v2576_v43 }
0x1227   : > { %3568 = vmatmul.msk.f32.vlgmr.msra.gmra.mxu1 %vm1217_vm5, %v2483_v36 }
0x122b   : > { %v2574_v55 = vpop.permute.xlu2 %2573 }
0x1231   : > { %v2393_v44 = vpop.f32.mrf.mxu1 }
0x1232   : > { %v2396_v45 = vmul.f32 0.35355338, %v2393_v44 }
0x1234   : > { %v2397_v46 = vadd.f32 %v2396_v45, %v4385_v54 }
0x1236   : > { %v2398_v47 = vsel %vm1217_vm5, %v2397_v46, -inf }
0x1237   : > { %2399 = vmax.xlane.f32.xlu1 %v2398_v47  ;;  %v3580_v47 = vld [vmem:[%s4814_s22 + $0x38] sm:$0xff] }
0x12a2   : > { %v2365_v48 = vpop.f32.mrf.mxu0 }
0x12a3   : > { %3566 = vmatmul.msk.f32.vlgmr.msrb.gmra.mxu0 %vm1217_vm5, %v2365_v48  ;;  %v3585_v48 = vld [vmem:[%s4140_s12 + $0x38] sm:$0xff] }
0x12a4   : > { %v2507_v50 = vpop.f32.mrf.mxu1  ;;  %2772 = vmatpush.msrb.mxu0 %v3585_v48 }
0x12a5   : > { %v2510_v51 = vmul.f32 0.35355338, %v2507_v50  ;;  %v3578_v50 = vld [vmem:[%s4814_s22 + $0x28] sm:$0xff] }
0x12a7   : > { %v2511_v52 = vadd.f32 %v2510_v51, %v4385_v54  ;;  %v3584_v51 = vld [vmem:[%s4140_s12 + $0x30] sm:$0xff] }
0x12a8   : > { %2773 = vmatpush.msrb.mxu0 %v3584_v51 }
0x12a9   : > { %v2512_v53 = vsel %vm1217_vm5, %v2511_v52, -inf }
0x12aa   : > { %2513 = vmax.xlane.f32.xlu0 %v2512_v53  ;;  %v2400_v56 = vpop.xlane.xlu1 %2399  ;;  %v3583_v53 = vld [vmem:[%s4140_s12 + $0x28] sm:$0xff] }
0x12ab   : > { %v2401_v57 = vsub.f32 %v2397_v46, %v2400_v56  ;;  %3572 = vmatmul.msk.f32.vlgmr.msra.gmra.mxu0 %vm1217_vm5, %v2574_v55  ;;  %v3582_v55 = vld [vmem:[%s4140_s12 + $0x20] sm:$0xff] }
0x12ac   : > { %2774 = vmatpush.msrb.mxu0 %v3583_v53 }
0x12ad   : > { %v2402_v58 = vmul.f32 1.442695, %v2401_v57 }
0x12ae   : > { %2775 = vmatpush.msrb.mxu0 %v3582_v55 }
0x12af   : > { %3823 = vpow2.f32 %v2402_v58 }
0x12b3   : > { %3598 = vmatmul.msk.f32.vlgmr.msrb.gmra.mxu0 %vm1087_vm0, %v4435_v12 }
0x12b5   : > { %v3824_v59 = vpop.eup %3823 }
0x12b6   : > { %v2404_v60 = vsel %vm1217_vm5, %v3824_v59, 0.0 }
0x12b7   : > { %2405 = vadd.xlane.f32.xlu1 %v2404_v60 }
0x12be   : > { %2410 = vrot.lane.b32.xlu0 %v4553_v20, %s4838_s2 }
0x131d   : > { %v2514_v61 = vpop.xlane.xlu0 %2513 }
0x131e   : > { %v2515_v62 = vsub.f32 %v2511_v52, %v2514_v61  ;;  %v3577_v52 = vld [vmem:[%s4814_s22 + $0x20] sm:$0xff] }
0x1320   : > { %v2479_v49 = vpop.f32.mrf.mxu0  ;;  %v2516_v63 = vmul.f32 1.442695, %v2515_v62 }
0x1328   : > { %v2598_v2 = vpop.f32.mrf.mxu0 }
0x1329   : > { %v2601_v3 = vmul.f32 0.35355338, %v2598_v2  ;;  %v3765_v2 = vld [vmem:[%s4815_s17 + $0x1] ss:$0 sm:$0xff] }
0x132a   : > { %v2406_v4 = vpop.xlane.xlu1 %2405 }
0x132b   : > { %3825 = vrcp.f32 %v2406_v4  ;;  %v2602_v5 = vadd.f32 %v2601_v3, %v4385_v54 }
0x132c   : > { %3827 = vpow2.f32 %v2516_v63 }
0x132d   : > { %v2603_v6 = vsel %vm1217_vm5, %v2602_v5, -inf }
0x132e   : > { %2604 = vmax.xlane.f32.xlu2 %v2603_v6 }
0x1330   : > { %v2411_v7 = vpop.permute.xlu0 %2410 }
0x1331   : > { %v3826_v9 = vpop.eup %3825  ;;  %2431 = vmatpush.msra.mxu2 %v2411_v7 }
0x1332   : > { %v3828_v1 = vpop.eup %3827  ;;  %v2408_v0 = vmul.f32 %v3826_v9, %v3824_v59  ;;  %v3767_v9 = vld [vmem:[%s4818_s30 + $0x1] ss:$0 sm:$0xff] }
0x1333   : > { %v2518_v10 = vsel %vm1217_vm5, %v3828_v1, 0.0 }
0x1334   : > { %3564 = vmatmul.msk.f32.vlgmr.msra.gmra.mxu2 %vm1217_vm5, %v2408_v0 }
0x1336   : > { %2519 = vadd.xlane.f32.xlu2 %v2518_v10  ;;  %v3768_v10 = vld [vmem:[%s4819_s18 + $0x1] ss:$0 sm:$0xff] }
0x134e   : > { %2523 = vrot.lane.b32.xlu2 %v4553_v20, %s4827_s28 }
0x13a1   : > { %v2605_v54 = vpop.xlane.xlu2 %2604 }
0x13a2   : > { %v2606_v13 = vsub.f32 %v2602_v5, %v2605_v54  ;;  %v3766_v5 = vld [vmem:[%s4817_s15 + $0x1] ss:$0 sm:$0xff] }
0x13a4   : > { %v2607_v14 = vmul.f32 1.442695, %v2606_v13 }
0x13a6   : > { %3829 = vpow2.f32 %v2607_v14 }
0x13a9   : > { %v2520_v15 = vpop.xlane.xlu2 %2519 }
0x13aa   : > { %3831 = vrcp.f32 %v2520_v15 }
0x13ac   : > { %v3830_v16 = vpop.eup %3829 }
0x13ad   : > { %v2609_v17 = vsel %vm1217_vm5, %v3830_v16, 0.0 }
0x13ae   : > { %2610 = vadd.xlane.f32.xlu1 %v2609_v17  ;;  %v3590_v17 = vld [vmem:[%s4822_s16 + $0x38] sm:$0xff] }
0x13b0   : > { %v3832_v18 = vpop.eup %3831 }
0x13b1   : > { %v2522_v19 = vmul.f32 %v3832_v18, %v3828_v1  ;;  %v2524_v21 = vpop.permute.xlu2 %2523  ;;  %v2777_v1 = vpop.f32.mrf.mxu0  ;;  %v3589_v18 = vld [vmem:[%s4822_s16 + $0x30] sm:$0xff] }
0x13b2   : > { %2544 = vmatpush.msrb.mxu2 %v2524_v21  ;;  %v2778_v0 = vadd.f32 %v3767_v9, %v2777_v1  ;;  %v3587_v21 = vld [vmem:[%s4822_s16 + $0x20] sm:$0xff] }
0x13b3   : > { %3569 = vmatmul.msk.f32.vlgmr.msrb.gmra.mxu2 %vm1217_vm5, %v2522_v19  ;;  %v3588_v19 = vld [vmem:[%s4822_s16 + $0x28] sm:$0xff] }
0x13b4   : > { %2658 = vmatpush.msra.mxu2 %v3554_v29 }
0x13b6   : > { %3600 = vmatpush.xpose.msk.msrb.mxu2 %vm1217_vm5, %v2778_v0 }
0x13b7   : > { %v2433_v22 = vpop.f32.mrf.mxu2 }
0x13b8   : > { %3565 = vmatmul.msk.f32.vlgmr.msrb.gmra.mxu3 %vm1217_vm5, %v2433_v22 }
0x13b9   : > { %2749 = vmatpush.msrb.mxu3 %v3580_v47 }
0x13c7   : > { %2614 = vrot.lane.b32.xlu1 %v4553_v20, %s4839_s7 }
0x1421   : > { %v2611_v24 = vpop.xlane.xlu1 %2610 }
0x1422   : > { %3833 = vrcp.f32 %v2611_v24 }
0x1428   : > { %v3834_v25 = vpop.eup %3833 }
0x1429   : > { %v2613_v27 = vmul.f32 %v3834_v25, %v3830_v16 }
0x1436   : > { %v2546_v26 = vpop.f32.mrf.mxu2 }
0x1437   : > { %3570 = vmatmul.msk.f32.vlgmr.msra.gmra.mxu3 %vm1217_vm5, %v2546_v26 }
0x1439   : > { %v2615_v28 = vpop.permute.xlu1 %2614 }
0x143a   : > { %2635 = vmatpush.msrb.mxu1 %v2615_v28 }
0x143b   : > { %3573 = vmatmul.msk.f32.vlgmr.msrb.gmra.mxu1 %vm1217_vm5, %v2613_v27  ;;  %v2456_v20 = vpop.f32.mrf.mxu3  ;;  %v3769_v27 = vld [vmem:[%s4824_s26 + $0x1] ss:$0 sm:$0xff] }
0x143c   : > { %v2480_v32 = vadd.f32 %v2479_v49, %v2456_v20  ;;  %2795 = vmatpush.msra.mxu1 %v3590_v17 }
0x143e   : > { %2796 = vmatpush.msra.mxu1 %v3589_v18 }
0x1440   : > { %2797 = vmatpush.msra.mxu1 %v3588_v19 }
0x1442   : > { %2798 = vmatpush.msra.mxu1 %v3587_v21 }
0x1443   : > { %3599 = vmatmul.msk.f32.vlgmr.msra.gmra.mxu1 %vm1087_vm0, %v4435_v12  ;;  %v3592_v12 = vld [vmem:[%s4826_s23 + $0x20] sm:$0xff] }
0x14b8   : > { %v2637_v30 = vpop.f32.mrf.mxu1 }
0x14b9   : > { %3574 = vmatmul.msk.f32.vlgmr.msra.gmra.mxu2 %vm1217_vm5, %v2637_v30 }
0x14ba   : > { %v2569_v31 = vpop.f32.mrf.mxu3 }
0x14bb   : > { %v2572_v33 = vadd.f32 %v2569_v31, %v2480_v32 }
0x14c0   : > { %v2800_v28 = vpop.f32.mrf.mxu1 }
0x14c1   : > { %v4644_v29 = vadd.f32 %v3769_v27, %v2800_v28 }
0x153c   : > { %v2660_v35 = vpop.f32.mrf.mxu2 }
0x153d   : > { %v2663_v36 = vadd.f32 %v2660_v35, %v2572_v33 }
0x153f   : > { %v2667_v37 = vadd.f32 %v3764_v34, %v2663_v36 }
0x1541   : > { %v4603_v38 = vadd.f32 %v2667_v37, %v4526_v42  ;;  %v3579_v42 = vld [vmem:[%s4814_s22 + $0x30] sm:$0xff] }
0x1542   : > { %2750 = vmatpush.msrb.mxu3 %v3579_v42 }
0x1543   : > { %v2673_v39 = vsel %vm1087_vm0, %v4603_v38, 0.0 }
0x1544   : > { %2674 = vadd.xlane.f32.xlu0 %v2673_v39  ;;  %2751 = vmatpush.msrb.mxu3 %v3578_v50 }
0x1546   : > { %2752 = vmatpush.msrb.mxu3 %v3577_v52 }
0x1548   : > { %2860 = vmatpush.msra.mxu3 %v4644_v29 }
0x15b7   : > { %v2675_v40 = vpop.xlane.xlu0 %2674 }
0x15b8   : > { %v2676_v43 = vmul.f32 %v2675_v40, %v4343_v8 }
0x15ba   : > { %v2677_v44 = vsub.f32 %v4603_v38, %v2676_v43 }
0x15bc   : > { %v2678_v45 = vmul.f32 %v2677_v44, %v2677_v44 }
0x15be   : > { %v2679_v46 = vsel %vm1087_vm0, %v2678_v45, 0.0 }
0x15bf   : > { %2680 = vadd.xlane.f32.xlu2 %v2679_v46 }
0x1632   : > { %v2681_v56 = vpop.xlane.xlu2 %2680 }
0x1633   : > { %v2682_v57 = vmul.f32 %v2681_v56, %v4343_v8 }
0x1635   : > { %v2683_v58 = vadd.f32 1e-06, %v2682_v57 }
0x1637   : > { %3835 = vrsqrt.f32 %v2683_v58  ;;  %vm2690_vm2 = vweird.f32 %v2683_v58 }
0x163d   : > { %v3836_v59 = vpop.eup %3835 }
0x163e   : > { %v2685_v60 = vmul.f32 %v3836_v59, %v2683_v58  ;;  %vm2691_vm1 = vweird.f32 %v3836_v59 }
0x163f   : > { %vm2692_vm3 = vmor %vm2690_vm2, %vm2691_vm1 }
0x1640   : > { %v2686_v49 = vmul.f32 %v3836_v59, %v2685_v60 }
0x1642   : > { %v2687_v61 = vmul.f32 0.5, %v2686_v49 }
0x1644   : > { %v2688_v62 = vsub.f32 1.5, %v2687_v61 }
0x1646   : > { %v2689_v63 = vmul.f32 %v3836_v59, %v2688_v62 }
0x1648   : > { %v2693_v3 = vsel %vm2692_vm3, %v3836_v59, %v2689_v63 }
0x1649   : > { %v2694_v4 = vmul.f32 %v2693_v3, %v2677_v44 }
0x164b   : > { %v2698_v6 = vmul.f32 %v3765_v2, %v2694_v4 }
0x164d   : > { %v2702_v7 = vadd.f32 %v3766_v5, %v2698_v6 }
0x164f   : > { %3597 = vmatmul.msk.f32.vlgmr.msrb.gmra.mxu3 %vm1087_vm0, %v2702_v7 }
0x1650   : > { %2974 = vmatpush.msrb.mxu3 %v3592_v12 }
0x16d2   : > { %v2754_v11 = vpop.f32.mrf.mxu3 }
0x16d3   : > { %v2755_v54 = vadd.f32 %v3768_v10, %v2754_v11 }
0x16d5   : > { %2865 = vrot.lane.b32.xlu2 %v2755_v54, %s4838_s2  ;;  %3601 = vmatmul.msk.f32.vlgmr.msrb.gmra.mxu2 %vm1217_vm5, %v2755_v54 }
0x16dd   : > { %2979 = vrot.lane.b32.xlu2 %v2755_v54, %s4827_s28 }
0x172f   : > { %v2866_v33 = vpop.permute.xlu2 %2865 }
0x1737   : > { %v2980_v36 = vpop.permute.xlu2 %2979 }
0x1758   : > { %v2826_v13 = vpop.f32.mrf.mxu2 }
0x1759   : > { %v2829_v14 = vmul.f32 0.35355338, %v2826_v13 }
0x175b   : > { %v2830_v15 = vadd.f32 %v2829_v14, %v4458_v41  ;;  %v3593_v14 = vld [vmem:[%s4826_s23 + $0x28] sm:$0xff] }
0x175c   : > { %2951 = vmatpush.msra.mxu2 %v3593_v14 }
0x175d   : > { %v2831_v16 = vsel %vm1217_vm5, %v2830_v15, -inf }
0x175e   : > { %2832 = vmax.xlane.f32.xlu1 %v2831_v16 }
0x1777   : > { %2981 = vrot.lane.b32.xlu1 %v2778_v0, %s4827_s28 }
0x17d1   : > { %v2833_v22 = vpop.xlane.xlu1 %2832 }
0x17d2   : > { %v2834_v23 = vsub.f32 %v2830_v15, %v2833_v22  ;;  %v3594_v15 = vld [vmem:[%s4826_s23 + $0x30] sm:$0xff] }
0x17d3   : > { %3064 = vmatpush.msrb.mxu2 %v3594_v15 }
0x17d4   : > { %v2835_v24 = vmul.f32 1.442695, %v2834_v23  ;;  %v3595_v23 = vld [vmem:[%s4826_s23 + $0x38] sm:$0xff] }
0x17d6   : > { %3837 = vpow2.f32 %v2835_v24 }
0x17dc   : > { %v3838_v25 = vpop.eup %3837 }
0x17dd   : > { %v2837_v26 = vsel %vm1217_vm5, %v3838_v25, 0.0 }
0x17de   : > { %2838 = vadd.xlane.f32.xlu0 %v2837_v26 }
0x17e9   : > { %v2982_v34 = vpop.permute.xlu1 %2981 }
0x17f2   : > { %2867 = vrot.lane.b32.xlu0 %v2778_v0, %s4838_s2 }
0x17fa   : > { %3072 = vrot.lane.b32.xlu0 %v2778_v0, %s4839_s7 }
0x1802   : > { %3070 = vrot.lane.b32.xlu0 %v2755_v54, %s4839_s7 }
0x1851   : > { %v2839_v30 = vpop.xlane.xlu0 %2838 }
0x1852   : > { %3839 = vrcp.f32 %v2839_v30 }
0x1858   : > { %v3840_v20 = vpop.eup %3839 }
0x1859   : > { %v2841_v31 = vmul.f32 %v3840_v20, %v3838_v25 }
0x185b   : > { %3602 = vmatmul.msk.f32.vlgmr.msra.gmra.mxu3 %vm1217_vm5, %v2841_v31 }
0x1864   : > { %v2868_v32 = vpop.permute.xlu0 %2867 }
0x1865   : > { %3603 = vmatpush.xpose.msk.msra.mxu0 %vm1217_vm5, %v2868_v32 }
0x1868   : > { %3604 = vmatmul.msk.f32.vlgmr.msra.gmra.mxu0 %vm1217_vm5, %v2866_v33 }
0x1869   : > { %3608 = vmatpush.xpose.msk.msrb.mxu0 %vm1217_vm5, %v2982_v34 }
0x186c   : > { %v3073_v35 = vpop.permute.xlu0 %3072 }
0x186d   : > { %3612 = vmatpush.xpose.msk.msra.mxu3 %vm1217_vm5, %v3073_v35 }
0x1870   : > { %3609 = vmatmul.msk.f32.vlgmr.msrb.gmra.mxu0 %vm1217_vm5, %v2980_v36 }
0x1874   : > { %v3071_v40 = vpop.permute.xlu0 %3070 }
0x18de   : > { %v2862_v37 = vpop.f32.mrf.mxu3 }
0x18df   : > { %3607 = vmatmul.msk.f32.vlgmr.msrb.gmra.mxu3 %vm1217_vm5, %v2862_v37 }
0x18e5   : > { %v2890_v39 = vpop.f32.mrf.mxu0 }
0x18e6   : > { %v2893_v43 = vmul.f32 0.35355338, %v2890_v39  ;;  %v3204_v39 = vld [vmem:[#allocation2 + $0x38] sm:$0xff] }
0x18e7   : > { %3613 = vmatmul.msk.f32.vlgmr.msra.gmra.mxu3 %vm1217_vm5, %v3071_v40  ;;  %v3203_v40 = vld [vmem:[#allocation2 + $0x30] sm:$0xff] }
0x18e8   : > { %v2894_v44 = vadd.f32 %v2893_v43, %v4458_v41  ;;  %v3201_v43 = vld [vmem:[#allocation2 + $0x20] sm:$0xff] }
0x18ea   : > { %v2895_v45 = vsel %vm1217_vm5, %v2894_v44, -inf }
0x18eb   : > { %2896 = vmax.xlane.f32.xlu1 %v2895_v45  ;;  %v3624_v45 = vld [vmem:[%s4831_s11 + $0x70] sm:$0xff] }
0x18ed   : > { %v3004_v46 = vpop.f32.mrf.mxu0 }
0x18ee   : > { %v3007_v47 = vmul.f32 0.35355338, %v3004_v46  ;;  %v3623_v46 = vld [vmem:[%s4831_s11 + $0x68] sm:$0xff] }
0x18f0   : > { %v3008_v42 = vadd.f32 %v3007_v47, %v4458_v41 }
0x18f2   : > { %v3009_v48 = vsel %vm1217_vm5, %v3008_v42, -inf }
0x18f3   : > { %3010 = vmax.xlane.f32.xlu2 %v3009_v48  ;;  %v3622_v48 = vld [vmem:[%s4831_s11 + $0x60] sm:$0xff] }
0x195e   : > { %v2897_v50 = vpop.xlane.xlu1 %2896 }
0x195f   : > { %v2898_v51 = vsub.f32 %v2894_v44, %v2897_v50  ;;  %v3625_v44 = vld [vmem:[%s4831_s11 + $0x78] sm:$0xff] }
0x1960   : > { %3259 = vmatpush.msrb.mxu3 %v3625_v44 }
0x1961   : > { %v2899_v52 = vmul.f32 1.442695, %v2898_v51  ;;  %v3621_v51 = vld [vmem:[%s4831_s11 + $0x58] sm:$0xff] }
0x1962   : > { %v2976_v53 = vpop.f32.mrf.mxu3  ;;  %3260 = vmatpush.msrb.mxu3 %v3624_v45 }
0x1963   : > { %3841 = vpow2.f32 %v2899_v52 }
0x1964   : > { %3261 = vmatpush.msrb.mxu3 %v3623_v46 }
0x1966   : > { %v3011_v55 = vpop.xlane.xlu2 %3010  ;;  %3262 = vmatpush.msrb.mxu3 %v3622_v48 }
0x1967   : > { %v3012_v56 = vsub.f32 %v3008_v42, %v3011_v55 }
0x1968   : > { %3263 = vmatpush.msrb.mxu3 %v3621_v51 }
0x1969   : > { %v3842_v57 = vpop.eup %3841  ;;  %v3013_v58 = vmul.f32 1.442695, %v3012_v56 }
0x196a   : > { %v3095_v59 = vpop.f32.mrf.mxu3  ;;  %v2901_v60 = vsel %vm1217_vm5, %v3842_v57, 0.0 }
0x196b   : > { %3843 = vpow2.f32 %v3013_v58  ;;  %v3098_v49 = vmul.f32 0.35355338, %v3095_v59  ;;  %2902 = vadd.xlane.f32.xlu1 %v2901_v60  ;;  %v3771_v59 = vld [vmem:[%s4833_s5 + $0x1] ss:$0 sm:$0xff]  ;;  %s3630_s5 = sshll.u32 %s4253_s0, 3 }
0x196d   : > { %v3099_v61 = vadd.f32 %v3098_v49, %v4458_v41 }
0x196f   : > { %v3100_v62 = vsel %vm1217_vm5, %v3099_v61, -inf }
0x1970   : > { %3101 = vmax.xlane.f32.xlu0 %v3100_v62 }
0x1971   : > { %v3844_v63 = vpop.eup %3843 }
0x1972   : > { %v3015_v2 = vsel %vm1217_vm5, %v3844_v63, 0.0 }
0x1973   : > { %3016 = vadd.xlane.f32.xlu2 %v3015_v2  ;;  %v3620_v2 = vld [vmem:[%s4831_s11 + $0x50] sm:$0xff] }
0x1974   : > { %3264 = vmatpush.msrb.mxu3 %v3620_v2 }
0x1984   : > { %2907 = vrot.lane.b32.xlu0 %v4644_v29, %s4838_s2  ;;  %s4842_s2 = sld [smem:[#allocation34_spill]] }
0x198a   : > { %s4843_s3 = smov %s4842_s2 }
0x198b   : > { %3020 = vrot.lane.b32.xlu2 %v4644_v29, %s4827_s28  ;;  %s4840_s28 = sld [smem:[#allocation36_spill]] }
0x19de   : > { %v2903_v6 = vpop.xlane.xlu1 %2902 }
0x19e3   : > { %v3102_v3 = vpop.xlane.xlu0 %3101 }
0x19e4   : > { %v3103_v4 = vsub.f32 %v3099_v61, %v3102_v3  ;;  %v3772_v61 = vld [vmem:[#allocation5 + $0x1] ss:$0 sm:$0xff]  ;;  %v3619_v3 = vld [vmem:[%s4831_s11 + $0x48] sm:$0xff] }
0x19e5   : > { %3265 = vmatpush.msrb.mxu3 %v3619_v3 }
0x19e6   : > { %v3104_v5 = vmul.f32 1.442695, %v3103_v4  ;;  %v3017_v7 = vpop.xlane.xlu2 %3016  ;;  %v3618_v4 = vld [vmem:[%s4831_s11 + $0x40] sm:$0xff] }
0x19e7   : > { %3266 = vmatpush.msrb.mxu3 %v3618_v4 }
0x19e8   : > { %3845 = vpow2.f32 %v3104_v5  ;;  %v3773_v5 = vld [vmem:[%s4835_s6 + $0x1] ss:$0 sm:$0xff]  ;;  %s3316_s6 = scalar_lea.hbm %s4842_s2, %s3630_s5  ;;  %s3967_s5 = scalar_lea.hbm %s4843_s3, 16 }
0x19e9   : > { %3847 = vrcp.f32 %v2903_v6  ;;  %s3320_s11 = sshll.u32 %s3316_s6, 4  ;;  %s3321_s11 = int_to_ptr.hbm [resolvable:$true] %s3320_s11 }
0x19ea   : > { %3849 = vrcp.f32 %v3017_v7 }
0x19ee   : > { %v3846_v41 = vpop.eup %3845  ;;  %v3021_v11 = vpop.permute.xlu2 %3020 }
0x19ef   : > { %v3106_v9 = vsel %vm1217_vm5, %v3846_v41, 0.0  ;;  %v3848_v1 = vpop.eup %3847 }
0x19f0   : > { %3107 = vadd.xlane.f32.xlu1 %v3106_v9  ;;  %v2905_v0 = vmul.f32 %v3848_v1, %v3842_v57  ;;  %v3850_v54 = vpop.eup %3849  ;;  %v3774_v9 = vld [vmem:[%s4837_s9 + $0x1] ss:$0 sm:$0xff] }
0x19f1   : > { %v3019_v13 = vmul.f32 %v3850_v54, %v3844_v63 }
0x19f6   : > { %v2908_v10 = vpop.permute.xlu0 %2907 }
0x19f7   : > { %2928 = vmatpush.msrb.mxu1 %v2908_v10 }
0x19f8   : > { %3605 = vmatmul.msk.f32.vlgmr.msrb.gmra.mxu1 %vm1217_vm5, %v2905_v0 }
0x19f9   : > { %3041 = vmatpush.msra.mxu1 %v3021_v11 }
0x19fb   : > { %3155 = vmatpush.msrb.mxu1 %v3595_v23 }
0x1a00   : > { %3610 = vmatmul.msk.f32.vlgmr.msra.gmra.mxu1 %vm1217_vm5, %v3019_v13 }
0x1a09   : > { %3111 = vrot.lane.b32.xlu1 %v4644_v29, %s4839_s7  ;;  %v3770_v29 = vld [vmem:[%s4829_s10 + $0x1] ss:$0 sm:$0xff]  ;;  %s1062_s7 = sand.u32 1, %s4840_s28   ;;  %s3961_s28 = sshra.s32 %s3321_s11, 4  ;;  %s3962_s28 = int_to_ptr.hbm [resolvable:$true] %s3961_s28 }
0x1a0a   : > { %s3489_s4 = sshll.u32 %s1062_s7, 3  ;;  %s3306_s0 = scalar_lea.sflag [#allocation4], %s1062_s7 }
0x1a0b   : > { %s1064_s9 = scalar_lea.vmem [#allocation8], %s3489_s4  ;;  %p3968_p7 = scmp.lt.s32.totalorder %s3962_s28, %s4843_s3 }
0x1a0c   : > { %s3318_s10 = sshll.u32 %s1064_s9, 4  ;;  %s3319_s10 = int_to_ptr.vmem [resolvable:$true] %s3318_s10 }
0x1a63   : > { %v3108_v16 = vpop.xlane.xlu1 %3107 }
0x1a64   : > { %3851 = vrcp.f32 %v3108_v16 }
0x1a6a   : > { %v3852_v18 = vpop.eup %3851 }
0x1a6b   : > { %v3110_v19 = vmul.f32 %v3852_v18, %v3846_v41 }
0x1a75   : > { %v2930_v17 = vpop.f32.mrf.mxu1 }
0x1a76   : > { %3606 = vmatmul.msk.f32.vlgmr.msra.gmra.mxu2 %vm1217_vm5, %v2930_v17 }
0x1a77   : > { %3236 = vmatpush.msra.mxu2 %v3204_v39 }
0x1a79   : > { %3237 = vmatpush.msra.mxu2 %v3203_v40 }
0x1a7b   : > { %v3112_v21 = vpop.permute.xlu1 %3111 }
0x1a7c   : > { %3132 = vmatpush.msra.mxu0 %v3112_v21 }
0x1a7d   : > { %v3043_v22 = vpop.f32.mrf.mxu1  ;;  %3614 = vmatmul.msk.f32.vlgmr.msra.gmra.mxu0 %vm1217_vm5, %v3110_v19 }
0x1a7e   : > { %3611 = vmatmul.msk.f32.vlgmr.msrb.gmra.mxu2 %vm1217_vm5, %v3043_v22 }
0x1af9   : > { %v2953_v25 = vpop.f32.mrf.mxu2 }
0x1afa   : > { %v3134_v24 = vpop.f32.mrf.mxu0  ;;  %v2977_v27 = vadd.f32 %v2976_v53, %v2953_v25 }
0x1afb   : > { %3615 = vmatmul.msk.f32.vlgmr.msrb.gmra.mxu1 %vm1217_vm5, %v3134_v24 }
0x1b01   : > { %v3066_v26 = vpop.f32.mrf.mxu2 }
0x1b02   : > { %v3069_v28 = vadd.f32 %v3066_v26, %v2977_v27  ;;  %v3775_v27 = vld [vmem:[%s4841_s1] ss:$0 sm:$0xff]  ;;  %s3963_s1 = scalar_lea.hbm %s3962_s28, 8 }
0x1b03   : > { %p3964_p9 = scmp.ne.s32.totalorder %s3962_s28, %s3963_s1  ;;  %p3969_p8 = scmp.lt.s32.totalorder %s3967_s5, %s3963_s1 }
0x1b05   : > { %p3965_p10 = pnand %p3964_p9, %p4270_p5  ;;  %p3970_p11 = por %p3969_p8, %p3968_p7 }
0x1b07   : > { %p3966_p12 = pneg %p3965_p10 }
0x1b09   : > { %p3971_p13 = pnand %p3970_p11, %p3966_p12 }
0x1b78   : > { %v3157_v12 = vpop.f32.mrf.mxu1 }
0x1b79   : > { %v3160_v30 = vadd.f32 %v3157_v12, %v3069_v28 }
0x1b7b   : > { %v3164_v20 = vadd.f32 %v3770_v29, %v3160_v30  ;;  %v3776_v29 = vld [vmem:[#allocation7] ss:$0 sm:$0xff] }
0x1b7d   : > { %v3165_v31 = vadd.f32 %v3164_v20, %v4603_v38  ;;  %v3202_v38 = vld [vmem:[#allocation2 + $0x28] sm:$0xff] }
0x1b7e   : > { %3238 = vmatpush.msra.mxu2 %v3202_v38 }
0x1b7f   : > { %v3170_v32 = vsel %vm1087_vm0, %v3165_v31, 0.0 }
0x1b80   : > { %3171 = vadd.xlane.f32.xlu0 %v3170_v32  ;;  %3239 = vmatpush.msra.mxu2 %v3201_v43 }
0x1bf3   : > { %v3172_v33 = vpop.xlane.xlu0 %3171 }
0x1bf4   : > { %v3173_v34 = vmul.f32 %v3172_v33, %v4343_v8 }
0x1bf6   : > { %v3174_v35 = vsub.f32 %v3165_v31, %v3173_v34 }
0x1bf8   : > { %v3175_v36 = vmul.f32 %v3174_v35, %v3174_v35 }
0x1bfa   : > { %v3176_v37 = vsel %vm1087_vm0, %v3175_v36, 0.0 }
0x1bfb   : > { %3177 = vadd.xlane.f32.xlu2 %v3176_v37 }
0x1c6e   : > { %v3178_v47 = vpop.xlane.xlu2 %3177 }
0x1c6f   : > { %v3179_v42 = vmul.f32 %v3178_v47, %v4343_v8 }
0x1c71   : > { %v3180_v50 = vadd.f32 1e-06, %v3179_v42 }
0x1c73   : > { %3853 = vrsqrt.f32 %v3180_v50  ;;  %vm3187_vm5 = vweird.f32 %v3180_v50 }
0x1c79   : > { %v3854_v52 = vpop.eup %3853 }
0x1c7a   : > { %v3182_v53 = vmul.f32 %v3854_v52, %v3180_v50  ;;  %vm3188_vm4 = vweird.f32 %v3854_v52 }
0x1c7b   : > { %vm3189_vm6 = vmor %vm3187_vm5, %vm3188_vm4 }
0x1c7c   : > { %v3183_v55 = vmul.f32 %v3854_v52, %v3182_v53 }
0x1c7e   : > { %v3184_v56 = vmul.f32 0.5, %v3183_v55 }
0x1c80   : > { %v3185_v57 = vsub.f32 1.5, %v3184_v56 }
0x1c82   : > { %v3186_v58 = vmul.f32 %v3854_v52, %v3185_v57 }
0x1c84   : > { %v3190_v60 = vsel %vm3189_vm6, %v3854_v52, %v3186_v58 }
0x1c85   : > { %v3191_v49 = vmul.f32 %v3190_v60, %v3174_v35 }
0x1c87   : > { %v3195_v62 = vmul.f32 %v3771_v59, %v3191_v49 }
0x1c89   : > { %v3199_v63 = vadd.f32 %v3772_v61, %v3195_v62 }
0x1c8b   : > { %3627 = vmatmul.msk.f32.vlgmr.msra.gmra.mxu2 %vm1087_vm0, %v3199_v63 }
0x1d0e   : > { %v3241_v6 = vpop.f32.mrf.mxu2 }
0x1d0f   : > { %v3242_v41 = vadd.f32 %v3773_v5, %v3241_v6 }
0x1d11   : > { %v3244_v7 = vmax.f32 %v3242_v41, 0.0 }
0x1d13   : > { %3628 = vmatmul.msk.f32.vlgmr.msrb.gmra.mxu3 %vm2147_vm12, %v3244_v7 }
0x1d96   : > { %v3268_v1 = vpop.f32.mrf.mxu3 }
0x1d97   : > { %v3269_v0 = vadd.f32 %v3774_v9, %v3268_v1 }
0x1d99   : > { %v3271_v10 = vadd.f32 %v3269_v0, %v3165_v31 }
0x1d9b   : > { %v3274_v11 = vsel %vm1087_vm0, %v3271_v10, 0.0 }
0x1d9c   : > { %3275 = vadd.xlane.f32.xlu1 %v3274_v11 }
0x1e0f   : > { %v3276_v54 = vpop.xlane.xlu1 %3275 }
0x1e10   : > { %v3277_v13 = vmul.f32 %v3276_v54, %v4343_v8 }
0x1e12   : > { %v3278_v14 = vsub.f32 %v3271_v10, %v3277_v13 }
0x1e14   : > { %v3279_v15 = vmul.f32 %v3278_v14, %v3278_v14 }
0x1e16   : > { %v3280_v16 = vsel %vm1087_vm0, %v3279_v15, 0.0 }
0x1e17   : > { %3281 = vadd.xlane.f32.xlu0 %v3280_v16 }
0x1e8a   : > { %v3282_v17 = vpop.xlane.xlu0 %3281 }
0x1e8b   : > { %v3283_v18 = vmul.f32 %v3282_v17, %v4343_v8 }
0x1e8d   : > { %v3284_v19 = vadd.f32 1e-06, %v3283_v18 }
0x1e8f   : > { %3855 = vrsqrt.f32 %v3284_v19  ;;  %vm3291_vm8 = vweird.f32 %v3284_v19 }
0x1e95   : > { %v3856_v21 = vpop.eup %3855 }
0x1e96   : > { %v3286_v22 = vmul.f32 %v3856_v21, %v3284_v19  ;;  %vm3292_vm7 = vweird.f32 %v3856_v21 }
0x1e97   : > { %vm3293_vm9 = vmor %vm3291_vm8, %vm3292_vm7 }
0x1e98   : > { %v3287_v23 = vmul.f32 %v3856_v21, %v3286_v22 }
0x1e9a   : > { %v3288_v24 = vmul.f32 0.5, %v3287_v23 }
0x1e9c   : > { %v3289_v25 = vsub.f32 1.5, %v3288_v24 }
0x1e9e   : > { %v3290_v26 = vmul.f32 %v3856_v21, %v3289_v25 }
0x1ea0   : > { %v3294_v28 = vsel %vm3293_vm9, %v3856_v21, %v3290_v26 }
0x1ea1   : > { %v3295_v8 = vmul.f32 %v3294_v28, %v3278_v14 }
0x1ea3   : > { %v3299_v12 = vmul.f32 %v3775_v27, %v3295_v8 }
0x1ea5   : > { %v3303_v30 = vadd.f32 %v3776_v29, %v3299_v12 }
0x1ea7   : > { %3304 = vst.msk [vmem:[%s1064_s9] sm:$0xff] %vm1087_vm0, %v3303_v30 }
0x1ea8   : > { %3974 = shalt.err (!%p3971_p13)
}
0x1ea9   : > { %3645 = dma.vmem_to_hbm [thread:$0]  (%p4270_p5), %s3319_s10, 128, %s3321_s11, %s3306_s0  }
0x1eaa PF: > { %s4845_s6 = sld [smem:[#allocation38_spill]] }
0x1eab   : > { %s4846_s9 = sld [smem:[#allocation35_spill]] }
0x1eb0   : > { %p3667_p1 = scmp.ge.s32.totalorder %s4845_s6, 2 }
0x1eb1   : > { %s3332_s2 = sand.u32 1, %s4846_s9  }
0x1eb2   : > { %p3658_p2 = pnand %p3667_p1, %p4274_p6  ;;  %s3333_s7 = scalar_lea.sflag [#allocation4], %s3332_s2 }
0x1eb4   : > { %p3659_p3 = pneg %p3658_p2 }
0x1eb6   : > { %4000 = dma.done.wait (%p3659_p3), %s3333_s7, 128  }
0x1eb7   : > { %4002 = vsyncadd (%p3659_p3), %s3333_s7, 4294967168  ;;  %s4848_s7 = sld [smem:[#allocation39_spill]] }
0x1eb8   : > { %s4849_s28 = sld [smem:[#allocation36_spill]] }
0x1eb9   : > { %s4850_s1 = sld [smem:[#allocation37_spill]] }
0x1eba   : > { %s4851_s2 = sld [smem:[#allocation40_spill]] }
0x1ebd   : > { %p77_p4 = scmp.ge.s32.totalorder %s4848_s7, 4  }
0x1ebf   :  { %79 = sbr.rel (!%p77_p4) target bundleno = 64 (0x40), region = 263 }
0x1ec4   :  { %3339 = vsyncpa [#allocation3], 1 }
0x1ec5   :  { %3341 = vsyncpa [#allocation3 + $0x1], 1 }
0x1ec6   :  { %3342 = vsyncpa [#allocation6], 1 }
0x1ec7   :  { %3343 = vsyncpa [#allocation4], 1 }
0x1ec8   :  { %3345 = vsyncpa [#allocation4 + $0x1], 1 }

</bundles_post_ra>
